<compile_context>
chip_gen: v7x
topology: tpu7x:2x2x1
jax: 0.10.0
libtpu: 0.0.40
codegen_flags: <defaults>
</compile_context>

<pallas_src>
import math

import jax
import jax.numpy as jnp
from jax.experimental import pallas as pl
from jax.experimental.pallas import tpu as pltpu

VERY_LARGE_NUMBER = 1e10


# ----------------------------- Pallas kernel ------------------------------ #
def _attack_mlp_kernel(nf_ref, ef_ref, w1a_ref, w1e_ref, b1_ref, w2r_ref, o_ref):
    # nf_ref  : (TN, D)            ally node features (one row per node in tile)
    # ef_ref  : (TN, E, D)         gathered enemy features, one per (node, slot)
    # w1a_ref : (D, H)             ally half of W1       (resident)
    # w1e_ref : (D, H)             enemy half of W1      (resident)
    # b1_ref  : (1, H)  f32
    # w2r_ref : (1, H)  f32        W2 transposed to a row
    # o_ref   : (TN*E//128, 128) f32   lane-dense attack-argument slab
    TN, E, D = ef_ref.shape
    H = w1a_ref.shape[1]
    R = TN * E

    # Layer 1, factored: h[n, e, :] = x_ally[n] @ W1a + x_enemy[n, e] @ W1e + b1
    ally_h = jnp.dot(nf_ref[...], w1a_ref[...],
                     preferred_element_type=jnp.float32)                    # (TN, H)
    enemy_h = jnp.dot(ef_ref[...].reshape(R, D), w1e_ref[...],
                      preferred_element_type=jnp.float32)                   # (R, H)
    h = enemy_h.reshape(TN, E, H) + ally_h[:, None, :] + b1_ref[...]        # (TN, E, H)
    h = h.reshape(R // 128, 128, H)   # regroup major dims -> lane-dense rows

    # mish(x) = x * tanh(softplus(x)) = x * ((1+e^x)^2 - 1) / ((1+e^x)^2 + 1)
    # single exp + approximate reciprocal; mish(x) ~= x for x >> 0 (clamp).
    hc = jnp.minimum(h, 20.0)
    e = jnp.exp(hc)
    t = (1.0 + e) * (1.0 + e)
    m = h * (t - 1.0) * pl.reciprocal(t + 1.0, approx=True)
    m = jnp.where(h > 20.0, h, m)

    # Layer 2 (H -> 1) as VPU multiply + lane reduction (a 1-wide MXU RHS is
    # wasteful).  Result is already lane-dense: (R//128, 128).
    o_ref[...] = jnp.sum(m * w2r_ref[...].reshape(1, 1, H), axis=-1)


# ------------------------------- wrapper ----------------------------------- #
def _choose_tile_nodes(num_enemy, target_rows=1024):
    """Nodes-per-tile so that rows-per-tile (TN*E) is a multiple of 128
    (lane-dense output) and TN is a multiple of 8 (sublane tiling)."""
    g = 128 // math.gcd(num_enemy, 128)
    g = g * 8 // math.gcd(g, 8)               # lcm(g, 8)
    tn = (target_rows // num_enemy // g) * g
    return max(tn, g)


def attack_module_forward(node_feature, attack_src, attack_mask, params,
                          maximum_num_enemy, *, matmul_dtype=jnp.float32):
    """
    node_feature : (N, node_dim) f32  -- features of ALL graph nodes
    attack_src   : (N, maximum_num_enemy) i32 -- enemy node index per slot
                    (dense mailbox form of the attack-type edges; the
                     destination node is the row index)
    attack_mask  : (N, maximum_num_enemy) f32 -- 1.0 if that edge exists
    returns      : (N, maximum_num_enemy) attack_argument
    (an all-zero mask row / all-zero mask reproduces the "no attack edges"
     path: the whole row is -VERY_LARGE_NUMBER.)
    """
    N, D = node_feature.shape
    E = maximum_num_enemy
    w1, b1, w2, b2 = params
    H = w1.shape[1]
    w1_ally, w1_enemy = w1[:D], w1[D:]

    TN = _choose_tile_nodes(E)
    R = TN * E                                   # rows per grid step
    assert R % 128 == 0 and TN % 8 == 0
    n_pad = pl.cdiv(N, TN) * TN

    nf = jnp.pad(node_feature, ((0, n_pad - N), (0, 0)))
    src = jnp.pad(attack_src, ((0, n_pad - N), (0, 0)))
    # Per-edge enemy-feature gather (glue); no E-fold ally duplication, no concat.
    enemy_feat = jnp.take(node_feature, src.reshape(-1), axis=0).reshape(n_pad, E, D)

    nf_c = nf.astype(matmul_dtype)
    ef_c = enemy_feat.astype(matmul_dtype)
    w1a_c = w1_ally.astype(matmul_dtype)
    w1e_c = w1_enemy.astype(matmul_dtype)
    b1_f = b1.astype(jnp.float32).reshape(1, H)
    w2r = w2.astype(jnp.float32).reshape(1, H)

    grid = (n_pad // TN,)
    out = pl.pallas_call(
        _attack_mlp_kernel,
        out_shape=jax.ShapeDtypeStruct((n_pad * E // 128, 128), jnp.float32),
        grid_spec=pltpu.PrefetchScalarGridSpec(
            num_scalar_prefetch=0,
            grid=grid,
            in_specs=[
                pl.BlockSpec((TN, D), lambda i: (i, 0)),         # ally node feats
                pl.BlockSpec((TN, E, D), lambda i: (i, 0, 0)),   # gathered enemy feats
                pl.BlockSpec((D, H), lambda i: (0, 0)),          # W1 ally half (resident)
                pl.BlockSpec((D, H), lambda i: (0, 0)),          # W1 enemy half (resident)
                pl.BlockSpec((1, H), lambda i: (0, 0)),          # b1
                pl.BlockSpec((1, H), lambda i: (0, 0)),          # W2 row
            ],
            out_specs=pl.BlockSpec((R // 128, 128), lambda i: (i, 0)),
        ),
        compiler_params=pltpu.CompilerParams(
            dimension_semantics=("parallel",),   # shards grid across v7x's 2 TCs
        ),
    )(nf_c, ef_c, w1a_c, w1e_c, b1_f, w2r)

    # Fused XLA epilogue: fold b2, reshape lane-dense slab back, apply edge mask.
    y = out.reshape(n_pad, E)[:N] + b2.reshape(())
    return jnp.where(attack_mask > 0.5, y, -VERY_LARGE_NUMBER)

    # TODO(synk): the enemy_tag mailbox (integer tag passthrough) is trivial
    # bookkeeping and is not routed through the kernel.


def init_params(key, node_dim, hidden=128):
    """MLP(2*node_dim -> hidden -> 1), deterministic init."""
    din = 2 * node_dim
    k1, k2 = jax.random.split(key)
    w1 = jax.random.normal(k1, (din, hidden), jnp.float32) * (1.0 / jnp.sqrt(din))
    b1 = jnp.zeros((1, hidden), jnp.float32)
    w2 = jax.random.normal(k2, (hidden, 1), jnp.float32) * (1.0 / jnp.sqrt(hidden))
    b2 = jnp.zeros((1, 1), jnp.float32)
    return w1, b1, w2, b2


# ------------------------------ reference ---------------------------------- #
def reference_forward(node_feature, attack_src, attack_mask, params, max_enemy):
    w1, b1, w2, b2 = params
    N = node_feature.shape[0]
    ally = jnp.repeat(node_feature, max_enemy, axis=0)
    enemy = jnp.take(node_feature, attack_src.reshape(-1), axis=0)
    x = jnp.concatenate([ally, enemy], axis=-1)
    h = x @ w1 + b1
    h = h * jnp.tanh(jax.nn.softplus(h))
    y = h @ w2 + b2
    m = attack_mask.reshape(-1, 1) > 0.5
    y = jnp.where(m, y, -VERY_LARGE_NUMBER)
    return y.reshape(N, max_enemy)


if __name__ == "__main__":
    key = jax.random.PRNGKey(0)
    node_dim = 32
    num_ally = 4
    num_enemy = 4
    num_nodes = num_ally + num_enemy          # ally nodes 0..3, enemy nodes 4..7
    maximum_num_enemy = 8

    k_feat, k_param, _ = jax.random.split(key, 3)
    node_feature = jax.random.normal(k_feat, (num_nodes, node_dim), jnp.float32)
    params = init_params(k_param, node_dim)

    # Synthetic dense attack-edge mailbox:
    #  - each ally node attacks `num_enemy` enemies (slots 0..num_enemy-1 valid)
    #  - enemy nodes receive no attack edges (rows -> all -VERY_LARGE_NUMBER)
    attack_src = jnp.zeros((num_nodes, maximum_num_enemy), jnp.int32)
    attack_mask = jnp.zeros((num_nodes, maximum_num_enemy), jnp.float32)
    enemy_ids = jnp.arange(num_ally, num_ally + num_enemy, dtype=jnp.int32)
    attack_src = attack_src.at[:num_ally, :num_enemy].set(
        jnp.tile(enemy_ids[None, :], (num_ally, 1)))
    attack_mask = attack_mask.at[:num_ally, :num_enemy].set(1.0)

    ref = reference_forward(node_feature, attack_src, attack_mask,
                            params, maximum_num_enemy)

    # f32 matmul path (tight tolerance; slack only for the single-exp mish
    # rewrite + approximate reciprocal).
    out_f32 = attack_module_forward(node_feature, attack_src, attack_mask,
                                    params, maximum_num_enemy,
                                    matmul_dtype=jnp.float32)
    out_f32 = jax.block_until_ready(out_f32)
    assert out_f32.shape == (num_nodes, maximum_num_enemy)
    assert jnp.allclose(out_f32, ref, atol=5e-3, rtol=5e-3)

    # bf16 matmul-operand path (v6e/v7x byte-stream optimization; element-wise
    # math stays f32) -- looser tolerance for bf16 inputs.
    out_bf16 = attack_module_forward(node_feature, attack_src, attack_mask,
                                     params, maximum_num_enemy,
                                     matmul_dtype=jnp.bfloat16)
    out_bf16 = jax.block_until_ready(out_bf16)
    assert jnp.allclose(out_bf16, ref, atol=1e-1, rtol=1e-1)

    print("KERNEL_OK")
</pallas_src>

<mosaic_0001>
module attributes {stable_mosaic.version = 11 : i64} {
  func.func @_attack_mlp_kernel(%arg0: i32, %arg1: memref<128x32xf32, #tpu.memory_space<vmem>>, %arg2: memref<128x8x32xf32, #tpu.memory_space<vmem>>, %arg3: memref<32x128xf32, #tpu.memory_space<vmem>>, %arg4: memref<32x128xf32, #tpu.memory_space<vmem>>, %arg5: memref<1x128xf32, #tpu.memory_space<vmem>>, %arg6: memref<1x128xf32, #tpu.memory_space<vmem>>, %arg7: memref<8x128xf32, #tpu.memory_space<vmem>>) attributes {dimension_semantics = [#tpu.dimension_semantics<parallel>], iteration_bounds = array<i64: 1>, scalar_prefetch = 0 : i64, scratch_operands = 0 : i64, tpu.core_type = #tpu.core_type<tc>, window_params = [{transform_indices = @transform_0, window_bounds = array<i64: 128, 32>}, {transform_indices = @transform_1, window_bounds = array<i64: 128, 8, 32>}, {pipeline_mode = #tpu.pipeline_mode<synchronous>, transform_indices = @transform_2, window_bounds = array<i64: 32, 128>}, {pipeline_mode = #tpu.pipeline_mode<synchronous>, transform_indices = @transform_3, window_bounds = array<i64: 32, 128>}, {pipeline_mode = #tpu.pipeline_mode<synchronous>, transform_indices = @transform_4, window_bounds = array<i64: 1, 128>}, {pipeline_mode = #tpu.pipeline_mode<synchronous>, transform_indices = @transform_5, window_bounds = array<i64: 1, 128>}, {transform_indices = @transform_6, window_bounds = array<i64: 8, 128>}]} {
    %c0 = arith.constant 0 : index
    %c0_0 = arith.constant 0 : index
    %0 = vector.load %arg1[%c0, %c0_0] : memref<128x32xf32, #tpu.memory_space<vmem>>, vector<128x32xf32>
    %c0_1 = arith.constant 0 : index
    %c0_2 = arith.constant 0 : index
    %1 = vector.load %arg3[%c0_1, %c0_2] : memref<32x128xf32, #tpu.memory_space<vmem>>, vector<32x128xf32>
    %cst = arith.constant dense<0.000000e+00> : vector<128x128xf32>
    %2 = tpu.matmul %0, %1, %cst {dimension_numbers = #tpu.dot_dimension_numbers<[1], [0], [0], [1], [0, 0, 1, 1], [], []>} : vector<128x32xf32>, vector<32x128xf32>, vector<128x128xf32> -> vector<128x128xf32>
    %c0_3 = arith.constant 0 : index
    %c0_4 = arith.constant 0 : index
    %c0_5 = arith.constant 0 : index
    %3 = vector.load %arg2[%c0_3, %c0_4, %c0_5] : memref<128x8x32xf32, #tpu.memory_space<vmem>>, vector<128x8x32xf32>
    %4 = vector.shape_cast %3 : vector<128x8x32xf32> to vector<1024x32xf32>
    %c0_6 = arith.constant 0 : index
    %c0_7 = arith.constant 0 : index
    %5 = vector.load %arg4[%c0_6, %c0_7] : memref<32x128xf32, #tpu.memory_space<vmem>>, vector<32x128xf32>
    %cst_8 = arith.constant dense<0.000000e+00> : vector<1024x128xf32>
    %6 = tpu.matmul %4, %5, %cst_8 {dimension_numbers = #tpu.dot_dimension_numbers<[1], [0], [0], [1], [0, 0, 1, 1], [], []>} : vector<1024x32xf32>, vector<32x128xf32>, vector<1024x128xf32> -> vector<1024x128xf32>
    %7 = vector.shape_cast %6 : vector<1024x128xf32> to vector<128x8x128xf32>
    %8 = vector.shape_cast %2 : vector<128x128xf32> to vector<128x1x128xf32>
    %9 = vector.broadcast %8 : vector<128x1x128xf32> to vector<128x8x128xf32>
    %10 = arith.addf %7, %9 : vector<128x8x128xf32>
    %c0_9 = arith.constant 0 : index
    %c0_10 = arith.constant 0 : index
    %11 = vector.load %arg5[%c0_9, %c0_10] : memref<1x128xf32, #tpu.memory_space<vmem>>, vector<1x128xf32>
    %12 = vector.shape_cast %11 : vector<1x128xf32> to vector<1x1x128xf32>
    %13 = vector.broadcast %12 : vector<1x1x128xf32> to vector<128x8x128xf32>
    %14 = arith.addf %10, %13 : vector<128x8x128xf32>
    %15 = vector.shape_cast %14 : vector<128x8x128xf32> to vector<8x128x128xf32>
    %cst_11 = arith.constant 2.000000e+01 : f32
    %16 = vector.broadcast %cst_11 : f32 to vector<8x128x128xf32>
    %17 = arith.minimumf %15, %16 : vector<8x128x128xf32>
    %18 = math.exp %17 : vector<8x128x128xf32>
    %cst_12 = arith.constant 1.000000e+00 : f32
    %19 = vector.broadcast %cst_12 : f32 to vector<8x128x128xf32>
    %20 = arith.addf %19, %18 : vector<8x128x128xf32>
    %cst_13 = arith.constant 1.000000e+00 : f32
    %21 = vector.broadcast %cst_13 : f32 to vector<8x128x128xf32>
    %22 = arith.addf %21, %18 : vector<8x128x128xf32>
    %23 = arith.mulf %20, %22 : vector<8x128x128xf32>
    %cst_14 = arith.constant 1.000000e+00 : f32
    %24 = vector.broadcast %cst_14 : f32 to vector<8x128x128xf32>
    %25 = arith.subf %23, %24 : vector<8x128x128xf32>
    %26 = arith.mulf %15, %25 : vector<8x128x128xf32>
    %cst_15 = arith.constant 1.000000e+00 : f32
    %27 = vector.broadcast %cst_15 : f32 to vector<8x128x128xf32>
    %28 = arith.addf %23, %27 : vector<8x128x128xf32>
    %29 = tpu.reciprocal %28 {approx = true} : vector<8x128x128xf32> -> vector<8x128x128xf32>
    %30 = arith.mulf %26, %29 : vector<8x128x128xf32>
    %cst_16 = arith.constant 2.000000e+01 : f32
    %31 = vector.broadcast %cst_16 : f32 to vector<8x128x128xf32>
    %32 = arith.cmpf ogt, %15, %31 : vector<8x128x128xf32>
    %33 = arith.select %32, %15, %30 : vector<8x128x128xi1>, vector<8x128x128xf32>
    %c0_17 = arith.constant 0 : index
    %c0_18 = arith.constant 0 : index
    %34 = vector.load %arg6[%c0_17, %c0_18] : memref<1x128xf32, #tpu.memory_space<vmem>>, vector<1x128xf32>
    %35 = vector.shape_cast %34 : vector<1x128xf32> to vector<1x1x128xf32>
    %36 = vector.broadcast %35 : vector<1x1x128xf32> to vector<8x128x128xf32>
    %37 = arith.mulf %33, %36 : vector<8x128x128xf32>
    %cst_19 = arith.constant dense<0.000000e+00> : vector<8x128xf32>
    %38 = vector.multi_reduction <add>, %37, %cst_19 [2] : vector<8x128x128xf32> to vector<8x128xf32>
    %c0_20 = arith.constant 0 : index
    %c0_21 = arith.constant 0 : index
    %39 = vector.load %arg7[%c0_20, %c0_21] : memref<8x128xf32, #tpu.memory_space<vmem>>, vector<8x128xf32>
    tpu.vector_store %arg7[%c0_20, %c0_21], %38 {strides = array<i32>} : memref<8x128xf32, #tpu.memory_space<vmem>>, vector<8x128xf32>,
    return
  }
  func.func @transform_0(%arg0: i32) -> (i32, i32) {
    %c0_i32 = arith.constant 0 : i32
    %c0_i32_0 = arith.constant 0 : i32
    return %arg0, %c0_i32 : i32, i32
  }
  func.func @transform_1(%arg0: i32) -> (i32, i32, i32) {
    %c0_i32 = arith.constant 0 : i32
    %c0_i32_0 = arith.constant 0 : i32
    %c0_i32_1 = arith.constant 0 : i32
    return %arg0, %c0_i32, %c0_i32_0 : i32, i32, i32
  }
  func.func @transform_2(%arg0: i32) -> (i32, i32) {
    %c0_i32 = arith.constant 0 : i32
    %c0_i32_0 = arith.constant 0 : i32
    %c0_i32_1 = arith.constant 0 : i32
    return %c0_i32, %c0_i32_0 : i32, i32
  }
  func.func @transform_3(%arg0: i32) -> (i32, i32) {
    %c0_i32 = arith.constant 0 : i32
    %c0_i32_0 = arith.constant 0 : i32
    %c0_i32_1 = arith.constant 0 : i32
    return %c0_i32, %c0_i32_0 : i32, i32
  }
  func.func @transform_4(%arg0: i32) -> (i32, i32) {
    %c0_i32 = arith.constant 0 : i32
    %c0_i32_0 = arith.constant 0 : i32
    %c0_i32_1 = arith.constant 0 : i32
    return %c0_i32, %c0_i32_0 : i32, i32
  }
  func.func @transform_5(%arg0: i32) -> (i32, i32) {
    %c0_i32 = arith.constant 0 : i32
    %c0_i32_0 = arith.constant 0 : i32
    %c0_i32_1 = arith.constant 0 : i32
    return %c0_i32, %c0_i32_0 : i32, i32
  }
  func.func @transform_6(%arg0: i32) -> (i32, i32) {
    %c0_i32 = arith.constant 0 : i32
    %c0_i32_0 = arith.constant 0 : i32
    return %arg0, %c0_i32 : i32, i32
  }
}

</mosaic_0001>

<bundles_post_ra>
// kernel: tpu_custom_call.1
= control target key start
LH: loop header
LB: loop body
LE: loop exit
PB: predicated region body
PF: predicated region fallthrough
CT: control target
= control target key end

     0   :  { %vm44_vm0 = vcmask 261120   ;;  %s11405_s0 = inlined_call_operand.vmem [shape: f32[128,32], index: 0, kind: input, shape index: {}]   ;;  %s11406_s1 = inlined_call_operand.vmem [shape: f32[128,8,32], index: 1, kind: input, shape index: {}]   ;;  %s11407_s2 = inlined_call_operand.vmem [shape: f32[32,128], index: 2, kind: input, shape index: {}]   ;;  %s11408_s3 = inlined_call_operand.vmem [shape: f32[32,128], index: 3, kind: input, shape index: {}]   ;;  %s11409_s4 = inlined_call_operand.vmem [shape: f32[1,128], index: 4, kind: input, shape index: {}]   ;;  %s11410_s5 = inlined_call_operand.vmem [shape: f32[1,128], index: 5, kind: input, shape index: {}]   ;;  %s11411_s6 = inlined_call_operand.hbm [shape: f32[8,128], index: 6, kind: output, shape index: {}]  }
   0x1   :  { %v40_v0 = vld [vmem:[%s11407_s2] sm:$0xff]  ;;  %v41_v1 = vld [vmem:[%s11407_s2 + $0x8] sm:$0xff]  ;;  %v42_v5 = vld [vmem:[%s11407_s2 + $0x10] sm:$0xff] }
   0x2   :  { %v366_v2 = vld [vmem:[%s11408_s3] sm:$0xff]  ;;  %v6569_v3 = vpack.c.bf16 %v41_v1, %v40_v0  ;;  %v367_v4 = vld [vmem:[%s11408_s3 + $0x8] sm:$0xff]  ;;  %v43_v6 = vld [vmem:[%s11407_s2 + $0x18] sm:$0xff] }
   0x3   :  { %v6577_v7 = vpack.c.bf16 %v367_v4, %v366_v2  ;;  %v6573_v8 = vpack.c.bf16 %v43_v6, %v42_v5  ;;  %v368_v9 = vld [vmem:[%s11408_s3 + $0x10] sm:$0xff]  ;;  %v369_v10 = vld [vmem:[%s11408_s3 + $0x18] sm:$0xff]  ;;  %v24_v11 = vld [vmem:[%s11405_s0] sm:$0xff] }
   0x4   :  { %6570 = vmatprep.subr.bf16.mxu0 %v6569_v3  ;;  %v6581_v12 = vpack.c.bf16 %v369_v10, %v368_v9  ;;  %6345 = vmatprep.mubr.msk.f32.mxu0 %vm44_vm0, %v24_v11  ;;  %v294_v13 = vld [vmem:[%s11406_s1 + $0x1c0] sm:$0xff]  ;;  %v25_v14 = vld [vmem:[%s11405_s0 + $0x8] sm:$0xff]  ;;  %v26_v16 = vld [vmem:[%s11405_s0 + $0x10] sm:$0xff] }
   0x5   :  { %6585 = vmatprep.subr.bf16.mxu1 %v6577_v7  ;;  %6572 = vmatpush3.bf16.msra.mxu0 %v6569_v3  ;;  %v295_v15 = vld [vmem:[%s11406_s1 + $0x1c8] sm:$0xff]  ;;  %v296_v17 = vld [vmem:[%s11406_s1 + $0x1d0] sm:$0xff]  ;;  %v27_v18 = vld [vmem:[%s11405_s0 + $0x18] sm:$0xff] }
   0x6   :  { %6587 = vmatpush3.bf16.msra.mxu1 %v6577_v7  ;;  %6574 = vmatprep.subr.bf16.mxu0 %v6573_v8  ;;  %v297_v19 = vld [vmem:[%s11406_s1 + $0x1d8] sm:$0xff]  ;;  %v28_v20 = vld [vmem:[%s11405_s0 + $0x20] sm:$0xff]  ;;  %v29_v22 = vld [vmem:[%s11405_s0 + $0x28] sm:$0xff] }
   0x7   :  { %6586 = vmatprep.subr.bf16.mxu1 %v6581_v12  ;;  %6461 = vmatprep.mubr.msk.f32.mxu1 %vm44_vm0, %v294_v13  ;;  %v298_v21 = vld [vmem:[%s11406_s1 + $0x1e0] sm:$0xff]  ;;  %v299_v23 = vld [vmem:[%s11406_s1 + $0x1e8] sm:$0xff]  ;;  %v30_v24 = vld [vmem:[%s11405_s0 + $0x30] sm:$0xff] }
   0x8   :  { %v300_v25 = vld [vmem:[%s11406_s1 + $0x1f0] sm:$0xff]  ;;  %v31_v26 = vld [vmem:[%s11405_s0 + $0x38] sm:$0xff]  ;;  %v32_v28 = vld [vmem:[%s11405_s0 + $0x40] sm:$0xff] }
   0x9   :  { %6576 = vmatpush3.bf16.msra.mxu0 %v6573_v8  ;;  %v301_v27 = vld [vmem:[%s11406_s1 + $0x1f8] sm:$0xff]  ;;  %v302_v29 = vld [vmem:[%s11406_s1 + $0x200] sm:$0xff]  ;;  %v33_v30 = vld [vmem:[%s11405_s0 + $0x48] sm:$0xff] }
   0xa   :  { %6588 = vmatpush3.bf16.msra.mxu1 %v6581_v12  ;;  %6578 = vmatprep.subr.bf16.mxu0 %v6577_v7  ;;  %v303_v31 = vld [vmem:[%s11406_s1 + $0x208] sm:$0xff]  ;;  %v34_v32 = vld [vmem:[%s11405_s0 + $0x50] sm:$0xff]  ;;  %v35_v34 = vld [vmem:[%s11405_s0 + $0x58] sm:$0xff] }
   0xb   :  { %v304_v33 = vld [vmem:[%s11406_s1 + $0x210] sm:$0xff]  ;;  %v305_v35 = vld [vmem:[%s11406_s1 + $0x218] sm:$0xff]  ;;  %v36_v36 = vld [vmem:[%s11405_s0 + $0x60] sm:$0xff] }
   0xc   :  { %6346 = vmatmul.mubr.msk.f32.vlgmr.msra.gmra.mrb[0].mxu0 %vm44_vm0, %v25_v14  ;;  %v306_v37 = vld [vmem:[%s11406_s1 + $0x220] sm:$0xff]  ;;  %v37_v38 = vld [vmem:[%s11405_s0 + $0x68] sm:$0xff]  ;;  %v38_v40 = vld [vmem:[%s11405_s0 + $0x70] sm:$0xff] }
   0xd   :  { %6462 = vmatmul.mubr.msk.f32.vlgmr.msra.gmra.mrb[0].mxu1 %vm44_vm0, %v295_v15  ;;  %6348 = vmatprep.mubr.msk.f32.mxu0 %vm44_vm0, %v26_v16  ;;  %v307_v39 = vld [vmem:[%s11406_s1 + $0x228] sm:$0xff]  ;;  %v308_v41 = vld [vmem:[%s11406_s1 + $0x230] sm:$0xff]  ;;  %v39_v42 = vld [vmem:[%s11405_s0 + $0x78] sm:$0xff] }
   0xe   :  { %6464 = vmatprep.mubr.msk.f32.mxu1 %vm44_vm0, %v296_v17  ;;  %6580 = vmatpush3.bf16.msra.mxu0 %v6577_v7  ;;  %v309_v43 = vld [vmem:[%s11406_s1 + $0x238] sm:$0xff]  ;;  %v238_v44 = vld [vmem:[%s11406_s1] sm:$0xff]  ;;  %v239_v46 = vld [vmem:[%s11406_s1 + $0x8] sm:$0xff] }
   0xf   :  { %6582 = vmatprep.subr.bf16.mxu0 %v6581_v12  ;;  %v310_v45 = vld [vmem:[%s11406_s1 + $0x240] sm:$0xff]  ;;  %v311_v47 = vld [vmem:[%s11406_s1 + $0x248] sm:$0xff]  ;;  %v240_v48 = vld [vmem:[%s11406_s1 + $0x10] sm:$0xff] }
  0x10   :  { %6349 = vmatmul.mubr.msk.f32.gmra.mrb[2].mxu0 %vm44_vm0, %v27_v18  ;;  %v312_v49 = vld [vmem:[%s11406_s1 + $0x250] sm:$0xff]  ;;  %v241_v50 = vld [vmem:[%s11406_s1 + $0x18] sm:$0xff]  ;;  %v242_v52 = vld [vmem:[%s11406_s1 + $0x20] sm:$0xff] }
  0x11   :  { %6465 = vmatmul.mubr.msk.f32.gmra.mrb[2].mxu1 %vm44_vm0, %v297_v19  ;;  %6351 = vmatprep.mubr.msk.f32.mxu0 %vm44_vm0, %v28_v20  ;;  %v313_v51 = vld [vmem:[%s11406_s1 + $0x258] sm:$0xff]  ;;  %v314_v53 = vld [vmem:[%s11406_s1 + $0x260] sm:$0xff]  ;;  %v243_v54 = vld [vmem:[%s11406_s1 + $0x28] sm:$0xff] }
  0x12   :  { %6467 = vmatprep.mubr.msk.f32.mxu1 %vm44_vm0, %v298_v21  ;;  %6584 = vmatpush3.bf16.msra.mxu0 %v6581_v12  ;;  %v315_v55 = vld [vmem:[%s11406_s1 + $0x268] sm:$0xff]  ;;  %v244_v56 = vld [vmem:[%s11406_s1 + $0x30] sm:$0xff] }
  0x13   :  { %v316_v57 = vld [vmem:[%s11406_s1 + $0x270] sm:$0xff] }
  0x14   :  { %6352 = vmatmul.mubr.msk.f32.gmra.mrb[4].mxu0 %vm44_vm0, %v29_v22 }
  0x15   :  { %6468 = vmatmul.mubr.msk.f32.gmra.mrb[4].mxu1 %vm44_vm0, %v299_v23  ;;  %6354 = vmatprep.mubr.msk.f32.mxu0 %vm44_vm0, %v30_v24 }
  0x16   :  { %6470 = vmatprep.mubr.msk.f32.mxu1 %vm44_vm0, %v300_v25 }
  0x18   :  { %6355 = vmatmul.mubr.msk.f32.gmra.mrb[6].mxu0 %vm44_vm0, %v31_v26 }
  0x19   :  { %6471 = vmatmul.mubr.msk.f32.gmra.mrb[6].mxu1 %vm44_vm0, %v301_v27  ;;  %6357 = vmatprep.mubr.msk.f32.mxu0 %vm44_vm0, %v32_v28 }
  0x1a   :  { %6473 = vmatprep.mubr.msk.f32.mxu1 %vm44_vm0, %v302_v29 }
  0x1c   :  { %6358 = vmatmul.mubr.msk.f32.gmra.mrb[8].mxu0 %vm44_vm0, %v33_v30 }
  0x1d   :  { %6474 = vmatmul.mubr.msk.f32.gmra.mrb[8].mxu1 %vm44_vm0, %v303_v31  ;;  %6360 = vmatprep.mubr.msk.f32.mxu0 %vm44_vm0, %v34_v32 }
  0x1e   :  { %6476 = vmatprep.mubr.msk.f32.mxu1 %vm44_vm0, %v304_v33 }
  0x20   :  { %6361 = vmatmul.mubr.msk.f32.gmra.mrb[10].mxu0 %vm44_vm0, %v35_v34 }
  0x21   :  { %6477 = vmatmul.mubr.msk.f32.gmra.mrb[10].mxu1 %vm44_vm0, %v305_v35  ;;  %6363 = vmatprep.mubr.msk.f32.mxu0 %vm44_vm0, %v36_v36 }
  0x22   :  { %6479 = vmatprep.mubr.msk.f32.mxu1 %vm44_vm0, %v306_v37 }
  0x24   :  { %6364 = vmatmul.mubr.msk.f32.gmra.mrb[12].mxu0 %vm44_vm0, %v37_v38 }
  0x25   :  { %6480 = vmatmul.mubr.msk.f32.gmra.mrb[12].mxu1 %vm44_vm0, %v307_v39  ;;  %6366 = vmatprep.mubr.msk.f32.mxu0 %vm44_vm0, %v38_v40 }
  0x26   :  { %6482 = vmatprep.mubr.msk.f32.mxu1 %vm44_vm0, %v308_v41 }
  0x28   :  { %6367 = vmatmul.mubr.msk.f32.gmra.mrb[14].mxu0 %vm44_vm0, %v39_v42 }
  0x29   :  { %6483 = vmatmul.mubr.msk.f32.gmra.mrb[14].mxu1 %vm44_vm0, %v309_v43  ;;  %6377 = vmatprep.mubr.msk.f32.mxu0 %vm44_vm0, %v238_v44 }
  0x2a   :  { %6485 = vmatprep.mubr.msk.f32.mxu1 %vm44_vm0, %v310_v45 }
  0x2c   :  { %6378 = vmatmul.mubr.msk.f32.vlgmr.msra.gmra.mrb[16].mxu0 %vm44_vm0, %v239_v46 }
  0x2d   :  { %6486 = vmatmul.mubr.msk.f32.gmra.mrb[16].mxu1 %vm44_vm0, %v311_v47  ;;  %6380 = vmatprep.mubr.msk.f32.mxu0 %vm44_vm0, %v240_v48 }
  0x2e   :  { %6488 = vmatprep.mubr.msk.f32.mxu1 %vm44_vm0, %v312_v49 }
  0x30   :  { %6381 = vmatmul.mubr.msk.f32.gmra.mrb[18].mxu0 %vm44_vm0, %v241_v50 }
  0x31   :  { %6489 = vmatmul.mubr.msk.f32.gmra.mrb[18].mxu1 %vm44_vm0, %v313_v51  ;;  %6383 = vmatprep.mubr.msk.f32.mxu0 %vm44_vm0, %v242_v52 }
  0x32   :  { %6491 = vmatprep.mubr.msk.f32.mxu1 %vm44_vm0, %v314_v53 }
  0x33   :  { %11 = vsyncpa [#allocation3], 0  ;;  %v245_v58 = vld [vmem:[%s11406_s1 + $0x38] sm:$0xff]  ;;  %v246_v60 = vld [vmem:[%s11406_s1 + $0x40] sm:$0xff] }
  0x34   :  { %6384 = vmatmul.mubr.msk.f32.gmra.mrb[20].mxu0 %vm44_vm0, %v243_v54  ;;  %v317_v59 = vld [vmem:[%s11406_s1 + $0x278] sm:$0xff]  ;;  %v318_v61 = vld [vmem:[%s11406_s1 + $0x280] sm:$0xff]  ;;  %v247_v62 = vld [vmem:[%s11406_s1 + $0x48] sm:$0xff] }
  0x35   :  { %6492 = vmatmul.mubr.msk.f32.gmra.mrb[20].mxu1 %vm44_vm0, %v315_v55  ;;  %6386 = vmatprep.mubr.msk.f32.mxu0 %vm44_vm0, %v244_v56  ;;  %v319_v63 = vld [vmem:[%s11406_s1 + $0x288] sm:$0xff]  ;;  %v248_v0 = vld [vmem:[%s11406_s1 + $0x50] sm:$0xff]  ;;  %v249_v2 = vld [vmem:[%s11406_s1 + $0x58] sm:$0xff] }
  0x36   :  { %6494 = vmatprep.mubr.msk.f32.mxu1 %vm44_vm0, %v316_v57  ;;  %v320_v1 = vld [vmem:[%s11406_s1 + $0x290] sm:$0xff]  ;;  %v321_v3 = vld [vmem:[%s11406_s1 + $0x298] sm:$0xff]  ;;  %v250_v4 = vld [vmem:[%s11406_s1 + $0x60] sm:$0xff] }
  0x37   :  { %v322_v5 = vld [vmem:[%s11406_s1 + $0x2a0] sm:$0xff]  ;;  %v251_v6 = vld [vmem:[%s11406_s1 + $0x68] sm:$0xff]  ;;  %v252_v8 = vld [vmem:[%s11406_s1 + $0x70] sm:$0xff] }
  0x38   :  { %6387 = vmatmul.mubr.msk.f32.gmra.mrb[22].mxu0 %vm44_vm0, %v245_v58  ;;  %v323_v7 = vld [vmem:[%s11406_s1 + $0x2a8] sm:$0xff]  ;;  %v324_v9 = vld [vmem:[%s11406_s1 + $0x2b0] sm:$0xff]  ;;  %v253_v10 = vld [vmem:[%s11406_s1 + $0x78] sm:$0xff] }
  0x39   :  { %6495 = vmatmul.mubr.msk.f32.gmra.mrb[22].mxu1 %vm44_vm0, %v317_v59  ;;  %6389 = vmatprep.mubr.msk.f32.mxu0 %vm44_vm0, %v246_v60  ;;  %v325_v11 = vld [vmem:[%s11406_s1 + $0x2b8] sm:$0xff]  ;;  %v254_v12 = vld [vmem:[%s11406_s1 + $0x80] sm:$0xff]  ;;  %v255_v14 = vld [vmem:[%s11406_s1 + $0x88] sm:$0xff] }
  0x3a   :  { %6497 = vmatprep.mubr.msk.f32.mxu1 %vm44_vm0, %v318_v61  ;;  %v326_v13 = vld [vmem:[%s11406_s1 + $0x2c0] sm:$0xff]  ;;  %v327_v15 = vld [vmem:[%s11406_s1 + $0x2c8] sm:$0xff]  ;;  %v256_v16 = vld [vmem:[%s11406_s1 + $0x90] sm:$0xff] }
  0x3b   :  { %v328_v17 = vld [vmem:[%s11406_s1 + $0x2d0] sm:$0xff]  ;;  %v257_v18 = vld [vmem:[%s11406_s1 + $0x98] sm:$0xff]  ;;  %v258_v20 = vld [vmem:[%s11406_s1 + $0xa0] sm:$0xff] }
  0x3c   :  { %6390 = vmatmul.mubr.msk.f32.gmra.mrb[24].mxu0 %vm44_vm0, %v247_v62  ;;  %v329_v19 = vld [vmem:[%s11406_s1 + $0x2d8] sm:$0xff]  ;;  %v330_v21 = vld [vmem:[%s11406_s1 + $0x2e0] sm:$0xff]  ;;  %v259_v22 = vld [vmem:[%s11406_s1 + $0xa8] sm:$0xff] }
  0x3d   :  { %6498 = vmatmul.mubr.msk.f32.gmra.mrb[24].mxu1 %vm44_vm0, %v319_v63  ;;  %6392 = vmatprep.mubr.msk.f32.mxu0 %vm44_vm0, %v248_v0  ;;  %v331_v23 = vld [vmem:[%s11406_s1 + $0x2e8] sm:$0xff]  ;;  %v260_v24 = vld [vmem:[%s11406_s1 + $0xb0] sm:$0xff]  ;;  %v261_v26 = vld [vmem:[%s11406_s1 + $0xb8] sm:$0xff] }
  0x3e   :  { %6500 = vmatprep.mubr.msk.f32.mxu1 %vm44_vm0, %v320_v1  ;;  %v332_v25 = vld [vmem:[%s11406_s1 + $0x2f0] sm:$0xff]  ;;  %v333_v27 = vld [vmem:[%s11406_s1 + $0x2f8] sm:$0xff]  ;;  %v262_v28 = vld [vmem:[%s11406_s1 + $0xc0] sm:$0xff] }
  0x3f   :  { %v334_v29 = vld [vmem:[%s11406_s1 + $0x300] sm:$0xff]  ;;  %v263_v30 = vld [vmem:[%s11406_s1 + $0xc8] sm:$0xff]  ;;  %v264_v32 = vld [vmem:[%s11406_s1 + $0xd0] sm:$0xff] }
  0x40   :  { %6393 = vmatmul.mubr.msk.f32.gmra.mrb[26].mxu0 %vm44_vm0, %v249_v2  ;;  %v335_v31 = vld [vmem:[%s11406_s1 + $0x308] sm:$0xff]  ;;  %v336_v33 = vld [vmem:[%s11406_s1 + $0x310] sm:$0xff]  ;;  %v265_v34 = vld [vmem:[%s11406_s1 + $0xd8] sm:$0xff] }
  0x41   :  { %6501 = vmatmul.mubr.msk.f32.gmra.mrb[26].mxu1 %vm44_vm0, %v321_v3  ;;  %6395 = vmatprep.mubr.msk.f32.mxu0 %vm44_vm0, %v250_v4  ;;  %v337_v35 = vld [vmem:[%s11406_s1 + $0x318] sm:$0xff]  ;;  %v266_v36 = vld [vmem:[%s11406_s1 + $0xe0] sm:$0xff]  ;;  %v267_v38 = vld [vmem:[%s11406_s1 + $0xe8] sm:$0xff] }
  0x42   :  { %6503 = vmatprep.mubr.msk.f32.mxu1 %vm44_vm0, %v322_v5  ;;  %v338_v37 = vld [vmem:[%s11406_s1 + $0x320] sm:$0xff]  ;;  %v339_v39 = vld [vmem:[%s11406_s1 + $0x328] sm:$0xff]  ;;  %v268_v40 = vld [vmem:[%s11406_s1 + $0xf0] sm:$0xff] }
  0x43   :  { %v340_v41 = vld [vmem:[%s11406_s1 + $0x330] sm:$0xff]  ;;  %v269_v42 = vld [vmem:[%s11406_s1 + $0xf8] sm:$0xff]  ;;  %v270_v44 = vld [vmem:[%s11406_s1 + $0x100] sm:$0xff] }
  0x44   :  { %6396 = vmatmul.mubr.msk.f32.gmra.mrb[28].mxu0 %vm44_vm0, %v251_v6  ;;  %v341_v43 = vld [vmem:[%s11406_s1 + $0x338] sm:$0xff]  ;;  %v342_v45 = vld [vmem:[%s11406_s1 + $0x340] sm:$0xff]  ;;  %v271_v46 = vld [vmem:[%s11406_s1 + $0x108] sm:$0xff] }
  0x45   :  { %6504 = vmatmul.mubr.msk.f32.gmra.mrb[28].mxu1 %vm44_vm0, %v323_v7  ;;  %6398 = vmatprep.mubr.msk.f32.mxu0 %vm44_vm0, %v252_v8  ;;  %v343_v47 = vld [vmem:[%s11406_s1 + $0x348] sm:$0xff]  ;;  %v272_v48 = vld [vmem:[%s11406_s1 + $0x110] sm:$0xff]  ;;  %v273_v50 = vld [vmem:[%s11406_s1 + $0x118] sm:$0xff] }
  0x46   :  { %6506 = vmatprep.mubr.msk.f32.mxu1 %vm44_vm0, %v324_v9  ;;  %v344_v49 = vld [vmem:[%s11406_s1 + $0x350] sm:$0xff]  ;;  %v345_v51 = vld [vmem:[%s11406_s1 + $0x358] sm:$0xff]  ;;  %v274_v52 = vld [vmem:[%s11406_s1 + $0x120] sm:$0xff] }
  0x47   :  { %v346_v53 = vld [vmem:[%s11406_s1 + $0x360] sm:$0xff]  ;;  %v275_v54 = vld [vmem:[%s11406_s1 + $0x128] sm:$0xff]  ;;  %v276_v56 = vld [vmem:[%s11406_s1 + $0x130] sm:$0xff] }
  0x48   :  { %6399 = vmatmul.mubr.msk.f32.gmra.mrb[30].mxu0 %vm44_vm0, %v253_v10  ;;  %v347_v55 = vld [vmem:[%s11406_s1 + $0x368] sm:$0xff]  ;;  %v348_v57 = vld [vmem:[%s11406_s1 + $0x370] sm:$0xff]  ;;  %v277_v58 = vld [vmem:[%s11406_s1 + $0x138] sm:$0xff] }
  0x49   :  { %6507 = vmatmul.mubr.msk.f32.gmra.mrb[30].mxu1 %vm44_vm0, %v325_v11  ;;  %6401 = vmatprep.mubr.msk.f32.mxu0 %vm44_vm0, %v254_v12  ;;  %v349_v59 = vld [vmem:[%s11406_s1 + $0x378] sm:$0xff]  ;;  %v278_v60 = vld [vmem:[%s11406_s1 + $0x140] sm:$0xff]  ;;  %v279_v62 = vld [vmem:[%s11406_s1 + $0x148] sm:$0xff] }
  0x4a   :  { %6509 = vmatprep.mubr.msk.f32.mxu1 %vm44_vm0, %v326_v13  ;;  %v350_v61 = vld [vmem:[%s11406_s1 + $0x380] sm:$0xff]  ;;  %v351_v63 = vld [vmem:[%s11406_s1 + $0x388] sm:$0xff]  ;;  %v280_v0 = vld [vmem:[%s11406_s1 + $0x150] sm:$0xff] }
  0x4b   :  { %v352_v1 = vld [vmem:[%s11406_s1 + $0x390] sm:$0xff]  ;;  %v281_v2 = vld [vmem:[%s11406_s1 + $0x158] sm:$0xff]  ;;  %v282_v4 = vld [vmem:[%s11406_s1 + $0x160] sm:$0xff] }
  0x4c   :  { %6402 = vmatmul.mubr.msk.f32.gmra.mrb[32].mxu0 %vm44_vm0, %v255_v14  ;;  %v353_v3 = vld [vmem:[%s11406_s1 + $0x398] sm:$0xff]  ;;  %v354_v5 = vld [vmem:[%s11406_s1 + $0x3a0] sm:$0xff]  ;;  %v283_v6 = vld [vmem:[%s11406_s1 + $0x168] sm:$0xff] }
  0x4d   :  { %6510 = vmatmul.mubr.msk.f32.gmra.mrb[32].mxu1 %vm44_vm0, %v327_v15  ;;  %6404 = vmatprep.mubr.msk.f32.mxu0 %vm44_vm0, %v256_v16  ;;  %v355_v7 = vld [vmem:[%s11406_s1 + $0x3a8] sm:$0xff]  ;;  %v284_v8 = vld [vmem:[%s11406_s1 + $0x170] sm:$0xff]  ;;  %v285_v10 = vld [vmem:[%s11406_s1 + $0x178] sm:$0xff] }
  0x4e   :  { %6512 = vmatprep.mubr.msk.f32.mxu1 %vm44_vm0, %v328_v17  ;;  %v356_v9 = vld [vmem:[%s11406_s1 + $0x3b0] sm:$0xff]  ;;  %v357_v11 = vld [vmem:[%s11406_s1 + $0x3b8] sm:$0xff]  ;;  %v286_v12 = vld [vmem:[%s11406_s1 + $0x180] sm:$0xff] }
  0x4f   :  { %v358_v13 = vld [vmem:[%s11406_s1 + $0x3c0] sm:$0xff]  ;;  %v287_v14 = vld [vmem:[%s11406_s1 + $0x188] sm:$0xff]  ;;  %v288_v16 = vld [vmem:[%s11406_s1 + $0x190] sm:$0xff] }
  0x50   :  { %6405 = vmatmul.mubr.msk.f32.gmra.mrb[34].mxu0 %vm44_vm0, %v257_v18  ;;  %v359_v15 = vld [vmem:[%s11406_s1 + $0x3c8] sm:$0xff]  ;;  %v360_v17 = vld [vmem:[%s11406_s1 + $0x3d0] sm:$0xff]  ;;  %v289_v18 = vld [vmem:[%s11406_s1 + $0x198] sm:$0xff] }
  0x51   :  { %6513 = vmatmul.mubr.msk.f32.gmra.mrb[34].mxu1 %vm44_vm0, %v329_v19  ;;  %6407 = vmatprep.mubr.msk.f32.mxu0 %vm44_vm0, %v258_v20  ;;  %v361_v19 = vld [vmem:[%s11406_s1 + $0x3d8] sm:$0xff]  ;;  %v290_v20 = vld [vmem:[%s11406_s1 + $0x1a0] sm:$0xff] }
  0x52   :  { %6515 = vmatprep.mubr.msk.f32.mxu1 %vm44_vm0, %v330_v21  ;;  %v362_v21 = vld [vmem:[%s11406_s1 + $0x3e0] sm:$0xff] }
  0x54   :  { %6408 = vmatmul.mubr.msk.f32.gmra.mrb[36].mxu0 %vm44_vm0, %v259_v22  ;;  %v291_v22 = vld [vmem:[%s11406_s1 + $0x1a8] sm:$0xff] }
  0x55   :  { %6516 = vmatmul.mubr.msk.f32.gmra.mrb[36].mxu1 %vm44_vm0, %v331_v23  ;;  %6410 = vmatprep.mubr.msk.f32.mxu0 %vm44_vm0, %v260_v24  ;;  %v363_v23 = vld [vmem:[%s11406_s1 + $0x3e8] sm:$0xff]  ;;  %v292_v24 = vld [vmem:[%s11406_s1 + $0x1b0] sm:$0xff] }
  0x56   :  { %6518 = vmatprep.mubr.msk.f32.mxu1 %vm44_vm0, %v332_v25  ;;  %v364_v25 = vld [vmem:[%s11406_s1 + $0x3f0] sm:$0xff] }
  0x58   :  { %6411 = vmatmul.mubr.msk.f32.gmra.mrb[38].mxu0 %vm44_vm0, %v261_v26  ;;  %v293_v26 = vld [vmem:[%s11406_s1 + $0x1b8] sm:$0xff] }
  0x59   :  { %6519 = vmatmul.mubr.msk.f32.gmra.mrb[38].mxu1 %vm44_vm0, %v333_v27  ;;  %6413 = vmatprep.mubr.msk.f32.mxu0 %vm44_vm0, %v262_v28  ;;  %v365_v27 = vld [vmem:[%s11406_s1 + $0x3f8] sm:$0xff] }
  0x5a   :  { %6521 = vmatprep.mubr.msk.f32.mxu1 %vm44_vm0, %v334_v29 }
  0x5c   :  { %6414 = vmatmul.mubr.msk.f32.gmra.mrb[40].mxu0 %vm44_vm0, %v263_v30 }
  0x5d   :  { %6522 = vmatmul.mubr.msk.f32.gmra.mrb[40].mxu1 %vm44_vm0, %v335_v31  ;;  %6416 = vmatprep.mubr.msk.f32.mxu0 %vm44_vm0, %v264_v32  ;;  %v7135_v32 = vmov 1966171168  }
  0x5e   :  { %6524 = vmatprep.mubr.msk.f32.mxu1 %vm44_vm0, %v336_v33  ;;  %v1477_v33 = vunpack.c.l.s4 %v7135_v32 }
  0x60   :  { %6417 = vmatmul.mubr.msk.f32.gmra.mrb[42].mxu0 %vm44_vm0, %v265_v34  ;;  %v11412_v34 = vlaneseq }
  0x61   :  { %6525 = vmatmul.mubr.msk.f32.gmra.mrb[42].mxu1 %vm44_vm0, %v337_v35  ;;  %6419 = vmatprep.mubr.msk.f32.mxu0 %vm44_vm0, %v266_v36 }
  0x62   :  { %6527 = vmatprep.mubr.msk.f32.mxu1 %vm44_vm0, %v338_v37 }
  0x64   :  { %6420 = vmatmul.mubr.msk.f32.gmra.mrb[44].mxu0 %vm44_vm0, %v267_v38 }
  0x65   :  { %6528 = vmatmul.mubr.msk.f32.gmra.mrb[44].mxu1 %vm44_vm0, %v339_v39  ;;  %6422 = vmatprep.mubr.msk.f32.mxu0 %vm44_vm0, %v268_v40  ;;  %v1478_v39 = vunpack.c.0.s8 %v1477_v33  ;;  %v7781_v40 = vshrl.u32 %v11412_v34, 7 }
  0x66   :  { %6530 = vmatprep.mubr.msk.f32.mxu1 %vm44_vm0, %v340_v41 }
  0x67   :  { %11692 = vst [vmem:[#allocation5_spill] sm:$0xff] %v7781_v40 }
  0x68   :  { %6423 = vmatmul.mubr.msk.f32.gmra.mrb[46].mxu0 %vm44_vm0, %v269_v42 }
  0x69   :  { %6531 = vmatmul.mubr.msk.f32.gmra.mrb[46].mxu1 %vm44_vm0, %v341_v43  ;;  %6425 = vmatprep.mubr.msk.f32.mxu0 %vm44_vm0, %v270_v44 }
  0x6a   :  { %6533 = vmatprep.mubr.msk.f32.mxu1 %vm44_vm0, %v342_v45  ;;  %v7788_v45 = vsub.s32 %v1478_v39, %v7781_v40 }
  0x6c   :  { %6426 = vmatmul.mubr.msk.f32.gmra.mrb[48].mxu0 %vm44_vm0, %v271_v46 }
  0x6d   :  { %6534 = vmatmul.mubr.msk.f32.gmra.mrb[48].mxu1 %vm44_vm0, %v343_v47  ;;  %6428 = vmatprep.mubr.msk.f32.mxu0 %vm44_vm0, %v272_v48 }
  0x6e   :  { %6536 = vmatprep.mubr.msk.f32.mxu1 %vm44_vm0, %v344_v49 }
  0x70   :  { %6429 = vmatmul.mubr.msk.f32.gmra.mrb[50].mxu0 %vm44_vm0, %v273_v50 }
  0x71   :  { %6537 = vmatmul.mubr.msk.f32.gmra.mrb[50].mxu1 %vm44_vm0, %v345_v51  ;;  %6431 = vmatprep.mubr.msk.f32.mxu0 %vm44_vm0, %v274_v52 }
  0x72   :  { %6539 = vmatprep.mubr.msk.f32.mxu1 %vm44_vm0, %v346_v53 }
  0x74   :  { %6432 = vmatmul.mubr.msk.f32.gmra.mrb[52].mxu0 %vm44_vm0, %v275_v54 }
  0x75   :  { %6540 = vmatmul.mubr.msk.f32.gmra.mrb[52].mxu1 %vm44_vm0, %v347_v55  ;;  %6434 = vmatprep.mubr.msk.f32.mxu0 %vm44_vm0, %v276_v56  ;;  %v7796_v55 = vsub.s32 0, %v7781_v40 }
  0x76   :  { %6542 = vmatprep.mubr.msk.f32.mxu1 %vm44_vm0, %v348_v57 }
  0x78   :  { %6435 = vmatmul.mubr.msk.f32.gmra.mrb[54].mxu0 %vm44_vm0, %v277_v58 }
  0x79   :  { %6543 = vmatmul.mubr.msk.f32.gmra.mrb[54].mxu1 %vm44_vm0, %v349_v59  ;;  %6437 = vmatprep.mubr.msk.f32.mxu0 %vm44_vm0, %v278_v60 }
  0x7a   :  { %6545 = vmatprep.mubr.msk.f32.mxu1 %vm44_vm0, %v350_v61 }
  0x7c   :  { %6438 = vmatmul.mubr.msk.f32.gmra.mrb[56].mxu0 %vm44_vm0, %v279_v62 }
  0x7d   :  { %6546 = vmatmul.mubr.msk.f32.gmra.mrb[56].mxu1 %vm44_vm0, %v351_v63  ;;  %6440 = vmatprep.mubr.msk.f32.mxu0 %vm44_vm0, %v280_v0 }
  0x7e   :  { %6548 = vmatprep.mubr.msk.f32.mxu1 %vm44_vm0, %v352_v1 }
  0x80   :  { %6441 = vmatmul.mubr.msk.f32.gmra.mrb[58].mxu0 %vm44_vm0, %v281_v2 }
  0x81   :  { %6549 = vmatmul.mubr.msk.f32.gmra.mrb[58].mxu1 %vm44_vm0, %v353_v3  ;;  %6443 = vmatprep.mubr.msk.f32.mxu0 %vm44_vm0, %v282_v4 }
  0x82   :  { %6551 = vmatprep.mubr.msk.f32.mxu1 %vm44_vm0, %v354_v5 }
  0x84   :  { %6444 = vmatmul.mubr.msk.f32.gmra.mrb[60].mxu0 %vm44_vm0, %v283_v6 }
  0x85   :  { %6552 = vmatmul.mubr.msk.f32.gmra.mrb[60].mxu1 %vm44_vm0, %v355_v7  ;;  %6446 = vmatprep.mubr.msk.f32.mxu0 %vm44_vm0, %v284_v8 }
  0x86   :  { %6554 = vmatprep.mubr.msk.f32.mxu1 %vm44_vm0, %v356_v9 }
  0x88   :  { %6447 = vmatmul.mubr.msk.f32.gmra.mrb[62].mxu0 %vm44_vm0, %v285_v10 }
  0x89   :  { %6555 = vmatmul.mubr.msk.f32.gmra.mrb[62].mxu1 %vm44_vm0, %v357_v11  ;;  %6449 = vmatprep.mubr.msk.f32.mxu0 %vm44_vm0, %v286_v12 }
  0x8a   :  { %6557 = vmatprep.mubr.msk.f32.mxu1 %vm44_vm0, %v358_v13 }
  0x8c   :  { %6450 = vmatmul.mubr.msk.f32.gmra.mrb[64].mxu0 %vm44_vm0, %v287_v14 }
  0x8d   :  { %6558 = vmatmul.mubr.msk.f32.gmra.mrb[64].mxu1 %vm44_vm0, %v359_v15  ;;  %6452 = vmatprep.mubr.msk.f32.mxu0 %vm44_vm0, %v288_v16 }
  0x8e   :  { %6560 = vmatprep.mubr.msk.f32.mxu1 %vm44_vm0, %v360_v17 }
  0x90   :  { %6453 = vmatmul.mubr.msk.f32.gmra.mrb[66].mxu0 %vm44_vm0, %v289_v18 }
  0x91   :  { %6561 = vmatmul.mubr.msk.f32.gmra.mrb[66].mxu1 %vm44_vm0, %v361_v19  ;;  %6455 = vmatprep.mubr.msk.f32.mxu0 %vm44_vm0, %v290_v20 }
  0x92   :  { %6563 = vmatprep.mubr.msk.f32.mxu1 %vm44_vm0, %v362_v21 }
  0x94   :  { %6456 = vmatmul.mubr.msk.f32.gmra.mrb[68].mxu0 %vm44_vm0, %v291_v22 }
  0x95   :  { %6564 = vmatmul.mubr.msk.f32.gmra.mrb[68].mxu1 %vm44_vm0, %v363_v23  ;;  %6458 = vmatprep.mubr.msk.f32.mxu0 %vm44_vm0, %v292_v24 }
  0x96   :  { %6566 = vmatprep.mubr.msk.f32.mxu1 %vm44_vm0, %v364_v25 }
  0x98   :  { %6459 = vmatmul.mubr.msk.f32.gmra.mrb[70].mxu0 %vm44_vm0, %v293_v26 }
  0x99   :  { %6567 = vmatmul.mubr.msk.f32.gmra.mrb[70].mxu1 %vm44_vm0, %v365_v27 }
  0xdf   :  { %v7772_v28 = vpop.f32.mrb[0].mxu0 }
  0xe0   :  { %v7774_v29 = vpop.f32.mrb[1].mxu0  ;;  %v6463_v30 = vpop.f32.mrb[0].mxu1 }
  0xe1   :  { %v1100_v31 = vpop.f32.mrb[1].mxu1 }
  0xe3   :  { %v7776_v35 = vpop.f32.mrb[2].mxu0 }
  0xe4   :  { %v7778_v36 = vpop.f32.mrb[3].mxu0  ;;  %v6466_v37 = vpop.f32.mrb[2].mxu1 }
  0xe5   :  { %v1110_v38 = vpop.f32.mrb[3].mxu1 }
  0xe7   :  { %v7783_v41 = vpop.f32.mrb[4].mxu0 }
  0xe8   :  { %11693 = vst [vmem:[#allocation6_spill] sm:$0xff] %v7783_v41  ;;  %v7785_v42 = vpop.f32.mrb[5].mxu0  ;;  %v6469_v43 = vpop.f32.mrb[4].mxu1 }
  0xe9   :  { %11694 = vst [vmem:[#allocation7_spill] sm:$0xff] %v7785_v42  ;;  %v1120_v44 = vpop.f32.mrb[5].mxu1 }
  0xeb   :  { %v6356_v46 = vpop.f32.mrb[6].mxu0 }
  0xec   :  { %v1818_v47 = vcombine.high %v6356_v46, %v6356_v46  ;;  %v1825_v48 = vrot.slane %v6356_v46, %v7788_v45  ;;  %v7791_v49 = vpop.f32.mrb[7].mxu0  ;;  %v6472_v50 = vpop.f32.mrb[6].mxu1 }
  0xed   :  { %11695 = vst [vmem:[#allocation8_spill] sm:$0xff] %v7791_v49  ;;  %v1130_v51 = vpop.f32.mrb[7].mxu1 }
  0xee   :  { %v1832_v52 = vrot.slane %v1818_v47, %v7788_v45  ;;  %v1833_v53 = vcombine.high %v1825_v48, %v1825_v48  ;;  %v1841_v54 = vrot.slane %v1825_v48, %v7788_v45 }
  0xef   :  { %v7798_v56 = vpop.f32.mrb[8].mxu0 }
  0xf0   :  { %v1834_v57 = vcombine.high %v1832_v52, %v1832_v52  ;;  %v1855_v58 = vrot.slane %v1833_v53, %v7788_v45  ;;  %v2486_v59 = vrot.slane %v1841_v54, %v7796_v55  ;;  %v1863_v60 = vcombine.high %v1841_v54, %v1841_v54  ;;  %v199_v61 = vpop.f32.mrb[9].mxu0  ;;  %v6475_v62 = vpop.f32.mrb[8].mxu1 }
  0xf1   :  { %v1140_v63 = vpop.f32.mrb[9].mxu1  ;;  %v1867_v12 = vcombine.high %v199_v61, %v199_v61  ;;  %v1874_v13 = vrot.slane %v199_v61, %v7788_v45  ;;  %v1848_v23 = vrot.slane %v1832_v52, %v7788_v45 }
  0xf2   :  { %v2490_v0 = vrot.slane %v1855_v58, %v7796_v55  ;;  %v7803_v1 = vadd.f32 %v2486_v59, %v1100_v31  ;;  %v1865_v2 = vcombine.high %v1855_v58, %v1855_v58  ;;  %v2494_v3 = vrot.slane %v1863_v60, %v7796_v55 }
  0xf3   :  { %v1862_v4 = vrot.slane %v1834_v57, %v7788_v45  ;;  %v7807_v5 = vpop.f32.mrb[10].mxu0  ;;  %v1882_v17 = vcombine.high %v1874_v13, %v1874_v13  ;;  %v1890_v19 = vrot.slane %v1874_v13, %v7788_v45  ;;  %v1881_v22 = vrot.slane %v1867_v12, %v7788_v45 }
  0xf4   :  { %11696 = vst [vmem:[#allocation9_spill] sm:$0xff] %v7807_v5  ;;  %v7809_v6 = vadd.f32 %v6463_v30, %v2490_v0  ;;  %v2498_v7 = vrot.slane %v1865_v2, %v7796_v55  ;;  %v7812_v8 = vadd.f32 %v2494_v3, %v1110_v38  ;;  %v6478_v9 = vpop.f32.mrb[10].mxu1  ;;  %v7814_v10 = vpop.f32.mrb[11].mxu0  ;;  %v2502_v27 = vrot.slane %v1848_v23, %v7796_v55 }
  0xf5   :  { %v2506_v11 = vrot.slane %v1862_v4, %v7796_v55  ;;  %v1150_v14 = vpop.f32.mrb[11].mxu1  ;;  %v1866_v24 = vcombine.high %v1862_v4, %v1862_v4  ;;  %v1904_v25 = vrot.slane %v1882_v17, %v7788_v45  ;;  %v1864_v31 = vcombine.high %v1848_v23, %v1848_v23  ;;  %v7880_v17 = vld [vmem:[%s11409_s4] ss:$0 sm:$0xff] }
  0xf6   :  { %v7818_v15 = vadd.f32 %v6466_v37, %v2498_v7  ;;  %v2518_v37 = vrot.slane %v1890_v19, %v7796_v55  ;;  %v7840_v46 = vadd.f32 %v2502_v27, %v1120_v44  ;;  %v1482_v59 = vrot.slane %v7774_v29, %v7788_v45 }
  0xf7   :  { %v7820_v16 = vadd.f32 %v6469_v43, %v2506_v11  ;;  %v7822_v18 = vpop.f32.mrb[12].mxu0  ;;  %v2514_v30 = vrot.slane %v1866_v24, %v7796_v55  ;;  %v2522_v33 = vrot.slane %v1904_v25, %v7796_v55  ;;  %v1883_v43 = vcombine.high %v1881_v22, %v1881_v22 }
  0xf8   :  { %11697 = vst [vmem:[#allocation10_spill] sm:$0xff] %v7822_v18  ;;  %v6481_v20 = vpop.f32.mrb[12].mxu1  ;;  %v7825_v21 = vpop.f32.mrb[13].mxu0  ;;  %v2510_v52 = vrot.slane %v1864_v31, %v7796_v55  ;;  %v7849_v54 = vadd.f32 %v2518_v37, %v1140_v63  ;;  %v1914_v57 = vcombine.high %v1904_v25, %v1904_v25  ;;  %v1912_v44 = vcombine.high %v1890_v19, %v1890_v19 }
  0xf9   :  { %11698 = vst [vmem:[#allocation11_spill] sm:$0xff] %v7825_v21  ;;  %v1160_v26 = vpop.f32.mrb[13].mxu1  ;;  %v7842_v47 = vadd.f32 %v6472_v50, %v2514_v30  ;;  %v7847_v53 = vadd.f32 %v6475_v62, %v2522_v33  ;;  %v1911_v62 = vrot.slane %v1883_v43, %v7788_v45  ;;  %v1524_v63 = vcombine.high %v7772_v28, %v7772_v28 }
  0xfa   :  { %v7855_v60 = vadd.f32 %v2510_v52, %v1130_v51  ;;  %v2530_v0 = vrot.slane %v1914_v57, %v7796_v55  ;;  %v2526_v3 = vrot.slane %v1912_v44, %v7796_v55  ;;  %v1531_v51 = vrot.slane %v7772_v28, %v7788_v45 }
  0xfb   :  { %v7832_v32 = vpop.f32.mrb[14].mxu0  ;;  %v1475_v4 = vcombine.high %v7774_v29, %v7774_v29  ;;  %v2538_v11 = vrot.slane %v1911_v62, %v7796_v55  ;;  %v1490_v13 = vcombine.high %v1482_v59, %v1482_v59  ;;  %v1897_v29 = vrot.slane %v1881_v22, %v7788_v45 }
  0xfc   :  { %11699 = vst [vmem:[#allocation12_spill] sm:$0xff] %v7832_v32  ;;  %v7836_v38 = vpop.f32.mrb[14].mxu1  ;;  %v7838_v39 = vpop.f32.mrb[15].mxu0  ;;  %v7872_v7 = vadd.f32 %v6478_v9, %v2530_v0  ;;  %v7882_v19 = vadd.f32 %v2526_v3, %v1150_v14  ;;  %v7894_v25 = vrot.slane %v1524_v63, %v7788_v45  ;;  %v1539_v27 = vcombine.high %v1531_v51, %v1531_v51 }
  0xfd   :  { %11700 = vst [vmem:[#allocation13_spill] sm:$0xff] %v7838_v39  ;;  %v7844_v48 = vpop.f32.mrb[15].mxu1  ;;  %v7886_v28 = vadd.f32 %v6481_v20, %v2538_v11  ;;  %v7897_v30 = vrot.slane %v1475_v4, %v7788_v45  ;;  %v7901_v14 = vadd.f32 %v7880_v17, %v7803_v1  ;;  %v2534_v20 = vrot.slane %v1897_v29, %v7796_v55 }
  0xfe   :  { %v7908_v22 = vadd.f32 %v7880_v17, %v7809_v6  ;;  %v7911_v33 = vrot.slane %v1490_v13, %v7788_v45  ;;  %v7918_v52 = vrot.slane %v1482_v59, %v7788_v45  ;;  %v1622_v1 = vcombine.high %v7776_v35, %v7776_v35 }
  0xff   :  { %v7851_v58 = vpop.f32.mrb[16].mxu0  ;;  %11701 = vst [vmem:[#allocation14_spill] sm:$0xff] %v7901_v14  ;;  %v7922_v57 = vadd.f32 %v2534_v20, %v1160_v26  ;;  %v7929_v0 = vrot.slane %v1531_v51, %v7788_v45  ;;  %v7933_v63 = vrot.slane %v7776_v35, %v7788_v45  ;;  %v7937_v59 = vadd.f32 %v7880_v17, %v7812_v8 }
 0x100   :  { %v7857_v61 = vpop.f32.mrb[16].mxu1  ;;  %v7859_v50 = vpop.f32.mrb[17].mxu0  ;;  %11702 = vst [vmem:[#allocation15_spill] sm:$0xff] %v7908_v22  ;;  %v1491_v26 = vcombine.high %v7897_v30, %v7897_v30  ;;  %v3218_v4 = vmin.f32 %v7901_v14, 20.0  ;;  %v7947_v51 = vrot.slane %v1539_v27, %v7788_v45  ;;  %v7951_v35 = vrot.slane %v7778_v36, %v7788_v45 }
 0x101   :  { %v7863_v2 = vpop.f32.mrb[17].mxu1  ;;  %11703 = vst [vmem:[#allocation16_spill] sm:$0xff] %v7933_v63  ;;  %11704 = vst [vmem:[#allocation17_spill] sm:$0xff] %v7937_v59  ;;  %v3219_v8 = vmin.f32 %v7908_v22, 20.0  ;;  %v7956_v13 = vadd.f32 %v7880_v17, %v7818_v15  ;;  %v1522_v20 = vcombine.high %v7911_v33, %v7911_v33  ;;  %v7965_v27 = vrot.slane %v1622_v1, %v7788_v45 }
 0x102   :  { %v1923_v3 = vrot.slane %v7798_v56, %v7788_v45  ;;  %v1915_v40 = vcombine.high %v1911_v62, %v1911_v62  ;;  %v1520_v32 = vcombine.high %v7918_v52, %v7918_v52  ;;  %v7977_v39 = vrot.slane %v7933_v63, %v7788_v45 }
 0x103   :  { %v7875_v12 = vpop.f32.mrb[18].mxu0  ;;  %11705 = vst [vmem:[#allocation18_spill] sm:$0xff] %v7956_v13  ;;  %11706 = vst [vmem:[#allocation19_spill] sm:$0xff] %v7965_v27  ;;  %v3220_v18 = vmin.f32 %v7937_v59, 20.0  ;;  %v2262_v1 = vrot.slane %v7918_v52, %v7796_v55  ;;  %v3402_v21 = vmul.f32 1.442695, %v3218_v4  ;;  %v7984_v62 = vadd.f32 %v7880_v17, %v7820_v16 }
 0x104   :  { %v7884_v23 = vpop.f32.mrb[18].mxu1  ;;  %v7889_v9 = vpop.f32.mrb[19].mxu0  ;;  %11707 = vst [vmem:[#allocation20_spill] sm:$0xff] %v7977_v39  ;;  %v2546_v22 = vrot.slane %v1915_v40, %v7796_v55  ;;  %v2266_v42 = vrot.slane %v7911_v33, %v7796_v55  ;;  %v3404_v14 = vmul.f32 1.442695, %v3219_v8  ;;  %v3221_v39 = vmin.f32 %v7956_v13, 20.0 }
 0x105   :  { %v7891_v24 = vpop.f32.mrb[19].mxu1  ;;  %11708 = vst [vmem:[#allocation21_spill] sm:$0xff] %v7984_v62  ;;  %v1913_v63 = vcombine.high %v1897_v29, %v1897_v29  ;;  %v2274_v59 = vrot.slane %v1522_v20, %v7796_v55  ;;  %v1931_v4 = vcombine.high %v1923_v3, %v1923_v3  ;;  %v7999_v16 = vadd.f32 %v7880_v17, %v7840_v46 }
 0x106   :  { %v8002_v40 = vadd.f32 %v7836_v38, %v2546_v22  ;;  %v2270_v33 = vrot.slane %v1520_v32, %v7796_v55  ;;  %v3406_v13 = vmul.f32 1.442695, %v3220_v18  ;;  %v1916_v29 = vcombine.high %v7798_v56, %v7798_v56 }
 0x107   :  { %v7904_v31 = vpop.f32.mrb[20].mxu0  ;;  %11709 = vst [vmem:[#allocation22_spill] sm:$0xff] %v7999_v16  ;;  %v8011_v20 = vadd.f32 %v7880_v17, %v7842_v47  ;;  %v2542_v5 = vrot.slane %v1913_v63, %v7796_v55  ;;  %6591 = vpow2.f32 %v3402_v21  ;;  %v8015_v46 = vrot.slane %v1923_v3, %v7788_v45 }
 0x108   :  { %v7913_v37 = vpop.f32.mrb[20].mxu1  ;;  %v7915_v43 = vpop.f32.mrb[21].mxu0  ;;  %v3223_v38 = vmin.f32 %v7984_v62, 20.0  ;;  %v8020_v32 = vadd.f32 %v7880_v17, %v7847_v53  ;;  %6593 = vpow2.f32 %v3404_v14  ;;  %v3408_v56 = vmul.f32 1.442695, %v3221_v39 }
 0x109   :  { %v7924_v44 = vpop.f32.mrb[21].mxu1  ;;  %11710 = vst [vmem:[#allocation23_spill] sm:$0xff] %v8011_v20  ;;  %v8026_v47 = vadd.f32 %v7880_v17, %v7855_v60  ;;  %v8029_v22 = vadd.f32 %v2542_v5, %v7844_v48  ;;  %v3222_v3 = vmin.f32 %v7999_v16, 20.0  ;;  %v8038_v53 = vadd.f32 %v7880_v17, %v7849_v54 }
 0x10a   :  { %11711 = vst [vmem:[#allocation24_spill] sm:$0xff] %v8020_v32  ;;  %v8041_v14 = vadd.f32 %v7851_v58, %v2266_v42  ;;  %v1953_v39 = vrot.slane %v1931_v4, %v7788_v45  ;;  %6595 = vpow2.f32 %v3406_v13  ;;  %v8047_v5 = vrot.slane %v1916_v29, %v7788_v45 }
 0x10b   :  { %v7944_v11 = vpop.f32.mrb[22].mxu0  ;;  %11712 = vst [vmem:[#allocation25_spill] sm:$0xff] %v8026_v47  ;;  %11713 = vst [vmem:[#allocation26_spill] sm:$0xff] %v8038_v53  ;;  %v3225_v48 = vmin.f32 %v8011_v20, 20.0  ;;  %v8051_v62 = vrot.slane %v1491_v26, %v7788_v45  ;;  %v3227_v16 = vmin.f32 %v8020_v32, 20.0  ;;  %v8056_v54 = vadd.f32 %v7880_v17, %v7872_v7 }
 0x10c   :  { %v7960_v34 = vpop.f32.mrb[22].mxu1  ;;  %v7962_v6 = vpop.f32.mrb[23].mxu0  ;;  %v2554_v42 = vrot.slane %v1953_v39, %v7796_v55  ;;  %v8060_v58 = vadd.f32 %v2262_v1, %v7859_v50  ;;  %v3412_v4 = vmul.f32 1.442695, %v3223_v38  ;;  %v3224_v29 = vmin.f32 %v8026_v47, 20.0 }
 0x10d   :  { %v7971_v49 = vpop.f32.mrb[23].mxu1  ;;  %11715 = vst [vmem:[#allocation28_spill] sm:$0xff] %v8056_v54  ;;  %v2550_v26 = vrot.slane %v8015_v46, %v7796_v55  ;;  %v8068_v20 = vadd.f32 %v7875_v12, %v2274_v59  ;;  %6597 = vpow2.f32 %v3408_v56  ;;  %v3226_v50 = vmin.f32 %v8038_v53, 20.0 }
 0x10e   :  { %v8076_v1 = vadd.f32 %v7857_v61, %v2554_v42  ;;  %v3416_v47 = vmul.f32 1.442695, %v3225_v48  ;;  %v1963_v59 = vcombine.high %v1953_v39, %v1953_v39  ;;  %v3229_v56 = vmin.f32 %v8056_v54, 20.0 }
 0x10f   :  { %v7989_v15 = vpop.f32.mrb[24].mxu0  ;;  %v8085_v12 = vadd.f32 %v2550_v26, %v7863_v2  ;;  %v8093_v61 = vadd.f32 %v2270_v33, %v7889_v9  ;;  %6599 = vpow2.f32 %v3412_v4  ;;  %v3414_v48 = vmul.f32 1.442695, %v3224_v29 }
 0x110   :  { %v7993_v41 = vpop.f32.mrb[24].mxu1  ;;  %v7995_v52 = vpop.f32.mrb[25].mxu0  ;;  %v8100_v2 = vrot.slane %v7897_v30, %v7788_v45  ;;  %v3418_v9 = vmul.f32 1.442695, %v3226_v50  ;;  %v2282_v33 = vrot.slane %v8051_v62, %v7796_v55  ;;  %v1961_v54 = vcombine.high %v8015_v46, %v8015_v46 }
 0x111   :  { %v8005_v8 = vpop.f32.mrb[25].mxu1  ;;  %v8106_v26 = vpop.eup %6591  ;;  %v3424_v53 = vmul.f32 1.442695, %v3229_v56 }
 0x112   :  { %v8114_v29 = vpop.eup %6593  ;;  %v8124_v50 = vadd.f32 %v7904_v31, %v2282_v33  ;;  %v2278_v46 = vrot.slane %v8100_v2, %v7796_v55  ;;  %v11723_v31 = vcombine.high %v7778_v36, %v7778_v36 }
 0x113   :  { %v8022_v18 = vpop.f32.mrb[26].mxu0 }
 0x114   :  { %v8031_v21 = vpop.f32.mrb[26].mxu1  ;;  %v8033_v63 = vpop.f32.mrb[27].mxu0  ;;  %v8162_v36 = vadd.f32 %v2278_v46, %v7915_v43  ;;  %v1972_v43 = vrot.slane %v7814_v10, %v7788_v45 }
 0x115   :  { %v8044_v60 = vpop.f32.mrb[27].mxu1 }
 0x116   :  { %11714 = vst [vmem:[#allocation27_spill] sm:$0xff] %v8044_v60  ;;  %v3410_v60 = vmul.f32 1.442695, %v3222_v3  ;;  %v8090_v3 = vadd.f32 %v7880_v17, %v7886_v28  ;;  %v1932_v28 = vcombine.high %v8047_v5, %v8047_v5 }
 0x117   :  { %v8062_v13 = vpop.f32.mrb[28].mxu0 }
 0x118   :  { %11716 = vst [vmem:[#allocation29_spill] sm:$0xff] %v8062_v13  ;;  %v8070_v32 = vpop.f32.mrb[28].mxu1  ;;  %v8072_v7 = vpop.f32.mrb[29].mxu0  ;;  %v8082_v13 = vadd.f32 %v7880_v17, %v7882_v19  ;;  %11719 = vst [vmem:[#allocation32_spill] sm:$0xff] %v8090_v3  ;;  %v2562_v19 = vrot.slane %v1963_v59, %v7796_v55  ;;  %6601 = vpow2.f32 %v3410_v60  ;;  %v3231_v60 = vmin.f32 %v8090_v3, 20.0 }
 0x119   :  { %11717 = vst [vmem:[#allocation30_spill] sm:$0xff] %v8070_v32  ;;  %v8078_v38 = vpop.f32.mrb[29].mxu1  ;;  %v3420_v32 = vmul.f32 1.442695, %v3227_v16  ;;  %6603 = vpow2.f32 %v3416_v47  ;;  %v8132_v47 = vadd.f32 %v7880_v17, %v7922_v57  ;;  %v8149_v57 = vadd.f32 %v7880_v17, %v8002_v40 }
 0x11a   :  { %11718 = vst [vmem:[#allocation31_spill] sm:$0xff] %v8082_v13  ;;  %v3228_v30 = vmin.f32 %v8082_v13, 20.0  ;;  %v8118_v59 = vadd.f32 %v7884_v23, %v2562_v19  ;;  %v2558_v23 = vrot.slane %v1961_v54, %v7796_v55  ;;  %v8145_v19 = vrot.slane %v11723_v31, %v7788_v45 }
 0x11b   :  { %v8095_v42 = vpop.f32.mrb[30].mxu0  ;;  %6605 = vpow2.f32 %v3420_v32  ;;  %11722 = vst [vmem:[#allocation35_spill] sm:$0xff] %v8132_v47  ;;  %11724 = vst [vmem:[#allocation36_spill] sm:$0xff] %v8149_v57  ;;  %v1960_v54 = vrot.slane %v1932_v28, %v7788_v45  ;;  %v8156_v3 = vadd.f32 %v7880_v17, %v8029_v22  ;;  %v3428_v40 = vmul.f32 1.442695, %v3231_v60 }
 0x11c   :  { %v8102_v16 = vpop.f32.mrb[30].mxu1  ;;  %v8104_v39 = vpop.f32.mrb[31].mxu0  ;;  %6607 = vpow2.f32 %v3414_v48  ;;  %v3422_v33 = vmul.f32 1.442695, %v3228_v30  ;;  %v8159_v13 = vadd.f32 %v2558_v23, %v7891_v24  ;;  %v1946_v28 = vrot.slane %v8047_v5, %v7788_v45 }
 0x11d   :  { %11720 = vst [vmem:[#allocation33_spill] sm:$0xff] %v8104_v39  ;;  %v8112_v4 = vpop.f32.mrb[31].mxu1  ;;  %6609 = vpow2.f32 %v3418_v9  ;;  %11726 = vst [vmem:[#allocation38_spill] sm:$0xff] %v8156_v3  ;;  %v2570_v31 = vrot.slane %v1960_v54, %v7796_v55  ;;  %v3230_v22 = vmin.f32 %v8132_v47, 20.0  ;;  %v1965_v24 = vcombine.high %v7814_v10, %v7814_v10 }
 0x11e   :  { %11721 = vst [vmem:[#allocation34_spill] sm:$0xff] %v8112_v4  ;;  %v8128_v4 = vpop.eup %6595  ;;  %6611 = vpow2.f32 %v3424_v53  ;;  %v1523_v23 = vcombine.high %v8051_v62, %v8051_v62  ;;  %v3233_v46 = vmin.f32 %v8149_v57, 20.0  ;;  %v2566_v47 = vrot.slane %v1946_v28, %v7796_v55 }
 0x11f   :  { %v8126_v39 = vpop.f32.mrb[32].mxu0  ;;  %v8164_v9 = vpop.eup %6597  ;;  %v8184_v5 = vadd.f32 %v7913_v37, %v2570_v31  ;;  %6613 = vpow2.f32 %v3422_v33  ;;  %v3232_v10 = vmin.f32 %v8156_v3, 20.0  ;;  %v8194_v62 = vadd.f32 %v7880_v17, %v8041_v14  ;;  %v11773_v27 = vld [vmem:[#allocation29_spill] sm:$0xff] }
 0x120   :  { %v8137_v32 = vpop.f32.mrb[32].mxu1  ;;  %v8139_v56 = vpop.f32.mrb[33].mxu0  ;;  %11727 = vst [vmem:[#allocation39_spill] sm:$0xff] %v8164_v9  ;;  %v8201_v37 = vadd.f32 %v7880_v17, %v8060_v58  ;;  %v8208_v33 = vadd.f32 %v2566_v47, %v7924_v44  ;;  %6615 = vpow2.f32 %v3428_v40  ;;  %v1521_v58 = vcombine.high %v8100_v2, %v8100_v2 }
 0x121   :  { %v8152_v48 = vpop.f32.mrb[33].mxu1  ;;  %11733 = vst [vmem:[#allocation45_spill] sm:$0xff] %v8194_v62  ;;  %v3426_v47 = vmul.f32 1.442695, %v3230_v22  ;;  %v8241_v22 = vadd.f32 %v7880_v17, %v8076_v1 }
 0x122   :  { %11725 = vst [vmem:[#allocation37_spill] sm:$0xff] %v8152_v48  ;;  %v8189_v48 = vpop.eup %6599  ;;  %11734 = vst [vmem:[#allocation46_spill] sm:$0xff] %v8201_v37  ;;  %v2286_v2 = vrot.slane %v1521_v58, %v7796_v55 }
 0x123   :  { %v8169_v30 = vpop.f32.mrb[34].mxu0  ;;  %11732 = vst [vmem:[#allocation44_spill] sm:$0xff] %v8189_v48  ;;  %v8197_v57 = vpop.eup %6601  ;;  %11741 = vst [vmem:[#allocation53_spill] sm:$0xff] %v8241_v22  ;;  %6617 = vpow2.f32 %v3426_v47 }
 0x124   :  { %11728 = vst [vmem:[#allocation40_spill] sm:$0xff] %v8169_v30  ;;  %v8178_v53 = vpop.f32.mrb[34].mxu1  ;;  %v8180_v60 = vpop.f32.mrb[35].mxu0  ;;  %v1964_v30 = vcombine.high %v1960_v54, %v1960_v54  ;;  %v8205_v54 = vadd.f32 %v7880_v17, %v8068_v20  ;;  %v8256_v58 = vadd.f32 %v2286_v2, %v7962_v6 }
 0x125   :  { %11729 = vst [vmem:[#allocation41_spill] sm:$0xff] %v8178_v53  ;;  %11730 = vst [vmem:[#allocation42_spill] sm:$0xff] %v8180_v60  ;;  %v8187_v9 = vpop.f32.mrb[35].mxu1  ;;  %v2290_v60 = vrot.slane %v1523_v23, %v7796_v55  ;;  %v8213_v14 = vpop.eup %6603  ;;  %v1980_v23 = vcombine.high %v1972_v43, %v1972_v43 }
 0x126   :  { %11731 = vst [vmem:[#allocation43_spill] sm:$0xff] %v8187_v9  ;;  %11735 = vst [vmem:[#allocation47_spill] sm:$0xff] %v8205_v54  ;;  %v2578_v31 = vrot.slane %v1964_v30, %v7796_v55  ;;  %v8224_v44 = vpop.eup %6605  ;;  %v3432_v30 = vmul.f32 1.442695, %v3233_v46  ;;  %v3165_v46 = vmin.f32 %v8205_v54, 20.0 }
 0x127   :  { %v8211_v3 = vpop.f32.mrb[36].mxu0  ;;  %11737 = vst [vmem:[#allocation49_spill] sm:$0xff] %v8213_v14  ;;  %v8216_v9 = vadd.f32 %v7944_v11, %v2290_v60  ;;  %11740 = vst [vmem:[#allocation52_spill] sm:$0xff] %v8224_v44  ;;  %v1962_v14 = vcombine.high %v1946_v28, %v1946_v28  ;;  %v8231_v53 = vpop.eup %6607  ;;  %v3430_v11 = vmul.f32 1.442695, %v3232_v10  ;;  %v3163_v60 = vmin.f32 %v8194_v62, 20.0 }
 0x128   :  { %11736 = vst [vmem:[#allocation48_spill] sm:$0xff] %v8211_v3  ;;  %v8220_v48 = vpop.f32.mrb[36].mxu1  ;;  %v8222_v20 = vpop.f32.mrb[37].mxu0  ;;  %v8227_v3 = vadd.f32 %v7960_v34, %v2578_v31  ;;  %v3162_v34 = vmin.f32 %v8201_v37, 20.0  ;;  %v8246_v28 = vadd.f32 %v7880_v17, %v8085_v12  ;;  %v8253_v31 = vadd.f32 %v7880_v17, %v8093_v61 }
 0x129   :  { %11738 = vst [vmem:[#allocation50_spill] sm:$0xff] %v8220_v48  ;;  %11739 = vst [vmem:[#allocation51_spill] sm:$0xff] %v8222_v20  ;;  %v8229_v40 = vpop.f32.mrb[37].mxu1  ;;  %v2298_v20 = vrot.slane %v7947_v51, %v7796_v55  ;;  %v8237_v48 = vpop.eup %6609  ;;  %v2574_v1 = vrot.slane %v1962_v14, %v7796_v55  ;;  %v8271_v61 = vrot.slane %v1972_v43, %v7788_v45  ;;  %6619 = vpow2.f32 %v3432_v30 }
 0x12a   :  { %11742 = vst [vmem:[#allocation54_spill] sm:$0xff] %v8246_v28  ;;  %11743 = vst [vmem:[#allocation55_spill] sm:$0xff] %v8253_v31  ;;  %v8266_v44 = vpop.eup %6611  ;;  %v2002_v6 = vrot.slane %v1980_v23, %v7788_v45  ;;  %v3292_v14 = vmul.f32 1.442695, %v3163_v60  ;;  %v2294_v43 = vrot.slane %v7929_v0, %v7796_v55  ;;  %6621 = vpow2.f32 %v3430_v11 }
 0x12b   :  { %v8249_v10 = vpop.f32.mrb[38].mxu0  ;;  %v8260_v62 = vadd.f32 %v7989_v15, %v2298_v20  ;;  %11745 = vst [vmem:[#allocation57_spill] sm:$0xff] %v8266_v44  ;;  %v8277_v15 = vrot.slane %v1965_v24, %v7788_v45  ;;  %v8280_v20 = vadd.f32 %v2574_v1, %v7971_v49  ;;  %v3235_v44 = vmin.f32 %v8241_v22, 20.0  ;;  %v8288_v23 = vpop.eup %6613 }
 0x12c   :  { %v8262_v37 = vpop.f32.mrb[38].mxu1  ;;  %v8264_v12 = vpop.f32.mrb[39].mxu0  ;;  %v2586_v47 = vrot.slane %v2002_v6, %v7796_v55  ;;  %v3234_v24 = vmin.f32 %v8246_v28, 20.0  ;;  %v3296_v30 = vmul.f32 1.442695, %v3165_v46  ;;  %v3164_v60 = vmin.f32 %v8253_v31, 20.0 }
 0x12d   :  { %11744 = vst [vmem:[#allocation56_spill] sm:$0xff] %v8264_v12  ;;  %v8274_v2 = vpop.f32.mrb[39].mxu1  ;;  %v3290_v12 = vmul.f32 1.442695, %v3162_v34  ;;  %v8298_v34 = vadd.f32 %v7880_v17, %v8118_v59  ;;  %v2582_v11 = vrot.slane %v8271_v61, %v7796_v55  ;;  %v8310_v31 = vpop.eup %6615  ;;  %v8314_v28 = vrot.slane %v7951_v35, %v7788_v45 }
 0x12e   :  { %11746 = vst [vmem:[#allocation58_spill] sm:$0xff] %v8274_v2  ;;  %v8301_v22 = vadd.f32 %v7993_v41, %v2586_v47  ;;  %11752 = vst [vmem:[#allocation64_spill] sm:$0xff] %v8310_v31  ;;  %v1981_v59 = vcombine.high %v8277_v15, %v8277_v15  ;;  %6623 = vpow2.f32 %v3292_v14  ;;  %v1571_v41 = vcombine.high %v7947_v51, %v7947_v51 }
 0x12f   :  { %v8286_v54 = vpop.f32.mrb[40].mxu0  ;;  %11750 = vst [vmem:[#allocation62_spill] sm:$0xff] %v8298_v34  ;;  %v8322_v47 = vadd.f32 %v7880_v17, %v8124_v50  ;;  %v2012_v31 = vcombine.high %v2002_v6, %v2002_v6  ;;  %6625 = vpow2.f32 %v3290_v12  ;;  %v1569_v14 = vcombine.high %v7929_v0, %v7929_v0 }
 0x130   :  { %11747 = vst [vmem:[#allocation59_spill] sm:$0xff] %v8286_v54  ;;  %v8292_v49 = vpop.f32.mrb[40].mxu1  ;;  %v8294_v1 = vpop.f32.mrb[41].mxu0  ;;  %v8304_v54 = vadd.f32 %v2294_v43, %v7995_v52  ;;  %v3436_v52 = vmul.f32 1.442695, %v3235_v44  ;;  %v8325_v43 = vadd.f32 %v2582_v11, %v8005_v8  ;;  %6627 = vpow2.f32 %v3296_v30 }
 0x131   :  { %11748 = vst [vmem:[#allocation60_spill] sm:$0xff] %v8292_v49  ;;  %11749 = vst [vmem:[#allocation61_spill] sm:$0xff] %v8294_v1  ;;  %v8308_v46 = vpop.f32.mrb[41].mxu1  ;;  %v3434_v1 = vmul.f32 1.442695, %v3234_v24  ;;  %v2306_v49 = vrot.slane %v1571_v41, %v7796_v55  ;;  %v3237_v50 = vmin.f32 %v8298_v34, 20.0  ;;  %v8339_v8 = vadd.f32 %v7880_v17, %v8159_v13  ;;  %v8352_v11 = vpop.eup %6617 }
 0x132   :  { %11751 = vst [vmem:[#allocation63_spill] sm:$0xff] %v8308_v46  ;;  %11753 = vst [vmem:[#allocation65_spill] sm:$0xff] %v8322_v47  ;;  %v3294_v44 = vmul.f32 1.442695, %v3164_v60  ;;  %v8345_v12 = vadd.f32 %v7880_v17, %v8162_v36  ;;  %v2594_v24 = vrot.slane %v2012_v31, %v7796_v55  ;;  %v2302_v30 = vrot.slane %v1569_v14, %v7796_v55 }
 0x133   :  { %v8327_v46 = vpop.f32.mrb[42].mxu0  ;;  %11755 = vst [vmem:[#allocation67_spill] sm:$0xff] %v8339_v8  ;;  %v8348_v0 = vadd.f32 %v8022_v18, %v2306_v49  ;;  %6629 = vpow2.f32 %v3436_v52  ;;  %v3167_v60 = vmin.f32 %v8322_v47, 20.0  ;;  %v8357_v13 = vadd.f32 %v7880_v17, %v8184_v5  ;;  %v8363_v18 = vpop.eup %6619 }
 0x134   :  { %v8332_v2 = vpop.f32.mrb[42].mxu1  ;;  %v8334_v51 = vpop.f32.mrb[43].mxu0  ;;  %11757 = vst [vmem:[#allocation69_spill] sm:$0xff] %v8345_v12  ;;  %v2010_v36 = vcombine.high %v8271_v61, %v8271_v61  ;;  %11760 = vst [vmem:[#allocation72_spill] sm:$0xff] %v8363_v18  ;;  %v8367_v31 = vadd.f32 %v7880_v17, %v8208_v33  ;;  %v8370_v49 = vadd.f32 %v8031_v21, %v2594_v24  ;;  %6631 = vpow2.f32 %v3434_v1  ;;  %v11767_v33 = vld [vmem:[#allocation27_spill] sm:$0xff] }
 0x135   :  { %11754 = vst [vmem:[#allocation66_spill] sm:$0xff] %v8334_v51  ;;  %v8341_v6 = vpop.f32.mrb[43].mxu1  ;;  %11758 = vst [vmem:[#allocation70_spill] sm:$0xff] %v8357_v13  ;;  %v8373_v52 = vadd.f32 %v2302_v30, %v8033_v63  ;;  %v11762_v5 = vcombine.high %v7894_v25, %v7894_v25  ;;  %v2009_v24 = vrot.slane %v1981_v59, %v7788_v45  ;;  %v8391_v30 = vpop.eup %6621  ;;  %v3440_v34 = vmul.f32 1.442695, %v3237_v50 }
 0x136   :  { %11756 = vst [vmem:[#allocation68_spill] sm:$0xff] %v8341_v6  ;;  %11761 = vst [vmem:[#allocation73_spill] sm:$0xff] %v8367_v31  ;;  %v2590_v21 = vrot.slane %v2010_v36, %v7796_v55  ;;  %6633 = vpow2.f32 %v3294_v44  ;;  %v3166_v18 = vmin.f32 %v8345_v12, 20.0  ;;  %v3300_v44 = vmul.f32 1.442695, %v3167_v60 }
 0x137   :  { %v8361_v41 = vpop.f32.mrb[44].mxu0  ;;  %v8379_v14 = vrot.slane %v11762_v5, %v7788_v45  ;;  %v3236_v5 = vmin.f32 %v8339_v8, 20.0  ;;  %v2602_v36 = vrot.slane %v2009_v24, %v7796_v55  ;;  %v3239_v8 = vmin.f32 %v8357_v13, 20.0 }
 0x138   :  { %11759 = vst [vmem:[#allocation71_spill] sm:$0xff] %v8361_v41  ;;  %v8381_v61 = vpop.f32.mrb[44].mxu1  ;;  %v8383_v47 = vpop.f32.mrb[45].mxu0  ;;  %v8400_v1 = vadd.f32 %v2590_v21, %v11767_v33  ;;  %v3238_v12 = vmin.f32 %v8367_v31, 20.0  ;;  %v8419_v21 = vadd.f32 %v7880_v17, %v8227_v3  ;;  %v8429_v13 = vrot.slane %v8277_v15, %v7788_v45 }
 0x139   :  { %11763 = vst [vmem:[#allocation74_spill] sm:$0xff] %v8381_v61  ;;  %11764 = vst [vmem:[#allocation75_spill] sm:$0xff] %v8383_v47  ;;  %v8389_v63 = vpop.f32.mrb[45].mxu1  ;;  %v8397_v47 = vadd.f32 %v7880_v17, %v8216_v9  ;;  %v2314_v59 = vrot.slane %v8379_v14, %v7796_v55  ;;  %v8407_v50 = vpop.eup %6623  ;;  %v1554_v9 = vrot.slane %v7894_v25, %v7788_v45  ;;  %6635 = vpow2.f32 %v3440_v34 }
 0x13a   :  { %11765 = vst [vmem:[#allocation76_spill] sm:$0xff] %v8389_v63  ;;  %11769 = vst [vmem:[#allocation78_spill] sm:$0xff] %v8407_v50  ;;  %v11774_v50 = vld [vmem:[#allocation30_spill] sm:$0xff]  ;;  %v8433_v25 = vpop.eup %6625  ;;  %v8439_v3 = vadd.f32 %v7880_v17, %v8256_v58  ;;  %v2598_v34 = vrot.slane %v8429_v13, %v7796_v55  ;;  %v2013_v58 = vcombine.high %v2009_v24, %v2009_v24  ;;  %v3602_v61 = vadd.f32 1.0, %v8106_v26 }
 0x13b   :  { %11766 = vst [vmem:[#allocation77_spill] sm:$0xff] %v8397_v47  ;;  %v8405_v63 = vpop.f32.mrb[46].mxu0  ;;  %11772 = vst [vmem:[#allocation81_spill] sm:$0xff] %v8419_v21  ;;  %v8425_v60 = vadd.f32 %v11774_v50, %v2602_v36  ;;  %v3438_v36 = vmul.f32 1.442695, %v3236_v5  ;;  %v3169_v15 = vmin.f32 %v8397_v47, 20.0  ;;  %6637 = vpow2.f32 %v3300_v44 }
 0x13c   :  { %11768 = vst [vmem:[#allocation27_spill] sm:$0xff] %v8405_v63  ;;  %v8413_v41 = vpop.f32.mrb[46].mxu1  ;;  %v8415_v33 = vpop.f32.mrb[47].mxu0  ;;  %v8422_v63 = vadd.f32 %v11773_v27, %v2314_v59  ;;  %11776 = vst [vmem:[#allocation30_spill] sm:$0xff] %v8433_v25  ;;  %v2310_v27 = vrot.slane %v1554_v9, %v7796_v55  ;;  %v3298_v50 = vmul.f32 1.442695, %v3166_v18  ;;  %v3730_v51 = vmul.f32 %v3602_v61, %v3602_v61 }
 0x13d   :  { %11770 = vst [vmem:[#allocation79_spill] sm:$0xff] %v8413_v41  ;;  %11771 = vst [vmem:[#allocation80_spill] sm:$0xff] %v8415_v33  ;;  %v8431_v31 = vpop.f32.mrb[47].mxu1  ;;  %v11777_v33 = vld [vmem:[#allocation9_spill] sm:$0xff]  ;;  %v8442_v59 = vpop.eup %6627  ;;  %v3444_v18 = vmul.f32 1.442695, %v3239_v8  ;;  %6639 = vpow2.f32 %v3438_v36  ;;  %v8473_v8 = vadd.f32 %v7880_v17, %v8280_v20  ;;  %v1572_v20 = vcombine.high %v8379_v14, %v8379_v14 }
 0x13e   :  { %11775 = vst [vmem:[#allocation29_spill] sm:$0xff] %v8431_v31  ;;  %v2021_v41 = vrot.slane %v11777_v33, %v7788_v45  ;;  %11778 = vst [vmem:[#allocation9_spill] sm:$0xff] %v8439_v3  ;;  %v8447_v31 = vadd.f32 %v7880_v17, %v8260_v62  ;;  %v8450_v25 = vadd.f32 %v2310_v27, %v8072_v7  ;;  %v3442_v5 = vmul.f32 1.442695, %v3238_v12  ;;  %v11783_v26 = vld [vmem:[#allocation6_spill] sm:$0xff] }
 0x13f   :  { %11779 = vst [vmem:[#allocation82_spill] sm:$0xff] %v8442_v59  ;;  %v8457_v59 = vpop.eup %6629  ;;  %v3241_v47 = vmin.f32 %v8419_v21, 20.0  ;;  %v3168_v62 = vmin.f32 %v8439_v3, 20.0  ;;  %v8462_v7 = vadd.f32 %v2598_v34, %v8078_v38  ;;  %v2610_v27 = vrot.slane %v2013_v58, %v7796_v55  ;;  %11784 = vst [vmem:[#allocation86_spill] sm:$0xff] %v8473_v8  ;;  %v8475_v12 = vpop.f32.mrb[48].mxu0 }
 0x140   :  { %11780 = vst [vmem:[#allocation83_spill] sm:$0xff] %v8447_v31  ;;  %v8455_v6 = vpop.f32.mrb[48].mxu1  ;;  %v8465_v24 = vpop.eup %6631  ;;  %v2014_v44 = vcombine.high %v11777_v33, %v11777_v33  ;;  %6641 = vpow2.f32 %v3298_v50  ;;  %v3304_v34 = vmul.f32 1.442695, %v3169_v15  ;;  %v3171_v61 = vmin.f32 %v8447_v31, 20.0 }
 0x141   :  { %11781 = vst [vmem:[#allocation84_spill] sm:$0xff] %v8455_v6  ;;  %11782 = vst [vmem:[#allocation85_spill] sm:$0xff] %v8465_v24  ;;  %v8477_v38 = vpop.eup %6633  ;;  %v8481_v58 = vadd.f32 %v8102_v16, %v2610_v27  ;;  %v8483_v6 = vpop.f32.mrb[49].mxu0  ;;  %6643 = vpow2.f32 %v3444_v18  ;;  %v4114_v33 = vadd.f32 1.0, %v3730_v51  ;;  %v1570_v36 = vcombine.high %v1554_v9, %v1554_v9 }
 0x142   :  { %11785 = vst [vmem:[#allocation87_spill] sm:$0xff] %v8477_v38  ;;  %v8485_v21 = vpop.f32.mrb[49].mxu1  ;;  %v2029_v3 = vcombine.high %v2021_v41, %v2021_v41  ;;  %6645 = vpow2.f32 %v3442_v5  ;;  %v3448_v38 = vmul.f32 1.442695, %v3241_v47  ;;  %v3302_v50 = vmul.f32 1.442695, %v3168_v62 }
 0x143   :  { %v3240_v15 = vmin.f32 %v8473_v8, 20.0  ;;  %6647 = vrcp.f32 %v4114_v33  ;;  %v2322_v16 = vrot.slane %v1572_v20, %v7796_v55  ;;  %v2318_v27 = vrot.slane %v1570_v36, %v7796_v55  ;;  %v8492_v31 = vpop.eup %6635  ;;  %v11788_v5 = vld [vmem:[#allocation33_spill] sm:$0xff] }
 0x144   :  { %6649 = vpow2.f32 %v3304_v34  ;;  %v3308_v18 = vmul.f32 1.442695, %v3171_v61  ;;  %v8496_v24 = vadd.f32 %v7880_v17, %v8301_v22  ;;  %v2011_v14 = vcombine.high %v8429_v13, %v8429_v13 }
 0x145   :  { %v8502_v47 = vadd.f32 %v7880_v17, %v8304_v54  ;;  %v8505_v9 = vadd.f32 %v8095_v42, %v2322_v16  ;;  %v8508_v62 = vadd.f32 %v2318_v27, %v11788_v5  ;;  %v3603_v34 = vadd.f32 1.0, %v8114_v29  ;;  %v8518_v33 = vpop.eup %6637  ;;  %v11790_v29 = vld [vmem:[#allocation34_spill] sm:$0xff] }
 0x146   :  { %11786 = vst [vmem:[#allocation88_spill] sm:$0xff] %v8496_v24  ;;  %v8512_v61 = vrot.slane %v2021_v41, %v7788_v45  ;;  %6651 = vpow2.f32 %v3448_v38  ;;  %v2606_v22 = vrot.slane %v2011_v14, %v7796_v55  ;;  %v8516_v13 = vrot.slane %v2029_v3, %v7788_v45  ;;  %11789 = vst [vmem:[#allocation33_spill] sm:$0xff] %v8518_v33  ;;  %v8527_v38 = vpop.f32.mrb[50].mxu1 }
 0x147   :  { %11787 = vst [vmem:[#allocation89_spill] sm:$0xff] %v8502_v47  ;;  %6653 = vpow2.f32 %v3302_v50  ;;  %v3446_v54 = vmul.f32 1.442695, %v3240_v15  ;;  %v3731_v42 = vmul.f32 %v3603_v34, %v3603_v34  ;;  %v3604_v20 = vadd.f32 1.0, %v8128_v4  ;;  %v8529_v3 = vpop.eup %6639  ;;  %v8567_v8 = vpop.f32.mrb[51].mxu1 }
 0x148   :  { %v3243_v36 = vmin.f32 %v8496_v24, 20.0  ;;  %v6112_v16 = vadd.f32 -1.0, %v3730_v51  ;;  %v8523_v27 = vadd.f32 %v2606_v22, %v11790_v29  ;;  %v2618_v41 = vrot.slane %v8516_v13, %v7796_v55  ;;  %11791 = vst [vmem:[#allocation34_spill] sm:$0xff] %v8529_v3 }
 0x149   :  { %6655 = vpow2.f32 %v3308_v18  ;;  %v3170_v50 = vmin.f32 %v8502_v47, 20.0  ;;  %v8534_v15 = vadd.f32 %v7880_v17, %v8325_v43  ;;  %v4115_v4 = vadd.f32 1.0, %v3731_v42  ;;  %v8565_v47 = vpop.f32.mrb[50].mxu0 }
 0x14a   :  { %v8536_v14 = vpop.eup %6641  ;;  %v8540_v51 = vadd.f32 %v7880_v17, %v8348_v0  ;;  %v8543_v5 = vadd.f32 %v8137_v32, %v2618_v41  ;;  %v3732_v34 = vmul.f32 %v3604_v20, %v3604_v20  ;;  %v11795_v18 = vcombine.high %v7951_v35, %v7951_v35  ;;  %v11799_v35 = vld [vmem:[#allocation14_spill] sm:$0xff] }
 0x14b   :  { %11792 = vst [vmem:[#allocation90_spill] sm:$0xff] %v8534_v15  ;;  %11793 = vst [vmem:[#allocation91_spill] sm:$0xff] %v8536_v14  ;;  %v8551_v29 = vpop.eup %6643  ;;  %v8557_v24 = vrot.slane %v11783_v26, %v7788_v45  ;;  %v8560_v0 = vrot.slane %v2014_v44, %v7788_v45  ;;  %6657 = vrcp.f32 %v4115_v4  ;;  %v3452_v20 = vmul.f32 1.442695, %v3243_v36  ;;  %v11805_v14 = vld [vmem:[#allocation37_spill] sm:$0xff] }
 0x14c   :  { %11794 = vst [vmem:[#allocation92_spill] sm:$0xff] %v8540_v51  ;;  %v8549_v22 = vrot.slane %v11795_v18, %v7788_v45  ;;  %11796 = vst [vmem:[#allocation93_spill] sm:$0xff] %v8551_v29  ;;  %v8562_v32 = vpop.eup %6645  ;;  %6659 = vpow2.f32 %v3446_v54  ;;  %v3986_v41 = vmul.f32 %v6112_v16, %v11799_v35  ;;  %v4116_v18 = vadd.f32 1.0, %v3732_v34 }
 0x14d   :  { %11797 = vst [vmem:[#allocation94_spill] sm:$0xff] %v8557_v24  ;;  %11798 = vst [vmem:[#allocation95_spill] sm:$0xff] %v8562_v32  ;;  %v6648_v43 = vpop.eup %6647  ;;  %v3306_v29 = vmul.f32 1.442695, %v3170_v50  ;;  %v3242_v26 = vmin.f32 %v8534_v15, 20.0  ;;  %v2326_v4 = vrot.slane %v8314_v28, %v7796_v55  ;;  %v8574_v32 = vpop.f32.mrb[51].mxu0  ;;  %v8581_v16 = vadd.f32 %v7880_v17, %v8370_v49 }
 0x14e   :  { %11800 = vst [vmem:[#allocation14_spill] sm:$0xff] %v8567_v8  ;;  %v2330_v44 = vrot.slane %v8549_v22, %v7796_v55  ;;  %11801 = vst [vmem:[#allocation96_spill] sm:$0xff] %v8574_v32  ;;  %v8576_v54 = vpop.eup %6649  ;;  %v3173_v36 = vmin.f32 %v8540_v51, 20.0  ;;  %v4370_v33 = vmul.f32 %v6648_v43, %v3986_v41  ;;  %v8586_v50 = vld [vmem:[%s11410_s5] ss:$0 sm:$0xff]  ;;  %v2614_v15 = vrot.slane %v8512_v61, %v7796_v55 }
 0x14f   :  { %11802 = vst [vmem:[#allocation97_spill] sm:$0xff] %v8576_v54  ;;  %11803 = vst [vmem:[#allocation98_spill] sm:$0xff] %v8581_v16  ;;  %vm4498_vm1 = vcmp.gt.f32.partialorder %v11799_v35, 20.0  ;;  %6661 = vrcp.f32 %v4116_v18  ;;  %v8595_v51 = vadd.f32 %v2326_v4, %v8139_v56  ;;  %v6113_v41 = vadd.f32 -1.0, %v3731_v42  ;;  %v11808_v56 = vld [vmem:[#allocation39_spill] sm:$0xff]  ;;  %v8611_v4 = vpop.f32.mrb[52].mxu1 }
 0x150   :  { %v8592_v54 = vadd.f32 %v8126_v39, %v2330_v44  ;;  %v8597_v49 = vpop.eup %6651  ;;  %6663 = vpow2.f32 %v3452_v20  ;;  %v4626_v43 = vsel %vm4498_vm1, %v11799_v35, %v4370_v33  ;;  %v8601_v24 = vadd.f32 %v2614_v15, %v11805_v14  ;;  %11809 = vst [vmem:[#allocation39_spill] sm:$0xff] %v8611_v4  ;;  %v11810_v20 = vld [vmem:[#allocation7_spill] sm:$0xff]  ;;  %v11819_v32 = vld [vmem:[#allocation40_spill] sm:$0xff] }
 0x151   :  { %11804 = vst [vmem:[#allocation99_spill] sm:$0xff] %v8597_v49  ;;  %v8603_v3 = vpop.eup %6653  ;;  %v3450_v8 = vmul.f32 1.442695, %v3242_v26  ;;  %v8607_v18 = vadd.f32 %v7880_v17, %v8373_v52  ;;  %v4761_v39 = vmul.f32 %v8586_v50, %v4626_v43  ;;  %v3605_v44 = vadd.f32 1.0, %v11808_v56  ;;  %v11813_v56 = vld [vmem:[#allocation15_spill] sm:$0xff] }
 0x152   :  { %11806 = vst [vmem:[#allocation37_spill] sm:$0xff] %v8603_v3  ;;  %6665 = vpow2.f32 %v3306_v29  ;;  %v3312_v42 = vmul.f32 1.442695, %v3173_v36  ;;  %v2061_v15 = vcombine.high %v8516_v13, %v8516_v13  ;;  %v3245_v26 = vmin.f32 %v8581_v16, 20.0 }
 0x153   :  { %11807 = vst [vmem:[#allocation100_spill] sm:$0xff] %v8607_v18  ;;  %v8617_v14 = vpop.eup %6655  ;;  %v8622_v52 = vadd.f32 %v7880_v17, %v8400_v1  ;;  %4945 = vadd.xlane.f32.xlu0 %v4761_v39  ;;  %v3733_v35 = vmul.f32 %v3605_v44, %v3605_v44  ;;  %v3606_v43 = vadd.f32 1.0, %v8197_v57  ;;  %v3987_v49 = vmul.f32 %v6113_v41, %v11813_v56  ;;  %v11816_v44 = vld [vmem:[#allocation41_spill] sm:$0xff] }
 0x154   :  { %11811 = vst [vmem:[#allocation7_spill] sm:$0xff] %v8617_v14  ;;  %v6114_v33 = vadd.f32 -1.0, %v3732_v34  ;;  %v2626_v29 = vrot.slane %v2061_v15, %v7796_v55  ;;  %v1620_v13 = vcombine.high %v8549_v22, %v8549_v22  ;;  %v2030_v16 = vcombine.high %v8560_v0, %v8560_v0 }
 0x155   :  { %11812 = vst [vmem:[#allocation101_spill] sm:$0xff] %v8622_v52  ;;  %v6658_v36 = vpop.eup %6657  ;;  %6667 = vpow2.f32 %v3450_v8  ;;  %v3172_v1 = vmin.f32 %v8607_v18, 20.0  ;;  %v8634_v39 = vadd.f32 %v7880_v17, %v8422_v63  ;;  %v4117_v34 = vadd.f32 1.0, %v3733_v35  ;;  %v8645_v18 = vpop.f32.mrb[52].mxu0 }
 0x156   :  { %v8636_v57 = vpop.eup %6659  ;;  %v4371_v41 = vmul.f32 %v6658_v36, %v3987_v49  ;;  %v8639_v15 = vadd.f32 %v11816_v44, %v2626_v29  ;;  %v3734_v14 = vmul.f32 %v3606_v43, %v3606_v43  ;;  %6669 = vpow2.f32 %v3312_v42  ;;  %11817 = vst [vmem:[#allocation41_spill] sm:$0xff] %v8645_v18  ;;  %v8647_v63 = vpop.f32.mrb[53].mxu1  ;;  %v11818_v29 = vld [vmem:[#allocation17_spill] sm:$0xff] }
 0x157   :  { %11814 = vst [vmem:[#allocation15_spill] sm:$0xff] %v8634_v39  ;;  %11815 = vst [vmem:[#allocation102_spill] sm:$0xff] %v8636_v57  ;;  %vm4499_vm2 = vcmp.gt.f32.partialorder %v11813_v56, 20.0  ;;  %v2338_v22 = vrot.slane %v1620_v13, %v7796_v55  ;;  %v1618_v8 = vcombine.high %v8314_v28, %v8314_v28  ;;  %v3456_v3 = vmul.f32 1.442695, %v3245_v26  ;;  %v8652_v43 = vpop.f32.mrb[53].mxu0 }
 0x158   :  { %v3244_v49 = vmin.f32 %v8622_v52, 20.0  ;;  %v4627_v36 = vsel %vm4499_vm2, %v11813_v56, %v4371_v41  ;;  %v3988_v44 = vmul.f32 %v6114_v33, %v11818_v29  ;;  %v3310_v57 = vmul.f32 1.442695, %v3172_v1 }
 0x159   :  { %v6662_v42 = vpop.eup %6661  ;;  %v4762_v13 = vmul.f32 %v8586_v50, %v4627_v36  ;;  %v4118_v4 = vadd.f32 1.0, %v3734_v14  ;;  %v8656_v28 = vadd.f32 %v11819_v32, %v2338_v22  ;;  %v3175_v26 = vmin.f32 %v8634_v39, 20.0  ;;  %v11823_v36 = vld [vmem:[#allocation44_spill] sm:$0xff] }
 0x15a   :  { %v8658_v18 = vpop.eup %6663  ;;  %v8663_v52 = vadd.f32 %v7880_v17, %v8425_v60  ;;  %v4372_v56 = vmul.f32 %v6662_v42, %v3988_v44  ;;  %6671 = vrcp.f32 %v4117_v34  ;;  %vm4500_vm3 = vcmp.gt.f32.partialorder %v11818_v29, 20.0 }
 0x15b   :  { %11820 = vst [vmem:[#allocation17_spill] sm:$0xff] %v8658_v18  ;;  %4947 = vadd.xlane.f32.xlu1 %v4762_v13  ;;  %6673 = vrcp.f32 %v4118_v4  ;;  %v2334_v33 = vrot.slane %v1618_v8, %v7796_v55  ;;  %v2059_v32 = vcombine.high %v8512_v61, %v8512_v61  ;;  %v3454_v41 = vmul.f32 1.442695, %v3244_v49  ;;  %v11825_v4 = vld [vmem:[#allocation42_spill] sm:$0xff] }
 0x15c   :  { %11821 = vst [vmem:[#allocation40_spill] sm:$0xff] %v8663_v52  ;;  %v8669_v1 = vpop.eup %6665  ;;  %6675 = vpow2.f32 %v3456_v3  ;;  %v4628_v22 = vsel %vm4500_vm3, %v11818_v29, %v4372_v56  ;;  %v3607_v60 = vadd.f32 1.0, %v11823_v36  ;;  %v8675_v34 = vadd.f32 %v7880_v17, %v8450_v25  ;;  %v8687_v29 = vpop.f32.mrb[54].mxu1  ;;  %v11836_v18 = vld [vmem:[#allocation22_spill] sm:$0xff] }
 0x15d   :  { %11822 = vst [vmem:[#allocation103_spill] sm:$0xff] %v8669_v1  ;;  %v4763_v44 = vmul.f32 %v8586_v50, %v4628_v22  ;;  %v8679_v42 = vadd.f32 %v2334_v33, %v11825_v4  ;;  %v2622_v8 = vrot.slane %v2059_v32, %v7796_v55  ;;  %v3247_v61 = vmin.f32 %v8663_v52, 20.0  ;;  %11826 = vst [vmem:[#allocation42_spill] sm:$0xff] %v8687_v29  ;;  %v11828_v33 = vld [vmem:[#allocation43_spill] sm:$0xff]  ;;  %v11837_v1 = vld [vmem:[#allocation48_spill] sm:$0xff] }
 0x15e   :  { %11824 = vst [vmem:[#allocation44_spill] sm:$0xff] %v8675_v34  ;;  %v3735_v13 = vmul.f32 %v3607_v60, %v3607_v60  ;;  %v8684_v3 = vrot.slane %v2030_v16, %v7788_v45  ;;  %v3608_v49 = vadd.f32 1.0, %v8231_v53  ;;  %6677 = vpow2.f32 %v3310_v57 }
 0x15f   :  { %v8689_v56 = vpop.eup %6667  ;;  %v3316_v25 = vmul.f32 1.442695, %v3175_v26  ;;  %4949 = vadd.xlane.f32.xlu0 %v4763_v44  ;;  %v6115_v22 = vadd.f32 -1.0, %v3733_v35  ;;  %v8692_v36 = vadd.f32 %v2622_v8, %v11828_v33  ;;  %v6116_v32 = vadd.f32 -1.0, %v3734_v14  ;;  %v11832_v14 = vld [vmem:[#allocation11_spill] sm:$0xff]  ;;  %v11834_v33 = vld [vmem:[#allocation18_spill] sm:$0xff] }
 0x160   :  { %11827 = vst [vmem:[#allocation104_spill] sm:$0xff] %v8689_v56  ;;  %v4119_v4 = vadd.f32 1.0, %v3735_v13  ;;  %v2634_v60 = vrot.slane %v8684_v3, %v7796_v55  ;;  %v3736_v16 = vmul.f32 %v3608_v49, %v3608_v49  ;;  %v8696_v39 = vpop.eup %6669  ;;  %6679 = vpow2.f32 %v3454_v41  ;;  %v11833_v49 = vld [vmem:[#allocation50_spill] sm:$0xff] }
 0x161   :  { %11829 = vst [vmem:[#allocation43_spill] sm:$0xff] %v8696_v39  ;;  %v3174_v53 = vmin.f32 %v8675_v34, 20.0  ;;  %v8701_v57 = vadd.f32 %v7880_v17, %v8462_v7  ;;  %v11831_v35 = vcombine.high %v8145_v19, %v8145_v19  ;;  %v8711_v44 = vrot.slane %v11832_v14, %v7788_v45 }
 0x162   :  { %v3460_v8 = vmul.f32 1.442695, %v3247_v61  ;;  %6681 = vrcp.f32 %v4119_v4  ;;  %v8714_v41 = vadd.f32 %v11833_v49, %v2634_v60  ;;  %v3989_v34 = vmul.f32 %v6115_v22, %v11834_v33 }
 0x163   :  { %11830 = vst [vmem:[#allocation105_spill] sm:$0xff] %v8701_v57  ;;  %v8707_v26 = vrot.slane %v11831_v35, %v7788_v45  ;;  %6683 = vpow2.f32 %v3316_v25  ;;  %v4120_v7 = vadd.f32 1.0, %v3736_v16  ;;  %v8721_v35 = vadd.f32 %v7880_v17, %v8481_v58 }
 0x164   :  { %v6672_v39 = vpop.eup %6671  ;;  %v3990_v56 = vmul.f32 %v6116_v32, %v11836_v18  ;;  %v8726_v61 = vrot.slane %v8145_v19, %v7788_v45  ;;  %v8730_v25 = vrot.slane %v8560_v0, %v7788_v45  ;;  %v3314_v4 = vmul.f32 1.442695, %v3174_v53  ;;  %v8741_v32 = vpop.f32.mrb[54].mxu0 }
 0x165   :  { %v2346_v52 = vrot.slane %v8707_v26, %v7796_v55  ;;  %11835 = vst [vmem:[#allocation11_spill] sm:$0xff] %v8721_v35  ;;  %v6674_v22 = vpop.eup %6673  ;;  %v3246_v60 = vmin.f32 %v8701_v57, 20.0  ;;  %v4373_v49 = vmul.f32 %v6672_v39, %v3989_v34  ;;  %vm4501_vm4 = vcmp.gt.f32.partialorder %v11834_v33, 20.0  ;;  %11839 = vst [vmem:[#allocation18_spill] sm:$0xff] %v8741_v32  ;;  %v8743_v0 = vpop.f32.mrb[55].mxu1 }
 0x166   :  { %v8736_v17 = vpop.eup %6675  ;;  %v4374_v58 = vmul.f32 %v6674_v22, %v3990_v56  ;;  %6685 = vrcp.f32 %v4120_v7  ;;  %v2342_v19 = vrot.slane %v8726_v61, %v7796_v55  ;;  %11840 = vst [vmem:[#allocation22_spill] sm:$0xff] %v8743_v0  ;;  %vm4502_vm5 = vcmp.gt.f32.partialorder %v11836_v18, 20.0  ;;  %v11842_v22 = vld [vmem:[#allocation51_spill] sm:$0xff] }
 0x167   :  { %v8734_v29 = vadd.f32 %v11837_v1, %v2346_v52  ;;  %11838 = vst [vmem:[#allocation50_spill] sm:$0xff] %v8736_v17  ;;  %v4629_v53 = vsel %vm4501_vm4, %v11834_v33, %v4373_v49  ;;  %v6117_v39 = vadd.f32 -1.0, %v3735_v13  ;;  %v2630_v52 = vrot.slane %v8730_v25, %v7796_v55  ;;  %v8749_v1 = vpop.f32.mrb[55].mxu0  ;;  %v8762_v13 = vld [vmem:[%s11409_s4] ss:$0 sm:$0xff] }
 0x168   :  { %11841 = vst [vmem:[#allocation48_spill] sm:$0xff] %v8749_v1  ;;  %v3249_v34 = vmin.f32 %v8721_v35, 20.0  ;;  %v4764_v56 = vmul.f32 %v8586_v50, %v4629_v53  ;;  %v4630_v7 = vsel %vm4502_vm5, %v11836_v18, %v4374_v58  ;;  %v8755_v57 = vadd.f32 %v2342_v19, %v11842_v22  ;;  %v8757_v17 = vpop.eup %6677  ;;  %v11845_v18 = vld [vmem:[#allocation49_spill] sm:$0xff] }
 0x169   :  { %11843 = vst [vmem:[#allocation51_spill] sm:$0xff] %v8757_v17  ;;  %v8766_v33 = vadd.f32 %v8762_v13, %v8505_v9  ;;  %v4765_v49 = vmul.f32 %v8586_v50, %v4630_v7  ;;  %v8770_v53 = vadd.f32 %v2630_v52, %v8229_v40  ;;  %v3609_v58 = vadd.f32 1.0, %v11845_v18  ;;  %v11847_v9 = vld [vmem:[#allocation21_spill] sm:$0xff] }
 0x16a   :  { %v8775_v19 = vrot.slane %v11810_v20, %v7788_v45  ;;  %6687 = vpow2.f32 %v3460_v8  ;;  %v3458_v22 = vmul.f32 1.442695, %v3246_v60  ;;  %4951 = vadd.xlane.f32.xlu1 %v4764_v56  ;;  %v2062_v35 = vcombine.high %v8684_v3, %v8684_v3  ;;  %v8779_v17 = vpop.eup %6679 }
 0x16b   :  { %11844 = vst [vmem:[#allocation106_spill] sm:$0xff] %v8766_v33  ;;  %11846 = vst [vmem:[#allocation49_spill] sm:$0xff] %v8779_v17  ;;  %4953 = vadd.xlane.f32.xlu0 %v4765_v49  ;;  %v3991_v7 = vmul.f32 %v6117_v39, %v11847_v9  ;;  %v6118_v0 = vadd.f32 -1.0, %v3736_v16  ;;  %v3737_v40 = vmul.f32 %v3609_v58, %v3609_v58  ;;  %v3610_v52 = vadd.f32 1.0, %v8237_v48 }
 0x16c   :  { %v6682_v18 = vpop.eup %6681  ;;  %v3464_v1 = vmul.f32 1.442695, %v3249_v34  ;;  %v8785_v32 = vadd.f32 %v8762_v13, %v8508_v62  ;;  %v2642_v8 = vrot.slane %v2062_v35, %v7796_v55  ;;  %v1621_v3 = vcombine.high %v8707_v26, %v8707_v26  ;;  %v11850_v26 = vld [vmem:[#allocation25_spill] sm:$0xff] }
 0x16d   :  { %v8790_v60 = vpop.eup %6683  ;;  %v2078_v39 = vcombine.high %v8711_v44, %v8711_v44  ;;  %6689 = vpow2.f32 %v3314_v4  ;;  %v3177_v16 = vmin.f32 %v8766_v33, 20.0  ;;  %v4375_v48 = vmul.f32 %v6682_v18, %v3991_v7 }
 0x16e   :  { %11848 = vst [vmem:[#allocation21_spill] sm:$0xff] %v8785_v32  ;;  %11849 = vst [vmem:[#allocation107_spill] sm:$0xff] %v8790_v60  ;;  %vm4503_vm6 = vcmp.gt.f32.partialorder %v11847_v9, 20.0  ;;  %v4121_v34 = vadd.f32 1.0, %v3737_v40  ;;  %v8797_v62 = vadd.f32 %v8262_v37, %v2642_v8  ;;  %v3738_v56 = vmul.f32 %v3610_v52, %v3610_v52 }
 0x16f   :  { %6691 = vpow2.f32 %v3458_v22  ;;  %v4631_v35 = vsel %vm4503_vm6, %v11847_v9, %v4375_v48  ;;  %v3992_v49 = vmul.f32 %v6118_v0, %v11850_v26  ;;  %v2354_v58 = vrot.slane %v1621_v3, %v7796_v55  ;;  %v8811_v9 = vpop.f32.mrb[56].mxu1  ;;  %v8813_v0 = vpop.f32.mrb[56].mxu0 }
 0x170   :  { %v6686_v60 = vpop.eup %6685  ;;  %6693 = vpow2.f32 %v3464_v1  ;;  %v3176_v4 = vmin.f32 %v8785_v32, 20.0  ;;  %v8805_v7 = vadd.f32 %v8762_v13, %v8523_v27  ;;  %v4766_v18 = vmul.f32 %v8586_v50, %v4631_v35  ;;  %11852 = vst [vmem:[#allocation108_spill] sm:$0xff] %v8813_v0  ;;  %v8822_v3 = vpop.f32.mrb[57].mxu0 }
 0x171   :  { %v3320_v37 = vmul.f32 1.442695, %v3177_v16  ;;  %v4376_v8 = vmul.f32 %v6686_v60, %v3992_v49  ;;  %v4122_v52 = vadd.f32 1.0, %v3738_v56  ;;  %v8809_v22 = vadd.f32 %v8249_v10, %v2354_v58  ;;  %11854 = vst [vmem:[#allocation110_spill] sm:$0xff] %v8822_v3  ;;  %v8824_v60 = vpop.f32.mrb[57].mxu1  ;;  %v11857_v49 = vld [vmem:[#allocation52_spill] sm:$0xff] }
 0x172   :  { %11851 = vst [vmem:[#allocation25_spill] sm:$0xff] %v8805_v7  ;;  %v8817_v1 = vadd.f32 %v8762_v13, %v8543_v5  ;;  %4955 = vadd.xlane.f32.xlu1 %v4766_v18  ;;  %vm4504_vm7 = vcmp.gt.f32.partialorder %v11850_v26, 20.0  ;;  %6695 = vrcp.f32 %v4121_v34  ;;  %v1619_v27 = vcombine.high %v8726_v61, %v8726_v61  ;;  %11855 = vst [vmem:[#allocation111_spill] sm:$0xff] %v8824_v60 }
 0x173   :  { %v8828_v10 = vrot.slane %v8711_v44, %v7788_v45  ;;  %v4632_v16 = vsel %vm4504_vm7, %v11850_v26, %v4376_v8  ;;  %6697 = vrcp.f32 %v4122_v52  ;;  %v2060_v5 = vcombine.high %v8730_v25, %v8730_v25  ;;  %v11858_v25 = vld [vmem:[#allocation56_spill] sm:$0xff] }
 0x174   :  { %11853 = vst [vmem:[#allocation109_spill] sm:$0xff] %v8817_v1  ;;  %v8833_v48 = vpop.eup %6687  ;;  %v3318_v34 = vmul.f32 1.442695, %v3176_v4  ;;  %v4767_v35 = vmul.f32 %v8586_v50, %v4632_v16  ;;  %v2350_v61 = vrot.slane %v1619_v27, %v7796_v55  ;;  %v3611_v58 = vadd.f32 1.0, %v11857_v49 }
 0x175   :  { %11856 = vst [vmem:[#allocation112_spill] sm:$0xff] %v8833_v48  ;;  %6699 = vpow2.f32 %v3320_v37  ;;  %v3248_v18 = vmin.f32 %v8805_v7, 20.0  ;;  %v2638_v44 = vrot.slane %v2060_v5, %v7796_v55  ;;  %v8841_v26 = vrot.slane %v2078_v39, %v7788_v45  ;;  %v11861_v5 = vld [vmem:[#allocation58_spill] sm:$0xff] }
 0x176   :  { %v3251_v8 = vmin.f32 %v8817_v1, 20.0  ;;  %4957 = vadd.xlane.f32.xlu0 %v4767_v35  ;;  %v8845_v52 = vadd.f32 %v2350_v61, %v11858_v25  ;;  %v3739_v4 = vmul.f32 %v3611_v58, %v3611_v58  ;;  %v3612_v16 = vadd.f32 1.0, %v8288_v23  ;;  %v8863_v25 = vpop.f32.mrb[58].mxu1 }
 0x177   :  { %v8848_v27 = vpop.eup %6689  ;;  %v8852_v37 = vadd.f32 %v8762_v13, %v8592_v54  ;;  %v6119_v49 = vadd.f32 -1.0, %v3737_v40  ;;  %v8855_v7 = vadd.f32 %v2638_v44, %v11861_v5  ;;  %v2650_v39 = vrot.slane %v8841_v26, %v7796_v55  ;;  %11863 = vst [vmem:[#allocation113_spill] sm:$0xff] %v8863_v25  ;;  %v11866_v40 = vld [vmem:[#allocation60_spill] sm:$0xff] }
 0x178   :  { %11859 = vst [vmem:[#allocation52_spill] sm:$0xff] %v8848_v27  ;;  %v8861_v35 = vadd.f32 %v8762_v13, %v8595_v51  ;;  %v6120_v61 = vadd.f32 -1.0, %v3738_v56  ;;  %v4123_v58 = vadd.f32 1.0, %v3739_v4  ;;  %v3740_v23 = vmul.f32 %v3612_v16, %v3612_v16  ;;  %v11867_v5 = vld [vmem:[#allocation16_spill] sm:$0xff] }
 0x179   :  { %11860 = vst [vmem:[#allocation56_spill] sm:$0xff] %v8852_v37  ;;  %v8865_v1 = vpop.eup %6691  ;;  %6701 = vpow2.f32 %v3318_v34  ;;  %v8869_v54 = vadd.f32 %v8762_v13, %v8601_v24  ;;  %v8872_v44 = vadd.f32 %v11866_v40, %v2650_v39  ;;  %v11868_v51 = vcombine.high %v11867_v5, %v11867_v5  ;;  %v11870_v40 = vld [vmem:[#allocation23_spill] sm:$0xff]  ;;  %v11872_v16 = vld [vmem:[#allocation20_spill] sm:$0xff] }
 0x17a   :  { %11862 = vst [vmem:[#allocation58_spill] sm:$0xff] %v8861_v35  ;;  %11864 = vst [vmem:[#allocation114_spill] sm:$0xff] %v8865_v1  ;;  %v8880_v56 = vpop.eup %6693  ;;  %v2063_v34 = vcombine.high %v11832_v14, %v11832_v14  ;;  %v3462_v33 = vmul.f32 1.442695, %v3248_v18  ;;  %6703 = vrcp.f32 %v4123_v58  ;;  %v3468_v24 = vmul.f32 1.442695, %v3251_v8 }
 0x17b   :  { %11865 = vst [vmem:[#allocation115_spill] sm:$0xff] %v8869_v54  ;;  %v8878_v32 = vrot.slane %v11868_v51, %v7788_v45  ;;  %11869 = vst [vmem:[#allocation60_spill] sm:$0xff] %v8880_v56  ;;  %v3179_v39 = vmin.f32 %v8852_v37, 20.0  ;;  %v3993_v1 = vmul.f32 %v6119_v49, %v11870_v40  ;;  %v4124_v27 = vadd.f32 1.0, %v3740_v23  ;;  %v11871_v51 = vld [vmem:[#allocation26_spill] sm:$0xff] }
 0x17c   :  { %v6696_v48 = vpop.eup %6695  ;;  %v3178_v5 = vmin.f32 %v8861_v35, 20.0  ;;  %v3994_v17 = vmul.f32 %v6120_v61, %v11871_v51  ;;  %v2358_v25 = vrot.slane %v11872_v16, %v7796_v55  ;;  %v3250_v18 = vmin.f32 %v8869_v54, 20.0  ;;  %v11873_v35 = vld [vmem:[#allocation59_spill] sm:$0xff]  ;;  %v11874_v61 = vld [vmem:[#allocation61_spill] sm:$0xff] }
 0x17d   :  { %v2362_v56 = vrot.slane %v8878_v32, %v7796_v55  ;;  %v6698_v14 = vpop.eup %6697  ;;  %v4377_v8 = vmul.f32 %v6696_v48, %v3993_v1  ;;  %6705 = vrcp.f32 %v4124_v27  ;;  %v2646_v49 = vrot.slane %v8828_v10, %v7796_v55  ;;  %v11876_v48 = vld [vmem:[#allocation63_spill] sm:$0xff] }
 0x17e   :  { %vm4505_vm8 = vcmp.gt.f32.partialorder %v11870_v40, 20.0  ;;  %v4378_v58 = vmul.f32 %v6698_v14, %v3994_v17  ;;  %v8902_v60 = vadd.f32 %v2358_v25, %v11874_v61  ;;  %vm4506_vm9 = vcmp.gt.f32.partialorder %v11871_v51, 20.0 }
 0x17f   :  { %v8899_v37 = vadd.f32 %v11873_v35, %v2362_v56  ;;  %v8904_v3 = vpop.eup %6699  ;;  %v4633_v0 = vsel %vm4505_vm8, %v11870_v40, %v4377_v8  ;;  %v6121_v1 = vadd.f32 -1.0, %v3739_v4  ;;  %v8909_v27 = vadd.f32 %v2646_v49, %v11876_v48  ;;  %v8921_v4 = vpop.f32.mrb[58].mxu0  ;;  %v11878_v49 = vld [vmem:[#allocation57_spill] sm:$0xff] }
 0x180   :  { %11875 = vst [vmem:[#allocation16_spill] sm:$0xff] %v8904_v3  ;;  %v3324_v54 = vmul.f32 1.442695, %v3179_v39  ;;  %v8913_v17 = vadd.f32 %v8762_v13, %v8639_v15  ;;  %v4768_v35 = vmul.f32 %v8586_v50, %v4633_v0  ;;  %v4634_v25 = vsel %vm4506_vm9, %v11871_v51, %v4378_v58  ;;  %v8924_v61 = vpop.f32.mrb[59].mxu0 }
 0x181   :  { %v8918_v56 = vrot.slane %v2063_v34, %v7788_v45  ;;  %6707 = vpow2.f32 %v3462_v33  ;;  %v3322_v40 = vmul.f32 1.442695, %v3178_v5  ;;  %v4769_v14 = vmul.f32 %v8586_v50, %v4634_v25  ;;  %v11881_v33 = vld [vmem:[#allocation24_spill] sm:$0xff] }
 0x182   :  { %11877 = vst [vmem:[#allocation23_spill] sm:$0xff] %v8913_v17  ;;  %6709 = vpow2.f32 %v3468_v24  ;;  %v3466_v8 = vmul.f32 1.442695, %v3250_v18  ;;  %4959 = vadd.xlane.f32.xlu1 %v4768_v35  ;;  %v6122_v39 = vadd.f32 -1.0, %v3740_v23  ;;  %v3613_v15 = vadd.f32 1.0, %v11878_v49 }
 0x183   :  { %v8926_v0 = vpop.eup %6701  ;;  %v8930_v34 = vadd.f32 %v8762_v13, %v8656_v28  ;;  %4961 = vadd.xlane.f32.xlu0 %v4769_v14  ;;  %v3995_v5 = vmul.f32 %v6121_v1, %v11881_v33  ;;  %v2110_v51 = vcombine.high %v8841_v26, %v8841_v26  ;;  %v3614_v24 = vadd.f32 1.0, %v8352_v11  ;;  %v11883_v28 = vld [vmem:[#allocation10_spill] sm:$0xff]  ;;  %v11884_v11 = vld [vmem:[#allocation31_spill] sm:$0xff] }
 0x184   :  { %11879 = vst [vmem:[#allocation26_spill] sm:$0xff] %v8926_v0  ;;  %v6704_v18 = vpop.eup %6703  ;;  %6711 = vpow2.f32 %v3324_v54  ;;  %v3253_v23 = vmin.f32 %v8913_v17, 20.0  ;;  %v8939_v58 = vadd.f32 %v8762_v13, %v8679_v42  ;;  %v3741_v48 = vmul.f32 %v3613_v15, %v3613_v15 }
 0x185   :  { %11880 = vst [vmem:[#allocation20_spill] sm:$0xff] %v8930_v34  ;;  %v8943_v35 = vrot.slane %v11883_v28, %v7788_v45  ;;  %v2079_v1 = vcombine.high %v8918_v56, %v8918_v56  ;;  %6713 = vpow2.f32 %v3322_v40  ;;  %v4379_v26 = vmul.f32 %v6704_v18, %v3995_v5 }
 0x186   :  { %11882 = vst [vmem:[#allocation59_spill] sm:$0xff] %v8939_v58  ;;  %6715 = vpow2.f32 %v3466_v8  ;;  %vm4507_vm10 = vcmp.gt.f32.partialorder %v11881_v33, 20.0  ;;  %v3996_v54 = vmul.f32 %v6122_v39, %v11884_v11  ;;  %v4125_v25 = vadd.f32 1.0, %v3741_v48  ;;  %v8954_v8 = vpop.f32.mrb[59].mxu1 }
 0x187   :  { %v6706_v14 = vpop.eup %6705  ;;  %v3181_v42 = vmin.f32 %v8930_v34, 20.0  ;;  %v4635_v49 = vsel %vm4507_vm10, %v11881_v33, %v4379_v26  ;;  %v2658_v15 = vrot.slane %v2110_v51, %v7796_v55  ;;  %v3742_v17 = vmul.f32 %v3614_v24, %v3614_v24  ;;  %v8964_v51 = vpop.f32.mrb[60].mxu1 }
 0x188   :  { %v3472_v0 = vmul.f32 1.442695, %v3253_v23  ;;  %v3180_v3 = vmin.f32 %v8939_v58, 20.0  ;;  %v4770_v40 = vmul.f32 %v8586_v50, %v4635_v49  ;;  %v4380_v5 = vmul.f32 %v6706_v14, %v3996_v54  ;;  %11886 = vst [vmem:[#allocation63_spill] sm:$0xff] %v8964_v51 }
 0x189   :  { %v8958_v39 = vadd.f32 %v8762_v13, %v8692_v36  ;;  %vm4508_vm11 = vcmp.gt.f32.partialorder %v11884_v11, 20.0  ;;  %v8962_v18 = vadd.f32 %v8332_v2, %v2658_v15  ;;  %v4126_v33 = vadd.f32 1.0, %v3742_v17 }
 0x18a   :  { %4963 = vadd.xlane.f32.xlu1 %v4770_v40  ;;  %v4636_v24 = vsel %vm4508_vm11, %v11884_v11, %v4380_v5  ;;  %6717 = vrcp.f32 %v4125_v25  ;;  %v1669_v23 = vcombine.high %v8878_v32, %v8878_v32  ;;  %v1667_v26 = vcombine.high %v11872_v16, %v11872_v16  ;;  %v11890_v16 = vld [vmem:[#allocation64_spill] sm:$0xff] }
 0x18b   :  { %11885 = vst [vmem:[#allocation61_spill] sm:$0xff] %v8958_v39  ;;  %v8971_v36 = vpop.eup %6707  ;;  %v3328_v54 = vmul.f32 1.442695, %v3181_v42  ;;  %v8975_v2 = vadd.f32 %v8762_v13, %v8714_v41  ;;  %v4771_v14 = vmul.f32 %v8586_v50, %v4636_v24  ;;  %6719 = vrcp.f32 %v4126_v33 }
 0x18c   :  { %11887 = vst [vmem:[#allocation57_spill] sm:$0xff] %v8971_v36  ;;  %v8978_v49 = vpop.eup %6709  ;;  %v2370_v11 = vrot.slane %v1669_v23, %v7796_v55  ;;  %v2366_v25 = vrot.slane %v1667_v26, %v7796_v55  ;;  %v2108_v32 = vcombine.high %v8828_v10, %v8828_v10  ;;  %v3615_v15 = vadd.f32 1.0, %v11890_v16  ;;  %v11892_v23 = vld [vmem:[#allocation66_spill] sm:$0xff] }
 0x18d   :  { %11888 = vst [vmem:[#allocation24_spill] sm:$0xff] %v8975_v2  ;;  %11889 = vst [vmem:[#allocation10_spill] sm:$0xff] %v8978_v49  ;;  %v3326_v40 = vmul.f32 1.442695, %v3180_v3  ;;  %v3252_v42 = vmin.f32 %v8958_v39, 20.0  ;;  %4965 = vadd.xlane.f32.xlu0 %v4771_v14  ;;  %v8987_v41 = vrot.slane %v2079_v1, %v7788_v45  ;;  %v3616_v5 = vadd.f32 1.0, %v8391_v30 }
 0x18e   :  { %v8990_v33 = vpop.eup %6711  ;;  %v8993_v24 = vadd.f32 %v8327_v46, %v2370_v11  ;;  %v8996_v26 = vadd.f32 %v2366_v25, %v11892_v23  ;;  %v2654_v10 = vrot.slane %v2108_v32, %v7796_v55  ;;  %v3743_v16 = vmul.f32 %v3615_v15, %v3615_v15  ;;  %v8999_v3 = vpop.f32.mrb[60].mxu0  ;;  %v11897_v32 = vld [vmem:[#allocation68_spill] sm:$0xff]  ;;  %v11898_v23 = vld [vmem:[#allocation74_spill] sm:$0xff] }
 0x18f   :  { %11891 = vst [vmem:[#allocation31_spill] sm:$0xff] %v8990_v33  ;;  %11893 = vst [vmem:[#allocation64_spill] sm:$0xff] %v8999_v3  ;;  %v9001_v39 = vpop.eup %6713  ;;  %6721 = vpow2.f32 %v3472_v0  ;;  %v6123_v1 = vadd.f32 -1.0, %v3741_v48  ;;  %v2666_v30 = vrot.slane %v8987_v41, %v7796_v55  ;;  %v3744_v14 = vmul.f32 %v3616_v5, %v3616_v5  ;;  %v9053_v33 = vpop.f32.mrb[61].mxu1  ;;  %v11919_v3 = vld [vmem:[#allocation38_spill] sm:$0xff] }
 0x190   :  { %11894 = vst [vmem:[#allocation66_spill] sm:$0xff] %v9001_v39  ;;  %v9005_v58 = vpop.eup %6715  ;;  %v3255_v46 = vmin.f32 %v8975_v2, 20.0  ;;  %v9010_v11 = vadd.f32 %v8762_v13, %v8734_v29  ;;  %v6124_v25 = vadd.f32 -1.0, %v3742_v17  ;;  %v9013_v15 = vadd.f32 %v2654_v10, %v11897_v32  ;;  %v11901_v10 = vld [vmem:[#allocation28_spill] sm:$0xff] }
 0x191   :  { %11895 = vst [vmem:[#allocation116_spill] sm:$0xff] %v9005_v58  ;;  %6723 = vpow2.f32 %v3328_v54  ;;  %v4127_v48 = vadd.f32 1.0, %v3743_v16  ;;  %v9018_v34 = vadd.f32 %v11898_v23, %v2666_v30  ;;  %v3470_v2 = vmul.f32 1.442695, %v3252_v42  ;;  %v11902_v58 = vld [vmem:[#allocation35_spill] sm:$0xff] }
 0x192   :  { %11896 = vst [vmem:[#allocation117_spill] sm:$0xff] %v9010_v11  ;;  %6725 = vpow2.f32 %v3326_v40  ;;  %v9024_v29 = vadd.f32 %v8762_v13, %v8755_v57  ;;  %v9028_v17 = vadd.f32 %v8762_v13, %v8797_v62  ;;  %v3997_v32 = vmul.f32 %v6123_v1, %v11901_v10  ;;  %v11903_v40 = vld [vmem:[#allocation19_spill] sm:$0xff] }
 0x193   :  { %6727 = vrcp.f32 %v4127_v48  ;;  %v4128_v54 = vadd.f32 1.0, %v3744_v14  ;;  %v3476_v30 = vmul.f32 1.442695, %v3255_v46  ;;  %v3183_v23 = vmin.f32 %v9010_v11, 20.0  ;;  %v9047_v48 = vpop.f32.mrb[61].mxu0  ;;  %11907 = vst [vmem:[#allocation19_spill] sm:$0xff] %v9053_v33 }
 0x194   :  { %11899 = vst [vmem:[#allocation68_spill] sm:$0xff] %v9024_v29  ;;  %11900 = vst [vmem:[#allocation74_spill] sm:$0xff] %v9028_v17  ;;  %v6718_v0 = vpop.eup %6717  ;;  %v3998_v5 = vmul.f32 %v6124_v25, %v11902_v58  ;;  %v11904_v42 = vcombine.high %v11903_v40, %v11903_v40  ;;  %v9041_v62 = vadd.f32 %v8762_v13, %v8770_v53  ;;  %v3182_v25 = vmin.f32 %v9024_v29, 20.0  ;;  %v11909_v29 = vld [vmem:[#allocation71_spill] sm:$0xff] }
 0x195   :  { %v6720_v39 = vpop.eup %6719  ;;  %v4381_v1 = vmul.f32 %v6718_v0, %v3997_v32  ;;  %6729 = vrcp.f32 %v4128_v54  ;;  %v9045_v46 = vrot.slane %v11903_v40, %v7788_v45  ;;  %11906 = vst [vmem:[#allocation35_spill] sm:$0xff] %v9047_v48  ;;  %vm4509_vm12 = vcmp.gt.f32.partialorder %v11901_v10, 20.0  ;;  %v9060_v54 = vpop.f32.mrb[62].mxu1 }
 0x196   :  { %v9037_v57 = vrot.slane %v11904_v42, %v7788_v45  ;;  %11905 = vst [vmem:[#allocation28_spill] sm:$0xff] %v9041_v62  ;;  %v4382_v11 = vmul.f32 %v6720_v39, %v3998_v5  ;;  %v3257_v53 = vmin.f32 %v9028_v17, 20.0  ;;  %vm4510_vm13 = vcmp.gt.f32.partialorder %v11902_v58, 20.0  ;;  %11908 = vst [vmem:[#allocation118_spill] sm:$0xff] %v9060_v54  ;;  %v11912_v17 = vld [vmem:[#allocation75_spill] sm:$0xff]  ;;  %v9090_v54 = vpop.f32.mrb[62].mxu0 }
 0x197   :  { %v4637_v0 = vsel %vm4509_vm12, %v11901_v10, %v4381_v1  ;;  %v2374_v32 = vrot.slane %v9045_v46, %v7796_v55  ;;  %v6125_v5 = vadd.f32 -1.0, %v3743_v16  ;;  %v9071_v10 = vadd.f32 %v8762_v13, %v8809_v22  ;;  %v11913_v16 = vld [vmem:[#allocation72_spill] sm:$0xff] }
 0x198   :  { %v2378_v42 = vrot.slane %v9037_v57, %v7796_v55  ;;  %v4772_v40 = vmul.f32 %v8586_v50, %v4637_v0  ;;  %v4638_v39 = vsel %vm4510_vm13, %v11902_v58, %v4382_v11  ;;  %v2093_v0 = vrot.slane %v8918_v56, %v7788_v45 }
 0x199   :  { %v9067_v36 = vpop.eup %6721  ;;  %11911 = vst [vmem:[#allocation119_spill] sm:$0xff] %v9071_v10  ;;  %v4773_v1 = vmul.f32 %v8586_v50, %v4638_v39  ;;  %v9075_v33 = vadd.f32 %v2374_v32, %v11912_v17  ;;  %6731 = vpow2.f32 %v3470_v2  ;;  %v6126_v58 = vadd.f32 -1.0, %v3744_v14  ;;  %v11915_v17 = vld [vmem:[#allocation78_spill] sm:$0xff]  ;;  %v11917_v14 = vld [vmem:[#allocation32_spill] sm:$0xff] }
 0x19a   :  { %v9065_v49 = vadd.f32 %v11909_v29, %v2378_v42  ;;  %11910 = vst [vmem:[#allocation71_spill] sm:$0xff] %v9067_v36  ;;  %4967 = vadd.xlane.f32.xlu1 %v4772_v40  ;;  %v3617_v11 = vadd.f32 1.0, %v11913_v16  ;;  %v2111_v29 = vcombine.high %v8987_v41, %v8987_v41  ;;  %6733 = vpow2.f32 %v3476_v30 }
 0x19b   :  { %v9082_v42 = vpop.eup %6723  ;;  %v3332_v22 = vmul.f32 1.442695, %v3183_v23  ;;  %4969 = vadd.xlane.f32.xlu0 %v4773_v1  ;;  %v2662_v39 = vrot.slane %v2093_v0, %v7796_v55  ;;  %v3547_v32 = vadd.f32 1.0, %v11915_v17  ;;  %v3330_v56 = vmul.f32 1.442695, %v3182_v25  ;;  %v11918_v23 = vld [vmem:[#allocation76_spill] sm:$0xff] }
 0x19c   :  { %11914 = vst [vmem:[#allocation75_spill] sm:$0xff] %v9082_v42  ;;  %v9086_v36 = vpop.eup %6725  ;;  %v3254_v2 = vmin.f32 %v9041_v62, 20.0  ;;  %v3999_v40 = vmul.f32 %v6125_v5, %v11917_v14  ;;  %v3745_v16 = vmul.f32 %v3617_v11, %v3617_v11  ;;  %v3480_v48 = vmul.f32 1.442695, %v3257_v53  ;;  %v11920_v5 = vld [vmem:[#allocation79_spill] sm:$0xff] }
 0x19d   :  { %11916 = vst [vmem:[#allocation72_spill] sm:$0xff] %v9086_v36  ;;  %v6728_v41 = vpop.eup %6727  ;;  %v3185_v30 = vmin.f32 %v9071_v10, 20.0  ;;  %v9094_v1 = vadd.f32 %v2662_v39, %v11918_v23  ;;  %v2674_v42 = vrot.slane %v2111_v29, %v7796_v55  ;;  %v4000_v36 = vmul.f32 %v6126_v58, %v11919_v3 }
 0x19e   :  { %v4383_v17 = vmul.f32 %v6728_v41, %v3999_v40  ;;  %v4129_v25 = vadd.f32 1.0, %v3745_v16  ;;  %v3675_v51 = vmul.f32 %v3547_v32, %v3547_v32  ;;  %6735 = vpow2.f32 %v3332_v22 }
 0x19f   :  { %v6730_v62 = vpop.eup %6729  ;;  %vm4511_vm14 = vcmp.gt.f32.partialorder %v11917_v14, 20.0  ;;  %v9100_v11 = vadd.f32 %v11920_v5, %v2674_v42  ;;  %v1670_v53 = vcombine.high %v9037_v57, %v9037_v57  ;;  %6737 = vpow2.f32 %v3330_v56 }
 0x1a0   :  { %v4639_v39 = vsel %vm4511_vm14, %v11917_v14, %v4383_v17  ;;  %v4384_v23 = vmul.f32 %v6730_v62, %v4000_v36  ;;  %v1668_v29 = vcombine.high %v9045_v46, %v9045_v46  ;;  %v3474_v58 = vmul.f32 1.442695, %v3254_v2 }
 0x1a1   :  { %6739 = vpow2.f32 %v3480_v48  ;;  %v4774_v32 = vmul.f32 %v8586_v50, %v4639_v39  ;;  %vm4512_vm15 = vcmp.gt.f32.partialorder %v11919_v3, 20.0  ;;  %v3336_v22 = vmul.f32 1.442695, %v3185_v30  ;;  %v11926_v30 = vld [vmem:[#allocation27_spill] sm:$0xff] }
 0x1a2   :  { %v4640_v42 = vsel %vm4512_vm15, %v11919_v3, %v4384_v23  ;;  %6741 = vrcp.f32 %v4129_v25  ;;  %v4059_v40 = vadd.f32 1.0, %v3675_v51  ;;  %v9112_v57 = vadd.f32 %v8762_v13, %v8845_v52 }
 0x1a3   :  { %v9116_v36 = vadd.f32 %v8762_v13, %v8855_v7  ;;  %4971 = vadd.xlane.f32.xlu1 %v4774_v32  ;;  %v4775_v62 = vmul.f32 %v8586_v50, %v4640_v42  ;;  %v2386_v46 = vrot.slane %v1670_v53, %v7796_v55  ;;  %v9120_v48 = vpop.eup %6731  ;;  %v2382_v3 = vrot.slane %v1668_v29, %v7796_v55  ;;  %v11929_v29 = vld [vmem:[#allocation30_spill] sm:$0xff] }
 0x1a4   :  { %11921 = vst [vmem:[#allocation78_spill] sm:$0xff] %v9112_v57  ;;  %11923 = vst [vmem:[#allocation76_spill] sm:$0xff] %v9120_v48  ;;  %6743 = vrcp.f32 %v4059_v40  ;;  %v2109_v56 = vcombine.high %v2093_v0, %v2093_v0  ;;  %v3619_v2 = vadd.f32 1.0, %v8457_v59  ;;  %v9124_v14 = vpop.eup %6733  ;;  %v9128_v52 = vrot.slane %v8775_v19, %v7788_v45  ;;  %v11927_v0 = vld [vmem:[#allocation80_spill] sm:$0xff]  ;;  %v11931_v40 = vld [vmem:[#allocation29_spill] sm:$0xff] }
 0x1a5   :  { %11922 = vst [vmem:[#allocation32_spill] sm:$0xff] %v9116_v36  ;;  %11924 = vst [vmem:[#allocation38_spill] sm:$0xff] %v9124_v14  ;;  %v11925_v7 = vcombine.high %v11883_v28, %v11883_v28  ;;  %6745 = vpow2.f32 %v3474_v58  ;;  %4973 = vadd.xlane.f32.xlu0 %v4775_v62  ;;  %v9137_v17 = vadd.f32 %v11926_v30, %v2386_v46  ;;  %v3184_v28 = vmin.f32 %v9112_v57, 20.0  ;;  %v9169_v30 = vpop.f32.mrb[63].mxu0 }
 0x1a6   :  { %v9140_v25 = vadd.f32 %v2382_v3, %v11927_v0  ;;  %v2670_v59 = vrot.slane %v2109_v56, %v7796_v55  ;;  %v3747_v5 = vmul.f32 %v3619_v2, %v3619_v2  ;;  %v11928_v53 = vcombine.high %v8943_v35, %v8943_v35 }
 0x1a7   :  { %v9134_v41 = vrot.slane %v11925_v7, %v7788_v45  ;;  %6747 = vpow2.f32 %v3336_v22  ;;  %v6127_v23 = vadd.f32 -1.0, %v3745_v16  ;;  %v3546_v58 = vadd.f32 1.0, %v11929_v29 }
 0x1a8   :  { %v9147_v39 = vrot.slane %v11928_v53, %v7788_v45  ;;  %v3256_v32 = vmin.f32 %v9116_v36, 20.0  ;;  %v9154_v42 = vadd.f32 %v8762_v13, %v8872_v44  ;;  %v9157_v62 = vadd.f32 %v2670_v59, %v11931_v40  ;;  %v9159_v3 = vpop.eup %6735  ;;  %v11937_v40 = vld [vmem:[#allocation36_spill] sm:$0xff] }
 0x1a9   :  { %v4131_v46 = vadd.f32 1.0, %v3747_v5  ;;  %11932 = vst [vmem:[#allocation27_spill] sm:$0xff] %v9159_v3  ;;  %v6057_v56 = vadd.f32 -1.0, %v3675_v51  ;;  %v3674_v2 = vmul.f32 %v3546_v58, %v3546_v58  ;;  %v11933_v16 = vcombine.high %v8775_v19, %v8775_v19  ;;  %v9171_v44 = vpop.eup %6737  ;;  %v9185_v19 = vpop.f32.mrb[63].mxu1  ;;  %v11938_v36 = vld [vmem:[#allocation84_spill] sm:$0xff] }
 0x1aa   :  { %11930 = vst [vmem:[#allocation79_spill] sm:$0xff] %v9154_v42  ;;  %v2682_v22 = vrot.slane %v9147_v39, %v7796_v55  ;;  %11934 = vst [vmem:[#allocation80_spill] sm:$0xff] %v9171_v44  ;;  %v11935_v0 = vcombine.high %v11810_v20, %v11810_v20  ;;  %v9183_v53 = vrot.slane %v8943_v35, %v7788_v45  ;;  %v3334_v58 = vmul.f32 1.442695, %v3184_v28 }
 0x1ab   :  { %v9167_v7 = vrot.slane %v11933_v16, %v7788_v45  ;;  %6749 = vrcp.f32 %v4131_v46  ;;  %11936 = vst [vmem:[#allocation30_spill] sm:$0xff] %v9185_v19  ;;  %v6740_v29 = vpop.eup %6739  ;;  %v4001_v16 = vmul.f32 %v6127_v23, %v11937_v40  ;;  %v4058_v20 = vadd.f32 1.0, %v3674_v2  ;;  %v9196_v46 = vpop.f32.mrb[64].mxu1 }
 0x1ac   :  { %v9177_v59 = vrot.slane %v11935_v0, %v7788_v45  ;;  %v9189_v10 = vadd.f32 %v11938_v36, %v2682_v22  ;;  %v6742_v0 = vpop.eup %6741  ;;  %v3478_v57 = vmul.f32 1.442695, %v3256_v32  ;;  %v3259_v44 = vmin.f32 %v9154_v42, 20.0  ;;  %11939 = vst [vmem:[#allocation29_spill] sm:$0xff] %v9196_v46  ;;  %v11942_v32 = vld [vmem:[#allocation45_spill] sm:$0xff] }
 0x1ad   :  { %v2394_v51 = vrot.slane %v9167_v7, %v7796_v55  ;;  %v2390_v35 = vrot.slane %v9128_v52, %v7796_v55  ;;  %v9200_v28 = vadd.f32 %v8762_v13, %v8899_v37  ;;  %v9204_v36 = vadd.f32 %v8762_v13, %v8902_v60 }
 0x1ae   :  { %v4385_v23 = vmul.f32 %v6742_v0, %v4001_v16  ;;  %v3931_v22 = vmul.f32 %v6057_v56, %v11942_v32  ;;  %v6744_v42 = vpop.eup %6743  ;;  %v3641_v3 = vadd.f32 1.0, %v6740_v29  ;;  %vm4513_vm0 = vcmp.gt.f32.partialorder %v11937_v40, 20.0  ;;  %v11947_v0 = vld [vmem:[#allocation53_spill] sm:$0xff] }
 0x1af   :  { %11940 = vst [vmem:[#allocation36_spill] sm:$0xff] %v9200_v28  ;;  %11941 = vst [vmem:[#allocation84_spill] sm:$0xff] %v9204_v36  ;;  %v9209_v14 = vadd.f32 %v8475_v12, %v2394_v51  ;;  %v9212_v48 = vadd.f32 %v2390_v35, %v8483_v6  ;;  %v9214_v46 = vpop.eup %6745  ;;  %v6129_v60 = vadd.f32 -1.0, %v3747_v5  ;;  %6751 = vrcp.f32 %v4058_v20  ;;  %v11946_v5 = vld [vmem:[#allocation82_spill] sm:$0xff] }
 0x1b0   :  { %11943 = vst [vmem:[#allocation45_spill] sm:$0xff] %v9214_v46  ;;  %v4641_v37 = vsel %vm4513_vm0, %v11937_v40, %v4385_v23  ;;  %v4315_v19 = vmul.f32 %v6744_v42, %v3931_v22  ;;  %6753 = vpow2.f32 %v3334_v58  ;;  %v9219_v56 = vadd.f32 %v8762_v13, %v8909_v27 }
 0x1b1   :  { %v4776_v29 = vmul.f32 %v8586_v50, %v4641_v37  ;;  %vm4443_vm1 = vcmp.gt.f32.partialorder %v11942_v32, 20.0  ;;  %v9223_v12 = vpop.eup %6747  ;;  %v3187_v6 = vmin.f32 %v9200_v28, 20.0  ;;  %v2678_v42 = vrot.slane %v9183_v53, %v7796_v55  ;;  %v11948_v37 = vld [vmem:[#allocation85_spill] sm:$0xff] }
 0x1b2   :  { %11944 = vst [vmem:[#allocation120_spill] sm:$0xff] %v9219_v56  ;;  %11945 = vst [vmem:[#allocation121_spill] sm:$0xff] %v9223_v12  ;;  %v4571_v51 = vsel %vm4443_vm1, %v11942_v32, %v4315_v19  ;;  %v3549_v40 = vadd.f32 1.0, %v11946_v5  ;;  %v9230_v58 = vmul.f32 %v3641_v3, %v3641_v3  ;;  %v3484_v16 = vmul.f32 1.442695, %v3259_v44 }
 0x1b3   :  { %v3186_v27 = vmin.f32 %v9204_v36, 20.0  ;;  %4975 = vadd.xlane.f32.xlu1 %v4776_v29  ;;  %v4706_v20 = vmul.f32 %v8586_v50, %v4571_v51  ;;  %v4003_v35 = vmul.f32 %v6129_v60, %v11947_v0  ;;  %v9236_v23 = vadd.f32 %v2678_v42, %v8485_v21  ;;  %v9250_v42 = vpop.f32.mrb[64].mxu0 }
 0x1b4   :  { %v3677_v22 = vmul.f32 %v3549_v40, %v3549_v40  ;;  %v2159_v19 = vcombine.high %v9147_v39, %v9147_v39  ;;  %6755 = vpow2.f32 %v3478_v57  ;;  %v3258_v3 = vmin.f32 %v9219_v56, 20.0 }
 0x1b5   :  { %v6750_v32 = vpop.eup %6749  ;;  %4835 = vadd.xlane.f32.xlu0 %v4706_v20  ;;  %v6056_v44 = vadd.f32 -1.0, %v3674_v2  ;;  %v3618_v5 = vadd.f32 1.0, %v11948_v37  ;;  %v3340_v29 = vmul.f32 1.442695, %v3187_v6  ;;  %v9244_v50 = vadd.f32 %v8762_v13, %v8962_v18  ;;  %v9254_v18 = vpop.f32.mrb[65].mxu0 }
 0x1b6   :  { %v4387_v60 = vmul.f32 %v6750_v32, %v4003_v35  ;;  %v4061_v21 = vadd.f32 1.0, %v3677_v22  ;;  %vm4515_vm2 = vcmp.gt.f32.partialorder %v11947_v0, 20.0  ;;  %v2690_v51 = vrot.slane %v2159_v19, %v7796_v55  ;;  %v9259_v20 = vld [vmem:[%s11410_s5] ss:$0 sm:$0xff]  ;;  %v11950_v19 = vld [vmem:[#allocation46_spill] sm:$0xff]  ;;  %v9266_v37 = vpop.f32.mrb[65].mxu1 }
 0x1b7   :  { %11949 = vst [vmem:[#allocation82_spill] sm:$0xff] %v9244_v50  ;;  %v3746_v39 = vmul.f32 %v3618_v5, %v3618_v5  ;;  %v1718_v57 = vcombine.high %v9167_v7, %v9167_v7  ;;  %v4153_v2 = vadd.f32 1.0, %v9230_v58  ;;  %6757 = vpow2.f32 %v3484_v16  ;;  %v9328_v36 = vpop.f32.mrb[66].mxu0 }
 0x1b8   :  { %v3338_v6 = vmul.f32 1.442695, %v3186_v27  ;;  %v4643_v40 = vsel %vm4515_vm2, %v11947_v0, %v4387_v60  ;;  %v3930_v32 = vmul.f32 %v6056_v44, %v11950_v19  ;;  %6759 = vrcp.f32 %v4061_v21 }
 0x1b9   :  { %v4778_v35 = vmul.f32 %v9259_v20, %v4643_v40  ;;  %v9264_v7 = vadd.f32 %v8527_v38, %v2690_v51  ;;  %v6752_v16 = vpop.eup %6751  ;;  %v3482_v27 = vmul.f32 1.442695, %v3258_v3  ;;  %v4130_v0 = vadd.f32 1.0, %v3746_v39 }
 0x1ba   :  { %v2402_v5 = vrot.slane %v1718_v57, %v7796_v55  ;;  %v1716_v60 = vcombine.high %v9128_v52, %v9128_v52  ;;  %v9271_v56 = vpop.eup %6753  ;;  %6761 = vpow2.f32 %v3340_v29  ;;  %v3261_v40 = vmin.f32 %v9244_v50, 20.0 }
 0x1bb   :  { %11951 = vst [vmem:[#allocation53_spill] sm:$0xff] %v9271_v56  ;;  %4979 = vadd.xlane.f32.xlu1 %v4778_v35  ;;  %v4314_v44 = vmul.f32 %v6752_v16, %v3930_v32  ;;  %v2157_v38 = vcombine.high %v9183_v53, %v9183_v53  ;;  %vm4442_vm3 = vcmp.gt.f32.partialorder %v11950_v19, 20.0  ;;  %v3621_v51 = vadd.f32 1.0, %v8492_v31  ;;  %v11953_v32 = vld [vmem:[#allocation96_spill] sm:$0xff]  ;;  %v11968_v56 = vld [vmem:[#allocation41_spill] sm:$0xff] }
 0x1bc   :  { %v9278_v3 = vadd.f32 %v8565_v47, %v2402_v5  ;;  %v2398_v21 = vrot.slane %v1716_v60, %v7796_v55  ;;  %v9284_v52 = vadd.f32 %v8762_v13, %v8993_v24  ;;  %6763 = vrcp.f32 %v4130_v0  ;;  %v9292_v5 = vpop.f32.mrb[66].mxu1  ;;  %v11956_v24 = vld [vmem:[#allocation14_spill] sm:$0xff] }
 0x1bd   :  { %v4570_v29 = vsel %vm4442_vm3, %v11950_v19, %v4314_v44  ;;  %v2686_v57 = vrot.slane %v2157_v38, %v7796_v55  ;;  %v6059_v35 = vadd.f32 -1.0, %v3677_v22  ;;  %v3749_v47 = vmul.f32 %v3621_v51, %v3621_v51  ;;  %v11958_v51 = vld [vmem:[#allocation34_spill] sm:$0xff] }
 0x1be   :  { %11952 = vst [vmem:[#allocation85_spill] sm:$0xff] %v9284_v52  ;;  %v4705_v53 = vmul.f32 %v9259_v20, %v4570_v29  ;;  %v9290_v16 = vadd.f32 %v2398_v21, %v11953_v32  ;;  %v9294_v60 = vpop.eup %6755  ;;  %6765 = vrcp.f32 %v4153_v2  ;;  %v9298_v31 = vadd.f32 %v8762_v13, %v8996_v26  ;;  %v11960_v32 = vld [vmem:[#allocation94_spill] sm:$0xff] }
 0x1bf   :  { %11954 = vst [vmem:[#allocation46_spill] sm:$0xff] %v9294_v60  ;;  %v9301_v19 = vadd.f32 %v2686_v57, %v11956_v24  ;;  %v11957_v22 = vcombine.high %v9134_v41, %v9134_v41  ;;  %v1687_v44 = vcombine.high %v9177_v59, %v9177_v59  ;;  %6767 = vpow2.f32 %v3338_v6  ;;  %v11964_v60 = vld [vmem:[#allocation13_spill] sm:$0xff] }
 0x1c0   :  { %11955 = vst [vmem:[#allocation96_spill] sm:$0xff] %v9298_v31  ;;  %v3488_v38 = vmul.f32 1.442695, %v3261_v40  ;;  %4833 = vadd.xlane.f32.xlu0 %v4705_v53  ;;  %v4133_v2 = vadd.f32 1.0, %v3749_v47  ;;  %6769 = vpow2.f32 %v3482_v27  ;;  %v3189_v26 = vmin.f32 %v9284_v52, 20.0  ;;  %v11963_v53 = vld [vmem:[#allocation39_spill] sm:$0xff] }
 0x1c1   :  { %v9307_v0 = vrot.slane %v11957_v22, %v7788_v45  ;;  %v3620_v29 = vadd.f32 1.0, %v11958_v51  ;;  %v9315_v57 = vpop.eup %6757  ;;  %v11961_v22 = vld [vmem:[#allocation47_spill] sm:$0xff]  ;;  %v6128_v28 = vadd.f32 -1.0, %v3746_v39  ;;  %v3188_v40 = vmin.f32 %v9298_v31, 20.0 }
 0x1c2   :  { %11959 = vst [vmem:[#allocation14_spill] sm:$0xff] %v9315_v57  ;;  %v3933_v50 = vmul.f32 %v6059_v35, %v11961_v22  ;;  %6771 = vrcp.f32 %v4133_v2  ;;  %v6760_v6 = vpop.eup %6759  ;;  %v9323_v27 = vadd.f32 %v8762_v13, %v9013_v15  ;;  %v9332_v24 = vrot.slane %v11964_v60, %v7788_v45 }
 0x1c3   :  { %v2698_v21 = vrot.slane %v9307_v0, %v7796_v55  ;;  %v3748_v51 = vmul.f32 %v3620_v29, %v3620_v29  ;;  %6773 = vpow2.f32 %v3488_v38  ;;  %v9335_v35 = vrot.slane %v1687_v44, %v7788_v45 }
 0x1c4   :  { %11962 = vst [vmem:[#allocation34_spill] sm:$0xff] %v9323_v27  ;;  %v4317_v39 = vmul.f32 %v6760_v6, %v3933_v50  ;;  %v9337_v2 = vpop.eup %6761  ;;  %v3344_v31 = vmul.f32 1.442695, %v3189_v26  ;;  %v9341_v15 = vadd.f32 %v8762_v13, %v9018_v34  ;;  %vm4445_vm4 = vcmp.gt.f32.partialorder %v11961_v22, 20.0 }
 0x1c5   :  { %v9326_v52 = vadd.f32 %v11963_v53, %v2698_v21  ;;  %11965 = vst [vmem:[#allocation94_spill] sm:$0xff] %v9337_v2  ;;  %v4132_v21 = vadd.f32 1.0, %v3748_v51  ;;  %v11967_v53 = vld [vmem:[#allocation54_spill] sm:$0xff]  ;;  %v2410_v50 = vrot.slane %v9335_v35, %v7796_v55  ;;  %v9350_v44 = vrot.slane %v9177_v59, %v7788_v45 }
 0x1c6   :  { %11966 = vst [vmem:[#allocation47_spill] sm:$0xff] %v9341_v15  ;;  %v4573_v29 = vsel %vm4445_vm4, %v11961_v22, %v4317_v39  ;;  %v4002_v57 = vmul.f32 %v6128_v28, %v11967_v53  ;;  %v6764_v38 = vpop.eup %6763  ;;  %v3342_v26 = vmul.f32 1.442695, %v3188_v40  ;;  %v3260_v6 = vmin.f32 %v9323_v27, 20.0 }
 0x1c7   :  { %v4708_v34 = vmul.f32 %v9259_v20, %v4573_v29  ;;  %v6131_v2 = vadd.f32 -1.0, %v3749_v47  ;;  %6775 = vrcp.f32 %v4132_v21  ;;  %v9355_v22 = vadd.f32 %v11968_v56, %v2410_v50  ;;  %v11970_v47 = vld [vmem:[#allocation87_spill] sm:$0xff] }
 0x1c8   :  { %v4386_v12 = vmul.f32 %v6764_v38, %v4002_v57  ;;  %v2406_v28 = vrot.slane %v9350_v44, %v7796_v55  ;;  %v9359_v39 = vpop.eup %6765  ;;  %v3263_v59 = vmin.f32 %v9341_v15, 20.0  ;;  %vm4514_vm5 = vcmp.gt.f32.partialorder %v11967_v53, 20.0 }
 0x1c9   :  { %11969 = vst [vmem:[#allocation39_spill] sm:$0xff] %v9359_v39  ;;  %4839 = vadd.xlane.f32.xlu1 %v4708_v34  ;;  %v9365_v40 = vrot.slane %v9134_v41, %v7788_v45  ;;  %v3548_v57 = vadd.f32 1.0, %v11970_v47  ;;  %v9368_v21 = vpop.eup %6767  ;;  %6777 = vpow2.f32 %v3344_v31  ;;  %v2160_v50 = vcombine.high %v9307_v0, %v9307_v0  ;;  %v11973_v39 = vld [vmem:[#allocation62_spill] sm:$0xff] }
 0x1ca   :  { %11971 = vst [vmem:[#allocation13_spill] sm:$0xff] %v9368_v21  ;;  %v4642_v56 = vsel %vm4514_vm5, %v11967_v53, %v4386_v12  ;;  %v9372_v29 = vadd.f32 %v2406_v28, %v8652_v43  ;;  %v9376_v38 = vpop.eup %6769  ;;  %v4005_v41 = vmul.f32 %v6131_v2, %v11973_v39  ;;  %v3486_v31 = vmul.f32 1.442695, %v3260_v6  ;;  %v11975_v53 = vld [vmem:[#allocation91_spill] sm:$0xff]  ;;  %v9388_v28 = vpop.f32.mrb[67].mxu0 }
 0x1cb   :  { %11972 = vst [vmem:[#allocation54_spill] sm:$0xff] %v9376_v38  ;;  %v4777_v34 = vmul.f32 %v9259_v20, %v4642_v56  ;;  %v2694_v47 = vrot.slane %v9365_v40, %v7796_v55  ;;  %v3676_v15 = vmul.f32 %v3548_v57, %v3548_v57  ;;  %v9384_v12 = vadd.f32 %v8762_v13, %v9065_v49  ;;  %v9393_v57 = vpop.f32.mrb[67].mxu1 }
 0x1cc   :  { %v6772_v27 = vpop.eup %6771  ;;  %v2706_v43 = vrot.slane %v2160_v50, %v7796_v55  ;;  %v3550_v0 = vadd.f32 1.0, %v11975_v53  ;;  %v6130_v38 = vadd.f32 -1.0, %v3748_v51  ;;  %v9399_v49 = vadd.f32 %v8762_v13, %v9075_v33  ;;  %v11978_v50 = vld [vmem:[#allocation42_spill] sm:$0xff] }
 0x1cd   :  { %11974 = vst [vmem:[#allocation41_spill] sm:$0xff] %v9384_v12  ;;  %4977 = vadd.xlane.f32.xlu0 %v4777_v34  ;;  %v4389_v56 = vmul.f32 %v6772_v27, %v4005_v41  ;;  %v9391_v2 = vadd.f32 %v2694_v47, %v8647_v63  ;;  %v4060_v21 = vadd.f32 1.0, %v3676_v15  ;;  %v9395_v6 = vpop.eup %6773  ;;  %vm4517_vm6 = vcmp.gt.f32.partialorder %v11973_v39, 20.0 }
 0x1ce   :  { %11976 = vst [vmem:[#allocation87_spill] sm:$0xff] %v9395_v6  ;;  %11977 = vst [vmem:[#allocation62_spill] sm:$0xff] %v9399_v49  ;;  %v9403_v53 = vadd.f32 %v11978_v50, %v2706_v43  ;;  %v3678_v34 = vmul.f32 %v3550_v0, %v3550_v0  ;;  %v9407_v27 = vrot.slane %v11960_v32, %v7788_v45  ;;  %v3492_v47 = vmul.f32 1.442695, %v3263_v59  ;;  %v11979_v0 = vld [vmem:[#allocation67_spill] sm:$0xff] }
 0x1cf   :  { %v4645_v51 = vsel %vm4517_vm6, %v11973_v39, %v4389_v56  ;;  %6779 = vrcp.f32 %v4060_v21  ;;  %v2176_v13 = vcombine.high %v9332_v24, %v9332_v24  ;;  %v9416_v33 = vrot.slane %v9332_v24, %v7788_v45  ;;  %v9431_v59 = vld [vmem:[%s11409_s4] ss:$0 sm:$0xff] }
 0x1d0   :  { %6781 = vpow2.f32 %v3342_v26  ;;  %v4780_v41 = vmul.f32 %v9259_v20, %v4645_v51  ;;  %v3191_v43 = vmin.f32 %v9384_v12, 20.0  ;;  %v4004_v50 = vmul.f32 %v6130_v38, %v11979_v0  ;;  %v9426_v26 = vpop.f32.mrb[68].mxu1 }
 0x1d1   :  { %v4062_v6 = vadd.f32 1.0, %v3678_v34  ;;  %v6776_v63 = vpop.eup %6775  ;;  %6783 = vpow2.f32 %v3486_v31  ;;  %v3190_v39 = vmin.f32 %v9399_v49, 20.0  ;;  %v1719_v21 = vcombine.high %v9335_v35, %v9335_v35  ;;  %11980 = vst [vmem:[#allocation91_spill] sm:$0xff] %v9426_v26 }
 0x1d2   :  { %4983 = vadd.xlane.f32.xlu1 %v4780_v41  ;;  %v1717_v24 = vcombine.high %v9350_v44, %v9350_v44  ;;  %v9435_v38 = vadd.f32 %v9431_v59, %v9094_v1  ;;  %v4388_v31 = vmul.f32 %v6776_v63, %v4004_v50  ;;  %vm4516_vm7 = vcmp.gt.f32.partialorder %v11979_v0, 20.0  ;;  %v11983_v1 = vld [vmem:[#allocation33_spill] sm:$0xff] }
 0x1d3   :  { %6785 = vrcp.f32 %v4062_v6  ;;  %v9438_v56 = vpop.eup %6777  ;;  %v6058_v35 = vadd.f32 -1.0, %v3676_v15  ;;  %v2418_v44 = vrot.slane %v1719_v21, %v7796_v55  ;;  %v2158_v41 = vcombine.high %v9365_v40, %v9365_v40  ;;  %v11985_v15 = vld [vmem:[#allocation18_spill] sm:$0xff]  ;;  %v11986_v21 = vld [vmem:[#allocation48_spill] sm:$0xff] }
 0x1d4   :  { %11981 = vst [vmem:[#allocation42_spill] sm:$0xff] %v9435_v38  ;;  %11982 = vst [vmem:[#allocation67_spill] sm:$0xff] %v9438_v56  ;;  %v2414_v51 = vrot.slane %v1717_v24, %v7796_v55  ;;  %6787 = vpow2.f32 %v3492_v47  ;;  %v3348_v49 = vmul.f32 1.442695, %v3191_v43  ;;  %v4644_v12 = vsel %vm4516_vm7, %v11979_v0, %v4388_v31  ;;  %v9457_v56 = vpop.f32.mrb[68].mxu0  ;;  %v11987_v0 = vld [vmem:[#allocation95_spill] sm:$0xff] }
 0x1d5   :  { %v3551_v46 = vadd.f32 1.0, %v11983_v1  ;;  %v9448_v63 = vadd.f32 %v9431_v59, %v9100_v11  ;;  %v4779_v6 = vmul.f32 %v9259_v20, %v4644_v12  ;;  %v9452_v50 = vadd.f32 %v11985_v15, %v2418_v44  ;;  %v11988_v12 = vld [vmem:[#allocation55_spill] sm:$0xff] }
 0x1d6   :  { %v9455_v24 = vadd.f32 %v2414_v51, %v11986_v21  ;;  %v2702_v40 = vrot.slane %v2158_v41, %v7796_v55  ;;  %v9461_v43 = vrot.slane %v2176_v13, %v7788_v45  ;;  %v3622_v31 = vadd.f32 1.0, %v11987_v0  ;;  %v11990_v21 = vld [vmem:[#allocation22_spill] sm:$0xff] }
 0x1d7   :  { %11984 = vst [vmem:[#allocation33_spill] sm:$0xff] %v9448_v63  ;;  %v3679_v47 = vmul.f32 %v3551_v46, %v3551_v46  ;;  %v3346_v11 = vmul.f32 1.442695, %v3190_v39  ;;  %v3262_v1 = vmin.f32 %v9435_v38, 20.0  ;;  %4981 = vadd.xlane.f32.xlu0 %v4779_v6  ;;  %v3932_v44 = vmul.f32 %v6058_v35, %v11988_v12 }
 0x1d8   :  { %v6060_v15 = vadd.f32 -1.0, %v3678_v34  ;;  %v9468_v51 = vadd.f32 %v9431_v59, %v9137_v17  ;;  %v9471_v41 = vadd.f32 %v2702_v40, %v11990_v21  ;;  %v2714_v13 = vrot.slane %v9461_v43, %v7796_v55  ;;  %v9492_v21 = vpop.f32.mrb[69].mxu0 }
 0x1d9   :  { %v6780_v26 = vpop.eup %6779  ;;  %v4063_v46 = vadd.f32 1.0, %v3679_v47  ;;  %v3265_v39 = vmin.f32 %v9448_v63, 20.0  ;;  %v3750_v38 = vmul.f32 %v3622_v31, %v3622_v31  ;;  %v11992_v34 = vcombine.high %v11960_v32, %v11960_v32  ;;  %11994 = vst [vmem:[#allocation55_spill] sm:$0xff] %v9492_v21 }
 0x1da   :  { %11989 = vst [vmem:[#allocation18_spill] sm:$0xff] %v9468_v51  ;;  %v9475_v0 = vpop.eup %6781  ;;  %v4316_v6 = vmul.f32 %v6780_v26, %v3932_v44  ;;  %v9486_v17 = vadd.f32 %v9431_v59, %v9140_v25  ;;  %vm4444_vm8 = vcmp.gt.f32.partialorder %v11988_v12, 20.0  ;;  %v9490_v40 = vadd.f32 %v8811_v9, %v2714_v13  ;;  %v11996_v44 = vld [vmem:[#allocation69_spill] sm:$0xff] }
 0x1db   :  { %11991 = vst [vmem:[#allocation48_spill] sm:$0xff] %v9475_v0  ;;  %v9482_v35 = vrot.slane %v11992_v34, %v7788_v45  ;;  %6789 = vrcp.f32 %v4063_v46  ;;  %v9494_v26 = vpop.eup %6783  ;;  %v3490_v31 = vmul.f32 1.442695, %v3262_v1  ;;  %v3934_v34 = vmul.f32 %v6060_v15, %v11996_v44 }
 0x1dc   :  { %11993 = vst [vmem:[#allocation95_spill] sm:$0xff] %v9486_v17  ;;  %11995 = vst [vmem:[#allocation22_spill] sm:$0xff] %v9494_v26  ;;  %6791 = vpow2.f32 %v3348_v49  ;;  %v4572_v32 = vsel %vm4444_vm8, %v11988_v12, %v4316_v6  ;;  %v3193_v25 = vmin.f32 %v9468_v51, 20.0  ;;  %v9501_v0 = vadd.f32 %v9431_v59, %v9157_v62  ;;  %v9512_v6 = vpop.f32.mrb[69].mxu1 }
 0x1dd   :  { %v6786_v63 = vpop.eup %6785  ;;  %v4707_v9 = vmul.f32 %v9259_v20, %v4572_v32  ;;  %v4134_v46 = vadd.f32 1.0, %v3750_v38  ;;  %6793 = vpow2.f32 %v3346_v11  ;;  %v3496_v13 = vmul.f32 1.442695, %v3265_v39  ;;  %11999 = vst [vmem:[#allocation123_spill] sm:$0xff] %v9512_v6  ;;  %v9558_v6 = vpop.f32.mrb[70].mxu0 }
 0x1de   :  { %11997 = vst [vmem:[#allocation69_spill] sm:$0xff] %v9501_v0  ;;  %v4318_v21 = vmul.f32 %v6786_v63, %v3934_v34  ;;  %v2426_v49 = vrot.slane %v9482_v35, %v7796_v55  ;;  %v9506_v1 = vpop.eup %6787  ;;  %v3192_v12 = vmin.f32 %v9486_v17, 20.0  ;;  %vm4446_vm9 = vcmp.gt.f32.partialorder %v11996_v44, 20.0  ;;  %v12000_v63 = vld [vmem:[#allocation108_spill] sm:$0xff]  ;;  %v9520_v34 = vpop.f32.mrb[70].mxu1 }
 0x1df   :  { %11998 = vst [vmem:[#allocation122_spill] sm:$0xff] %v9506_v1  ;;  %4837 = vadd.xlane.f32.xlu1 %v4707_v9  ;;  %v6061_v15 = vadd.f32 -1.0, %v3679_v47  ;;  %v2422_v62 = vrot.slane %v9407_v27, %v7796_v55  ;;  %6795 = vrcp.f32 %v4134_v46  ;;  %v2710_v32 = vrot.slane %v9416_v33, %v7796_v55  ;;  %12001 = vst [vmem:[#allocation108_spill] sm:$0xff] %v9520_v34  ;;  %v12004_v46 = vld [vmem:[#allocation111_spill] sm:$0xff] }
 0x1e0   :  { %v4574_v11 = vsel %vm4446_vm9, %v11996_v44, %v4318_v21  ;;  %v9516_v39 = vadd.f32 %v12000_v63, %v2426_v49  ;;  %6797 = vpow2.f32 %v3490_v31  ;;  %v3352_v9 = vmul.f32 1.442695, %v3193_v25  ;;  %v12003_v21 = vld [vmem:[#allocation110_spill] sm:$0xff]  ;;  %v12005_v63 = vld [vmem:[#allocation93_spill] sm:$0xff] }
 0x1e1   :  { %v3264_v47 = vmin.f32 %v9501_v0, 20.0  ;;  %v4709_v17 = vmul.f32 %v9259_v20, %v4574_v11  ;;  %v9526_v51 = vadd.f32 %v9431_v59, %v9189_v10  ;;  %v9529_v44 = vadd.f32 %v2422_v62, %v12003_v21  ;;  %v12007_v10 = vld [vmem:[#allocation65_spill] sm:$0xff]  ;;  %v12008_v21 = vld [vmem:[#allocation6_spill] sm:$0xff] }
 0x1e2   :  { %v9532_v49 = vadd.f32 %v2710_v32, %v12004_v46  ;;  %v3623_v1 = vadd.f32 1.0, %v12005_v63  ;;  %6799 = vpow2.f32 %v3496_v13  ;;  %v2208_v31 = vcombine.high %v9461_v43, %v9461_v43  ;;  %v12012_v63 = vld [vmem:[#allocation37_spill] sm:$0xff] }
 0x1e3   :  { %12002 = vst [vmem:[#allocation124_spill] sm:$0xff] %v9526_v51  ;;  %4841 = vadd.xlane.f32.xlu0 %v4709_v17  ;;  %v3350_v25 = vmul.f32 1.442695, %v3192_v12  ;;  %v9539_v11 = vadd.f32 %v9431_v59, %v9209_v14  ;;  %v3935_v0 = vmul.f32 %v6061_v15, %v12007_v10  ;;  %v12009_v32 = vcombine.high %v12008_v21, %v12008_v21 }
 0x1e4   :  { %v3751_v26 = vmul.f32 %v3623_v1, %v3623_v1  ;;  %v12010_v17 = vcombine.high %v11964_v60, %v11964_v60  ;;  %6801 = vpow2.f32 %v3352_v9  ;;  %v6132_v13 = vadd.f32 -1.0, %v3750_v38 }
 0x1e5   :  { %12006 = vst [vmem:[#allocation110_spill] sm:$0xff] %v9539_v11  ;;  %v6790_v62 = vpop.eup %6789  ;;  %v9546_v46 = vrot.slane %v12009_v32, %v7788_v45  ;;  %v3494_v12 = vmul.f32 1.442695, %v3264_v47  ;;  %v3267_v1 = vmin.f32 %v9526_v51, 20.0  ;;  %v3552_v34 = vadd.f32 1.0, %v12012_v63  ;;  %v12017_v63 = vld [vmem:[#allocation113_spill] sm:$0xff] }
 0x1e6   :  { %v9552_v43 = vrot.slane %v12010_v17, %v7788_v45  ;;  %v9554_v14 = vpop.eup %6791  ;;  %v4319_v15 = vmul.f32 %v6790_v62, %v3935_v0  ;;  %v9562_v21 = vadd.f32 %v9431_v59, %v9212_v48  ;;  %vm4447_vm10 = vcmp.gt.f32.partialorder %v12007_v10, 20.0  ;;  %v12016_v48 = vld [vmem:[#allocation73_spill] sm:$0xff] }
 0x1e7   :  { %12011 = vst [vmem:[#allocation111_spill] sm:$0xff] %v9554_v14  ;;  %v4135_v60 = vadd.f32 1.0, %v3751_v26  ;;  %v2722_v9 = vrot.slane %v2208_v31, %v7796_v55  ;;  %v9566_v38 = vpop.eup %6793  ;;  %6803 = vpow2.f32 %v3350_v25  ;;  %v3195_v47 = vmin.f32 %v9539_v11, 20.0 }
 0x1e8   :  { %12013 = vst [vmem:[#allocation93_spill] sm:$0xff] %v9562_v21  ;;  %12014 = vst [vmem:[#allocation65_spill] sm:$0xff] %v9566_v38  ;;  %v9571_v0 = vadd.f32 %v9431_v59, %v9236_v23  ;;  %v4575_v62 = vsel %vm4447_vm10, %v12007_v10, %v4319_v15  ;;  %v4006_v17 = vmul.f32 %v6132_v13, %v12016_v48  ;;  %v3500_v10 = vmul.f32 1.442695, %v3267_v1 }
 0x1e9   :  { %v4710_v32 = vmul.f32 %v9259_v20, %v4575_v62  ;;  %6805 = vrcp.f32 %v4135_v60  ;;  %v9577_v51 = vadd.f32 %v12017_v63, %v2722_v9  ;;  %v6796_v31 = vpop.eup %6795  ;;  %v2177_v25 = vcombine.high %v9552_v43, %v9552_v43 }
 0x1ea   :  { %12015 = vst [vmem:[#allocation6_spill] sm:$0xff] %v9571_v0  ;;  %6807 = vpow2.f32 %v3494_v12  ;;  %v3680_v11 = vmul.f32 %v3552_v34, %v3552_v34  ;;  %v1767_v23 = vcombine.high %v9482_v35, %v9482_v35  ;;  %v9583_v38 = vpop.eup %6797  ;;  %v3194_v15 = vmin.f32 %v9562_v21, 20.0 }
 0x1eb   :  { %12018 = vst [vmem:[#allocation37_spill] sm:$0xff] %v9583_v38  ;;  %4843 = vadd.xlane.f32.xlu1 %v4710_v32  ;;  %v4390_v13 = vmul.f32 %v6796_v31, %v4006_v17  ;;  %v1765_v60 = vcombine.high %v9407_v27, %v9407_v27  ;;  %v3356_v9 = vmul.f32 1.442695, %v3195_v47  ;;  %v3266_v62 = vmin.f32 %v9571_v0, 20.0 }
 0x1ec   :  { %vm4518_vm11 = vcmp.gt.f32.partialorder %v12016_v48, 20.0  ;;  %v4064_v12 = vadd.f32 1.0, %v3680_v11  ;;  %v9590_v34 = vpop.eup %6799  ;;  %v2434_v63 = vrot.slane %v1767_v23, %v7796_v55  ;;  %v2206_v32 = vcombine.high %v9416_v33, %v9416_v33 }
 0x1ed   :  { %12019 = vst [vmem:[#allocation73_spill] sm:$0xff] %v9590_v34  ;;  %v4646_v35 = vsel %vm4518_vm11, %v12016_v48, %v4390_v13  ;;  %v2430_v1 = vrot.slane %v1765_v60, %v7796_v55  ;;  %v9599_v27 = vadd.f32 %v9431_v59, %v9264_v7  ;;  %v6133_v17 = vadd.f32 -1.0, %v3751_v26  ;;  %v12023_v26 = vld [vmem:[#allocation97_spill] sm:$0xff]  ;;  %v12027_v34 = vld [vmem:[#allocation102_spill] sm:$0xff] }
 0x1ee   :  { %v4781_v47 = vmul.f32 %v9259_v20, %v4646_v35  ;;  %6809 = vrcp.f32 %v4064_v12  ;;  %v9602_v31 = vpop.eup %6801  ;;  %v9606_v48 = vadd.f32 %v9431_v59, %v9278_v3  ;;  %v9609_v23 = vadd.f32 %v8921_v4, %v2434_v63  ;;  %v12024_v12 = vld [vmem:[#allocation8_spill] sm:$0xff] }
 0x1ef   :  { %12020 = vst [vmem:[#allocation113_spill] sm:$0xff] %v9599_v27  ;;  %12021 = vst [vmem:[#allocation125_spill] sm:$0xff] %v9602_v31  ;;  %v9612_v13 = vadd.f32 %v2430_v1, %v8924_v61  ;;  %v2718_v33 = vrot.slane %v2206_v32, %v7796_v55  ;;  %v1736_v7 = vcombine.high %v9546_v46, %v9546_v46  ;;  %6811 = vpow2.f32 %v3500_v10  ;;  %v12026_v1 = vld [vmem:[#allocation70_spill] sm:$0xff]  ;;  %v9629_v10 = vpop.f32.mrb[71].mxu0 }
 0x1f0   :  { %12022 = vst [vmem:[#allocation126_spill] sm:$0xff] %v9606_v48  ;;  %4985 = vadd.xlane.f32.xlu0 %v4781_v47  ;;  %v3553_v60 = vadd.f32 1.0, %v12023_v26  ;;  %v1769_v35 = vcombine.high %v12024_v12, %v12024_v12  ;;  %6813 = vpow2.f32 %v3356_v9  ;;  %v3354_v3 = vmul.f32 1.442695, %v3194_v15 }
 0x1f1   :  { %v9621_v4 = vadd.f32 %v2718_v33, %v8954_v8  ;;  %v9623_v63 = vpop.eup %6803  ;;  %v3498_v61 = vmul.f32 1.442695, %v3266_v62  ;;  %v4007_v32 = vmul.f32 %v6133_v17, %v12026_v1  ;;  %v9627_v0 = vrot.slane %v2177_v25, %v7788_v45  ;;  %v9634_v33 = vpop.f32.mrb[71].mxu1 }
 0x1f2   :  { %12025 = vst [vmem:[#allocation97_spill] sm:$0xff] %v9623_v63  ;;  %v3681_v21 = vmul.f32 %v3553_v60, %v3553_v60  ;;  %v3269_v26 = vmin.f32 %v9599_v27, 20.0  ;;  %v3197_v9 = vmin.f32 %v9606_v48, 20.0  ;;  %v6062_v15 = vadd.f32 -1.0, %v3680_v11  ;;  %12028 = vst [vmem:[#allocation8_spill] sm:$0xff] %v9634_v33 }
 0x1f3   :  { %v6806_v47 = vpop.eup %6805  ;;  %v3624_v8 = vadd.f32 1.0, %v12027_v34  ;;  %v9640_v62 = vadd.f32 %v9431_v59, %v9403_v53  ;;  %v2730_v60 = vrot.slane %v9627_v0, %v7796_v55  ;;  %6815 = vpow2.f32 %v3354_v3 }
 0x1f4   :  { %v9636_v63 = vpop.eup %6807  ;;  %v4391_v25 = vmul.f32 %v6806_v47, %v4007_v32  ;;  %v4065_v17 = vadd.f32 1.0, %v3681_v21  ;;  %v9646_v27 = vadd.f32 %v9431_v59, %v9290_v16  ;;  %vm4519_vm12 = vcmp.gt.f32.partialorder %v12026_v1, 20.0  ;;  %v12032_v32 = vld [vmem:[#allocation63_spill] sm:$0xff] }
 0x1f5   :  { %12029 = vst [vmem:[#allocation70_spill] sm:$0xff] %v9636_v63  ;;  %12030 = vst [vmem:[#allocation102_spill] sm:$0xff] %v9640_v62  ;;  %v3752_v11 = vmul.f32 %v3624_v8, %v3624_v8  ;;  %v9651_v34 = vrot.slane %v12024_v12, %v7788_v45  ;;  %v9655_v47 = vadd.f32 %v12032_v32, %v2730_v60  ;;  %v3504_v48 = vmul.f32 1.442695, %v3269_v26  ;;  %v12033_v63 = vld [vmem:[#allocation9_spill] sm:$0xff]  ;;  %v12038_v60 = vld [vmem:[#allocation99_spill] sm:$0xff] }
 0x1f6   :  { %12031 = vst [vmem:[#allocation127_spill] sm:$0xff] %v9646_v27  ;;  %v4647_v53 = vsel %vm4519_vm12, %v12026_v1, %v4391_v25  ;;  %6817 = vrcp.f32 %v4065_v17  ;;  %v3936_v16 = vmul.f32 %v6062_v15, %v12033_v63  ;;  %v3360_v38 = vmul.f32 1.442695, %v3197_v9 }
 0x1f7   :  { %6819 = vpow2.f32 %v3498_v61  ;;  %v4782_v3 = vmul.f32 %v9259_v20, %v4647_v53  ;;  %v9661_v8 = vadd.f32 %v9431_v59, %v9301_v19  ;;  %v3273_v12 = vmin.f32 %v9640_v62, 20.0  ;;  %v12042_v62 = vld [vmem:[#allocation77_spill] sm:$0xff] }
 0x1f8   :  { %v6810_v31 = vpop.eup %6809  ;;  %v4136_v14 = vadd.f32 1.0, %v3752_v11  ;;  %v3196_v1 = vmin.f32 %v9646_v27, 20.0  ;;  %v9667_v25 = vadd.f32 %v9431_v59, %v9326_v52  ;;  %v9670_v26 = vrot.slane %v1736_v7, %v7788_v45 }
 0x1f9   :  { %12034 = vst [vmem:[#allocation63_spill] sm:$0xff] %v9661_v8  ;;  %4987 = vadd.xlane.f32.xlu1 %v4782_v3  ;;  %v4320_v61 = vmul.f32 %v6810_v31, %v3936_v16  ;;  %v9672_v15 = vpop.eup %6811  ;;  %vm4448_vm13 = vcmp.gt.f32.partialorder %v12033_v63, 20.0  ;;  %v9677_v19 = vrot.slane %v9546_v46, %v7788_v45  ;;  %v9681_v9 = vrot.slane %v9552_v43, %v7788_v45  ;;  %v12040_v3 = vld [vmem:[#allocation64_spill] sm:$0xff] }
 0x1fa   :  { %12035 = vst [vmem:[#allocation9_spill] sm:$0xff] %v9667_v25  ;;  %12036 = vst [vmem:[#allocation128_spill] sm:$0xff] %v9672_v15  ;;  %6821 = vrcp.f32 %v4136_v14  ;;  %v9683_v52 = vpop.eup %6813  ;;  %v6063_v17 = vadd.f32 -1.0, %v3681_v21  ;;  %v2442_v7 = vrot.slane %v9670_v26, %v7796_v55  ;;  %v3625_v53 = vadd.f32 1.0, %v12038_v60  ;;  %v12043_v15 = vld [vmem:[#allocation19_spill] sm:$0xff] }
 0x1fb   :  { %12037 = vst [vmem:[#allocation129_spill] sm:$0xff] %v9683_v52  ;;  %v4576_v31 = vsel %vm4448_vm13, %v12033_v63, %v4320_v61  ;;  %v9691_v14 = vadd.f32 %v9431_v59, %v9355_v22  ;;  %v3512_v46 = vmul.f32 1.442695, %v3273_v12  ;;  %v2438_v43 = vrot.slane %v9677_v19, %v7796_v55  ;;  %v12041_v12 = vld [vmem:[#allocation35_spill] sm:$0xff] }
 0x1fc   :  { %v4711_v32 = vmul.f32 %v9259_v20, %v4576_v31  ;;  %v9697_v16 = vadd.f32 %v12040_v3, %v2442_v7  ;;  %v2726_v21 = vrot.slane %v9681_v9, %v7796_v55  ;;  %v3753_v63 = vmul.f32 %v3625_v53, %v3625_v53 }
 0x1fd   :  { %12039 = vst [vmem:[#allocation99_spill] sm:$0xff] %v9691_v14  ;;  %v2209_v61 = vcombine.high %v9627_v0, %v9627_v0  ;;  %v9704_v60 = vrot.slane %v1769_v35, %v7788_v45  ;;  %6823 = vpow2.f32 %v3504_v48  ;;  %v9709_v31 = vadd.f32 %v2438_v43, %v12041_v12  ;;  %v9711_v7 = vpop.eup %6815 }
 0x1fe   :  { %4845 = vadd.xlane.f32.xlu0 %v4711_v32  ;;  %v3268_v3 = vmin.f32 %v9661_v8, 20.0  ;;  %v3937_v53 = vmul.f32 %v6063_v17, %v12042_v62  ;;  %v6134_v27 = vadd.f32 -1.0, %v3752_v11  ;;  %v9716_v0 = vadd.f32 %v2726_v21, %v12043_v15  ;;  %v12045_v15 = vld [vmem:[#allocation118_spill] sm:$0xff] }
 0x1ff   :  { %6825 = vpow2.f32 %v3360_v38  ;;  %v3358_v52 = vmul.f32 1.442695, %v3196_v1  ;;  %v4137_v33 = vadd.f32 1.0, %v3753_v63  ;;  %v2738_v48 = vrot.slane %v2209_v61, %v7796_v55  ;;  %v12046_v1 = vld [vmem:[#allocation103_spill] sm:$0xff] }
 0x200   :  { %v6818_v35 = vpop.eup %6817  ;;  %v3271_v43 = vmin.f32 %v9667_v25, 20.0  ;;  %v3199_v12 = vmin.f32 %v9691_v14, 20.0  ;;  %6827 = vpow2.f32 %v3512_v46  ;;  %v9725_v11 = vadd.f32 %v9431_v59, %v9471_v41 }
 0x201   :  { %v9719_v32 = vpop.eup %6819  ;;  %v4321_v22 = vmul.f32 %v6818_v35, %v3937_v53  ;;  %vm4449_vm14 = vcmp.gt.f32.partialorder %v12042_v62, 20.0  ;;  %v9729_v38 = vadd.f32 %v12045_v15, %v2738_v48  ;;  %v3554_v17 = vadd.f32 1.0, %v12046_v1  ;;  %v12049_v53 = vld [vmem:[#allocation86_spill] sm:$0xff] }
 0x202   :  { %12044 = vst [vmem:[#allocation64_spill] sm:$0xff] %v9725_v11  ;;  %v9734_v21 = vadd.f32 %v9431_v59, %v9372_v29  ;;  %v9738_v61 = vadd.f32 %v9431_v59, %v9391_v2  ;;  %v4008_v41 = vmul.f32 %v6134_v27, %v12049_v53  ;;  %v3502_v25 = vmul.f32 1.442695, %v3268_v3 }
 0x203   :  { %v4577_v46 = vsel %vm4449_vm14, %v12042_v62, %v4321_v22  ;;  %v9744_v48 = vadd.f32 %v9431_v59, %v9452_v50  ;;  %6829 = vrcp.f32 %v4137_v33  ;;  %v9749_v29 = vrot.slane %v9651_v34, %v7788_v45 }
 0x204   :  { %12047 = vst [vmem:[#allocation35_spill] sm:$0xff] %v9734_v21  ;;  %12048 = vst [vmem:[#allocation77_spill] sm:$0xff] %v9738_v61  ;;  %v6822_v35 = vpop.eup %6821  ;;  %v4712_v15 = vmul.f32 %v9259_v20, %v4577_v46  ;;  %6831 = vpow2.f32 %v3358_v52  ;;  %v3508_v2 = vmul.f32 1.442695, %v3271_v43  ;;  %v3364_v14 = vmul.f32 1.442695, %v3199_v12 }
 0x205   :  { %12050 = vst [vmem:[#allocation19_spill] sm:$0xff] %v9744_v48  ;;  %v4392_v1 = vmul.f32 %v6822_v35, %v4008_v41  ;;  %v3272_v62 = vmin.f32 %v9725_v11, 20.0  ;;  %vm4520_vm15 = vcmp.gt.f32.partialorder %v12049_v53, 20.0  ;;  %v3682_v27 = vmul.f32 %v3554_v17, %v3554_v17  ;;  %v12053_v46 = vld [vmem:[#allocation12_spill] sm:$0xff] }
 0x206   :  { %4847 = vadd.xlane.f32.xlu1 %v4712_v15  ;;  %v3198_v50 = vmin.f32 %v9734_v21, 20.0  ;;  %v3270_v22 = vmin.f32 %v9738_v61, 20.0  ;;  %v9757_v33 = vadd.f32 %v9431_v59, %v9455_v24  ;;  %6833 = vpow2.f32 %v3502_v25 }
 0x207   :  { %v4648_v3 = vsel %vm4520_vm15, %v12049_v53, %v4392_v1  ;;  %v9760_v52 = vpop.eup %6823  ;;  %v3201_v43 = vmin.f32 %v9744_v48, 20.0  ;;  %v9765_v12 = vadd.f32 %v9431_v59, %v9490_v40  ;;  %v2210_v41 = vcombine.high %v12053_v46, %v12053_v46 }
 0x208   :  { %12051 = vst [vmem:[#allocation118_spill] sm:$0xff] %v9757_v33  ;;  %v4783_v17 = vmul.f32 %v9259_v20, %v4648_v3  ;;  %6835 = vpow2.f32 %v3508_v2  ;;  %v9772_v24 = vadd.f32 %v9431_v59, %v9577_v51  ;;  %v6135_v53 = vadd.f32 -1.0, %v3753_v63 }
 0x209   :  { %12052 = vst [vmem:[#allocation103_spill] sm:$0xff] %v9765_v12  ;;  %v9774_v35 = vpop.eup %6825  ;;  %v9778_v25 = vrot.slane %v12053_v46, %v7788_v45  ;;  %6837 = vpow2.f32 %v3364_v14  ;;  %v3510_v40 = vmul.f32 1.442695, %v3272_v62  ;;  %v4066_v15 = vadd.f32 1.0, %v3682_v27 }
 0x20a   :  { %12054 = vst [vmem:[#allocation86_spill] sm:$0xff] %v9772_v24  ;;  %4989 = vadd.xlane.f32.xlu0 %v4783_v17  ;;  %v6828_v1 = vpop.eup %6827  ;;  %v3362_v3 = vmul.f32 1.442695, %v3198_v50  ;;  %v3506_v11 = vmul.f32 1.442695, %v3270_v22  ;;  %v3200_v2 = vmin.f32 %v9757_v33, 20.0  ;;  %v1768_v51 = vcombine.high %v9670_v26, %v9670_v26 }
 0x20b   :  { %v3368_v48 = vmul.f32 1.442695, %v3201_v43  ;;  %v3275_v63 = vmin.f32 %v9765_v12, 20.0  ;;  %v1766_v21 = vcombine.high %v9677_v19, %v9677_v19  ;;  %v2207_v14 = vcombine.high %v9681_v9, %v9681_v9  ;;  %v12055_v17 = vld [vmem:[#allocation81_spill] sm:$0xff] }
 0x20c   :  { %v3277_v62 = vmin.f32 %v9772_v24, 20.0  ;;  %v4009_v46 = vmul.f32 %v6135_v53, %v12055_v17  ;;  %6839 = vrcp.f32 %v4066_v15  ;;  %v2450_v50 = vrot.slane %v1768_v51, %v7796_v55  ;;  %v12059_v51 = vld [vmem:[#allocation7_spill] sm:$0xff] }
 0x20d   :  { %v6830_v22 = vpop.eup %6829  ;;  %6841 = vpow2.f32 %v3510_v40  ;;  %v9793_v26 = vadd.f32 %v9431_v59, %v9612_v13  ;;  %v2446_v43 = vrot.slane %v1766_v21, %v7796_v55  ;;  %v2734_v19 = vrot.slane %v2207_v14, %v7796_v55  ;;  %v12058_v40 = vld [vmem:[#allocation30_spill] sm:$0xff] }
 0x20e   :  { %v9797_v12 = vpop.eup %6831  ;;  %v3657_v9 = vadd.f32 1.0, %v6828_v1  ;;  %v9801_v33 = vadd.f32 %v9431_v59, %v9516_v39  ;;  %v4393_v53 = vmul.f32 %v6830_v22, %v4009_v46  ;;  %v9804_v15 = vadd.f32 %v9090_v54, %v2450_v50 }
 0x20f   :  { %12056 = vst [vmem:[#allocation12_spill] sm:$0xff] %v9793_v26  ;;  %vm4521_vm0 = vcmp.gt.f32.partialorder %v12055_v17, 20.0  ;;  %v9808_v13 = vadd.f32 %v2446_v43, %v9169_v30  ;;  %v9811_v21 = vadd.f32 %v2734_v19, %v12058_v40  ;;  %v3555_v14 = vadd.f32 1.0, %v12059_v51 }
 0x210   :  { %12057 = vst [vmem:[#allocation81_spill] sm:$0xff] %v9801_v33  ;;  %6843 = vpow2.f32 %v3362_v3  ;;  %v3520_v1 = vmul.f32 1.442695, %v3277_v62  ;;  %v9816_v39 = vadd.f32 %v9431_v59, %v9621_v4  ;;  %v4649_v46 = vsel %vm4521_vm0, %v12055_v17, %v4393_v53  ;;  %v9819_v54 = vpop.eup %6833  ;;  %v12067_v53 = vld [vmem:[#allocation89_spill] sm:$0xff] }
 0x211   :  { %v3366_v50 = vmul.f32 1.442695, %v3200_v2  ;;  %v3204_v22 = vmin.f32 %v9793_v26, 20.0  ;;  %v4784_v30 = vmul.f32 %v9259_v20, %v4649_v46  ;;  %v6064_v43 = vadd.f32 -1.0, %v3682_v27 }
 0x212   :  { %12060 = vst [vmem:[#allocation30_spill] sm:$0xff] %v9816_v39  ;;  %v9823_v19 = vpop.eup %6835  ;;  %6845 = vpow2.f32 %v3506_v11  ;;  %v9825_v40 = vmul.f32 %v3657_v9, %v3657_v9  ;;  %v3516_v3 = vmul.f32 1.442695, %v3275_v63  ;;  %v9829_v4 = vadd.f32 %v9431_v59, %v9655_v47 }
 0x213   :  { %12061 = vst [vmem:[#allocation7_spill] sm:$0xff] %v9823_v19  ;;  %v9831_v62 = vpop.eup %6837  ;;  %6847 = vpow2.f32 %v3368_v48  ;;  %v3203_v2 = vmin.f32 %v9801_v33, 20.0  ;;  %v9836_v17 = vadd.f32 %v9431_v59, %v9529_v44  ;;  %4991 = vadd.xlane.f32.xlu1 %v4784_v30  ;;  %v3683_v27 = vmul.f32 %v3555_v14, %v3555_v14  ;;  %v12082_v19 = vld [vmem:[#allocation74_spill] sm:$0xff] }
 0x214   :  { %12062 = vst [vmem:[#allocation130_spill] sm:$0xff] %v9825_v40  ;;  %12063 = vst [vmem:[#allocation131_spill] sm:$0xff] %v9829_v4  ;;  %v9839_v11 = vrot.slane %v2210_v41, %v7788_v45  ;;  %v2225_v63 = vcombine.high %v9778_v25, %v9778_v25  ;;  %6849 = vpow2.f32 %v3520_v1  ;;  %v3276_v47 = vmin.f32 %v9816_v39, 20.0 }
 0x215   :  { %12064 = vst [vmem:[#allocation132_spill] sm:$0xff] %v9831_v62  ;;  %12065 = vst [vmem:[#allocation133_spill] sm:$0xff] %v9836_v17  ;;  %6851 = vpow2.f32 %v3366_v50  ;;  %v9846_v48 = vadd.f32 %v9431_v59, %v9532_v49  ;;  %v3374_v9 = vmul.f32 1.442695, %v3204_v22  ;;  %v3938_v44 = vmul.f32 %v6064_v43, %v12067_v53  ;;  %v12068_v43 = vld [vmem:[#allocation104_spill] sm:$0xff] }
 0x216   :  { %v6840_v51 = vpop.eup %6839  ;;  %v9851_v14 = vrot.slane %v9778_v25, %v7788_v45  ;;  %v4169_v41 = vadd.f32 1.0, %v9825_v40  ;;  %6853 = vpow2.f32 %v3516_v3  ;;  %v3279_v1 = vmin.f32 %v9829_v4, 20.0 }
 0x217   :  { %12066 = vst [vmem:[#allocation134_spill] sm:$0xff] %v9846_v48  ;;  %v6842_v46 = vpop.eup %6841  ;;  %v3372_v30 = vmul.f32 1.442695, %v3203_v2  ;;  %v3202_v50 = vmin.f32 %v9836_v17, 20.0  ;;  %v4322_v33 = vmul.f32 %v6840_v51, %v3938_v44  ;;  %v4067_v49 = vadd.f32 1.0, %v3683_v27 }
 0x218   :  { %v3518_v61 = vmul.f32 1.442695, %v3276_v47  ;;  %vm4450_vm1 = vcmp.gt.f32.partialorder %v12067_v53, 20.0  ;;  %v2247_v22 = vrot.slane %v2225_v63, %v7788_v45  ;;  %v3626_v8 = vadd.f32 1.0, %v12068_v43 }
 0x219   :  { %v3274_v25 = vmin.f32 %v9846_v48, 20.0  ;;  %6855 = vpow2.f32 %v3374_v9  ;;  %v4578_v3 = vsel %vm4450_vm1, %v12067_v53, %v4322_v33  ;;  %v12069_v2 = vcombine.high %v9651_v34, %v9651_v34 }
 0x21a   :  { %v9867_v44 = vpop.eup %6843  ;;  %v3656_v47 = vadd.f32 1.0, %v6842_v46  ;;  %v3524_v51 = vmul.f32 1.442695, %v3279_v1  ;;  %v9871_v63 = vadd.f32 %v9431_v59, %v9697_v16  ;;  %v4713_v43 = vmul.f32 %v9259_v20, %v4578_v3 }
 0x21b   :  { %v9865_v40 = vrot.slane %v12069_v2, %v7788_v45  ;;  %12070 = vst [vmem:[#allocation89_spill] sm:$0xff] %v9867_v44  ;;  %6857 = vrcp.f32 %v4067_v49  ;;  %v2746_v9 = vrot.slane %v2247_v22, %v7796_v55  ;;  %v3754_v33 = vmul.f32 %v3626_v8, %v3626_v8  ;;  %v12075_v8 = vld [vmem:[#allocation29_spill] sm:$0xff] }
 0x21c   :  { %12071 = vst [vmem:[#allocation104_spill] sm:$0xff] %v9871_v63  ;;  %v9877_v34 = vpop.eup %6845  ;;  %v3370_v2 = vmul.f32 1.442695, %v3202_v50  ;;  %6859 = vpow2.f32 %v3518_v61  ;;  %4849 = vadd.xlane.f32.xlu0 %v4713_v43  ;;  %v2454_v1 = vrot.slane %v9749_v29, %v7796_v55  ;;  %v2742_v16 = vrot.slane %v9851_v14, %v7796_v55 }
 0x21d   :  { %v2458_v53 = vrot.slane %v9865_v40, %v7796_v55  ;;  %12072 = vst [vmem:[#allocation135_spill] sm:$0xff] %v9877_v34  ;;  %v9883_v46 = vpop.eup %6847  ;;  %v9887_v20 = vadd.f32 %v9431_v59, %v9609_v23  ;;  %v9890_v49 = vadd.f32 %v12075_v8, %v2746_v9  ;;  %v4138_v3 = vadd.f32 1.0, %v3754_v33  ;;  %v12081_v23 = vld [vmem:[#allocation51_spill] sm:$0xff] }
 0x21e   :  { %12073 = vst [vmem:[#allocation136_spill] sm:$0xff] %v9883_v46  ;;  %v6850_v61 = vpop.eup %6849  ;;  %v3784_v43 = vmul.f32 %v3656_v47, %v3656_v47  ;;  %6861 = vpow2.f32 %v3524_v51  ;;  %v9896_v17 = vadd.f32 %v2454_v1, %v9254_v18  ;;  %v9899_v48 = vadd.f32 %v2742_v16, %v9266_v37  ;;  %v12079_v51 = vld [vmem:[#allocation17_spill] sm:$0xff] }
 0x21f   :  { %12074 = vst [vmem:[#allocation137_spill] sm:$0xff] %v9887_v20  ;;  %v9893_v50 = vadd.f32 %v9250_v42, %v2458_v53  ;;  %v9901_v46 = vpop.eup %6851  ;;  %v3207_v9 = vmin.f32 %v9871_v63, 20.0  ;;  %v9908_v42 = vadd.f32 %v9431_v59, %v9709_v31  ;;  %6863 = vrcp.f32 %v4138_v3 }
 0x220   :  { %12076 = vst [vmem:[#allocation29_spill] sm:$0xff] %v9901_v46  ;;  %v9910_v47 = vpop.eup %6853  ;;  %6865 = vrcp.f32 %v4169_v41  ;;  %v6065_v18 = vadd.f32 -1.0, %v3683_v27  ;;  %v3627_v53 = vadd.f32 1.0, %v12079_v51  ;;  %v2257_v37 = vcombine.high %v2247_v22, %v2247_v22  ;;  %v12080_v22 = vld [vmem:[#allocation83_spill] sm:$0xff] }
 0x221   :  { %12077 = vst [vmem:[#allocation138_spill] sm:$0xff] %v9908_v42  ;;  %12078 = vst [vmem:[#allocation139_spill] sm:$0xff] %v9910_v47  ;;  %6867 = vpow2.f32 %v3372_v30  ;;  %v3514_v1 = vmul.f32 1.442695, %v3274_v25  ;;  %v3661_v16 = vadd.f32 1.0, %v6850_v61  ;;  %v3205_v8 = vmin.f32 %v9887_v20, 20.0 }
 0x222   :  { %v6151_v46 = vadd.f32 -1.0, %v9230_v58  ;;  %v4168_v31 = vadd.f32 1.0, %v3784_v43  ;;  %6869 = vpow2.f32 %v3370_v2  ;;  %v3380_v44 = vmul.f32 1.442695, %v3207_v9 }
 0x223   :  { %v6856_v3 = vpop.eup %6855  ;;  %v3206_v41 = vmin.f32 %v9908_v42, 20.0  ;;  %v9920_v27 = vadd.f32 %v9431_v59, %v9716_v0  ;;  %v2754_v30 = vrot.slane %v2257_v37, %v7796_v55  ;;  %v3939_v25 = vmul.f32 %v6065_v18, %v12080_v22 }
 0x224   :  { %v6136_v61 = vadd.f32 -1.0, %v3754_v33  ;;  %v9924_v51 = vmul.f32 %v3627_v53, %v3627_v53  ;;  %v3556_v20 = vadd.f32 1.0, %v12081_v23  ;;  %6871 = vpow2.f32 %v3514_v1  ;;  %v12084_v1 = vld [vmem:[#allocation90_spill] sm:$0xff] }
 0x225   :  { %v6858_v58 = vpop.eup %6857  ;;  %v3789_v2 = vmul.f32 %v3661_v16, %v3661_v16  ;;  %v3376_v47 = vmul.f32 1.442695, %v3205_v8  ;;  %v9928_v9 = vadd.f32 %v9292_v5, %v2754_v30  ;;  %v9931_v0 = vmul.f32 %v6151_v46, %v12082_v19 }
 0x226   :  { %v6860_v34 = vpop.eup %6859  ;;  %6873 = vrcp.f32 %v4168_v31  ;;  %v3588_v37 = vadd.f32 1.0, %v6856_v3  ;;  %v4323_v62 = vmul.f32 %v6858_v58, %v3939_v25  ;;  %v3378_v33 = vmul.f32 1.442695, %v3206_v41 }
 0x227   :  { %12083 = vst [vmem:[#allocation17_spill] sm:$0xff] %v9931_v0  ;;  %6875 = vpow2.f32 %v3380_v44  ;;  %v3278_v18 = vmin.f32 %v9920_v27, 20.0  ;;  %vm4451_vm2 = vcmp.gt.f32.partialorder %v12080_v22, 20.0  ;;  %v4010_v16 = vmul.f32 %v6136_v61, %v12084_v1 }
 0x228   :  { %v6862_v23 = vpop.eup %6861  ;;  %v4579_v53 = vsel %vm4451_vm2, %v12080_v22, %v4323_v62  ;;  %v4139_v5 = vadd.f32 1.0, %v9924_v51  ;;  %v3684_v8 = vmul.f32 %v3556_v20, %v3556_v20  ;;  %v9938_v46 = vadd.f32 -1.0, %v3784_v43  ;;  %v9949_v62 = vld [vmem:[%s11410_s5] ss:$0 sm:$0xff] }
 0x229   :  { %v6864_v30 = vpop.eup %6863  ;;  %v6171_v31 = vadd.f32 -1.0, %v3789_v2  ;;  %6877 = vpow2.f32 %v3376_v47  ;;  %v3660_v3 = vadd.f32 1.0, %v6860_v34  ;;  %v3716_v41 = vmul.f32 %v3588_v37, %v3588_v37 }
 0x22a   :  { %12085 = vst [vmem:[#allocation83_spill] sm:$0xff] %v9938_v46  ;;  %v9940_v44 = vpop.eup %6865  ;;  %v9944_v25 = vadd.f32 %v9431_v59, %v9729_v38  ;;  %v4714_v20 = vmul.f32 %v9949_v62, %v4579_v53  ;;  %v4394_v22 = vmul.f32 %v6864_v30, %v4010_v16  ;;  %v3663_v61 = vadd.f32 1.0, %v6862_v23 }
 0x22b   :  { %12086 = vst [vmem:[#allocation51_spill] sm:$0xff] %v9940_v44  ;;  %v9952_v43 = vpop.eup %6867  ;;  %6879 = vpow2.f32 %v3378_v33  ;;  %v3522_v34 = vmul.f32 1.442695, %v3278_v18  ;;  %vm4522_vm3 = vcmp.gt.f32.partialorder %v12084_v1, 20.0  ;;  %v4068_v58 = vadd.f32 1.0, %v3684_v8 }
 0x22c   :  { %12087 = vst [vmem:[#allocation90_spill] sm:$0xff] %v9944_v25  ;;  %v9955_v47 = vpop.eup %6869  ;;  %4851 = vadd.xlane.f32.xlu1 %v4714_v20  ;;  %v4650_v38 = vsel %vm4522_vm3, %v12084_v1, %v4394_v22  ;;  %6881 = vrcp.f32 %v4139_v5  ;;  %v1816_v37 = vcombine.high %v9865_v40, %v9865_v40  ;;  %v4173_v44 = vadd.f32 1.0, %v3789_v2 }
 0x22d   :  { %v3788_v53 = vmul.f32 %v3660_v3, %v3660_v3  ;;  %v4785_v16 = vmul.f32 %v9949_v62, %v4650_v38  ;;  %v1814_v33 = vcombine.high %v9749_v29, %v9749_v29  ;;  %v3281_v18 = vmin.f32 %v9944_v25, 20.0 }
 0x22e   :  { %6883 = vrcp.f32 %v4068_v58  ;;  %v2466_v23 = vrot.slane %v1816_v37, %v7796_v55  ;;  %v2255_v1 = vcombine.high %v9851_v14, %v9851_v14  ;;  %v9967_v5 = vpop.eup %6871  ;;  %v6098_v30 = vadd.f32 -1.0, %v3716_v41 }
 0x22f   :  { %v4100_v20 = vadd.f32 1.0, %v3716_v41  ;;  %v3791_v40 = vmul.f32 %v3663_v61, %v3663_v61  ;;  %4993 = vadd.xlane.f32.xlu0 %v4785_v16  ;;  %v2462_v2 = vrot.slane %v1814_v33, %v7796_v55  ;;  %6885 = vpow2.f32 %v3522_v34 }
 0x230   :  { %v9970_v3 = vpop.eup %6873  ;;  %v9974_v29 = vadd.f32 %v9431_v59, %v9804_v15  ;;  %v9977_v22 = vadd.f32 %v9328_v36, %v2466_v23  ;;  %v2750_v14 = vrot.slane %v2255_v1, %v7796_v55  ;;  %v6170_v58 = vadd.f32 -1.0, %v3788_v53 }
 0x231   :  { %12088 = vst [vmem:[#allocation140_spill] sm:$0xff] %v9970_v3  ;;  %v6876_v38 = vpop.eup %6875  ;;  %v4172_v37 = vadd.f32 1.0, %v3788_v53  ;;  %v9982_v41 = vadd.f32 %v9431_v59, %v9808_v13  ;;  %v9985_v61 = vadd.f32 %v2462_v2, %v9388_v28  ;;  %6887 = vrcp.f32 %v4173_v44  ;;  %v12093_v13 = vld [vmem:[#allocation43_spill] sm:$0xff] }
 0x232   :  { %12089 = vst [vmem:[#allocation141_spill] sm:$0xff] %v9974_v29  ;;  %v3528_v34 = vmul.f32 1.442695, %v3281_v18  ;;  %v6137_v15 = vadd.f32 -1.0, %v9924_v51  ;;  %v9989_v16 = vadd.f32 %v2750_v14, %v9393_v57  ;;  %v6173_v33 = vadd.f32 -1.0, %v3791_v40 }
 0x233   :  { %12090 = vst [vmem:[#allocation142_spill] sm:$0xff] %v9982_v41  ;;  %v9991_v36 = vpop.eup %6877  ;;  %v9995_v53 = vadd.f32 %v9431_v59, %v9811_v21  ;;  %v6066_v23 = vadd.f32 -1.0, %v3684_v8  ;;  %v3557_v1 = vadd.f32 1.0, %v12093_v13  ;;  %v9999_v28 = vmul.f32 %v6171_v31, %v9772_v24  ;;  %v12097_v31 = vld [vmem:[#allocation88_spill] sm:$0xff] }
 0x234   :  { %12091 = vst [vmem:[#allocation143_spill] sm:$0xff] %v9991_v36  ;;  %6889 = vrcp.f32 %v4100_v20  ;;  %v3591_v44 = vadd.f32 1.0, %v6876_v38  ;;  %v3209_v51 = vmin.f32 %v9974_v29, 20.0  ;;  %v10003_v57 = vmul.f32 %v6098_v30, %v9793_v26 }
 0x235   :  { %12092 = vst [vmem:[#allocation144_spill] sm:$0xff] %v9995_v53  ;;  %12094 = vst [vmem:[#allocation43_spill] sm:$0xff] %v9999_v28  ;;  %v6880_v18 = vpop.eup %6879  ;;  %v10006_v2 = vmul.f32 %v6170_v58, %v9816_v39  ;;  %6891 = vrcp.f32 %v4172_v37  ;;  %v3208_v21 = vmin.f32 %v9982_v41, 20.0  ;;  %v10009_v14 = vadd.f32 1.0, %v3791_v40  ;;  %v12100_v37 = vld [vmem:[#allocation100_spill] sm:$0xff] }
 0x236   :  { %12095 = vst [vmem:[#allocation145_spill] sm:$0xff] %v10003_v57  ;;  %v6882_v8 = vpop.eup %6881  ;;  %6893 = vpow2.f32 %v3528_v34  ;;  %v4011_v13 = vmul.f32 %v6137_v15, %v12097_v31  ;;  %v12098_v20 = vcombine.high %v9839_v11, %v9839_v11  ;;  %v10019_v30 = vmul.f32 %v6173_v33, %v9829_v4  ;;  %v12111_v57 = vld [vmem:[#allocation55_spill] sm:$0xff] }
 0x237   :  { %12096 = vst [vmem:[#allocation146_spill] sm:$0xff] %v10006_v2  ;;  %v3280_v58 = vmin.f32 %v9995_v53, 20.0  ;;  %v3940_v3 = vmul.f32 %v6066_v23, %v12100_v37  ;;  %v3685_v19 = vmul.f32 %v3557_v1, %v3557_v1  ;;  %v3719_v40 = vmul.f32 %v3591_v44, %v3591_v44 }
 0x238   :  { %v10016_v38 = vrot.slane %v12098_v20, %v7788_v45  ;;  %12099 = vst [vmem:[#allocation88_spill] sm:$0xff] %v10019_v30  ;;  %v6884_v46 = vpop.eup %6883  ;;  %v3590_v0 = vadd.f32 1.0, %v6880_v18  ;;  %v3384_v34 = vmul.f32 1.442695, %v3209_v51  ;;  %v4395_v26 = vmul.f32 %v6882_v8, %v4011_v13 }
 0x239   :  { %v3382_v15 = vmul.f32 1.442695, %v3208_v21  ;;  %v10025_v39 = vadd.f32 %v9431_v59, %v9890_v49  ;;  %vm4523_vm4 = vcmp.gt.f32.partialorder %v12097_v31, 20.0  ;;  %v4324_v20 = vmul.f32 %v6884_v46, %v3940_v3  ;;  %v6886_v33 = vpop.eup %6885  ;;  %v12105_v46 = vld [vmem:[#allocation91_spill] sm:$0xff] }
 0x23a   :  { %v10030_v4 = vadd.f32 %v9431_v59, %v9893_v50  ;;  %v4651_v23 = vsel %vm4523_vm4, %v12097_v31, %v4395_v26  ;;  %vm4452_vm5 = vcmp.gt.f32.partialorder %v12100_v37, 20.0  ;;  %v2762_v1 = vrot.slane %v10016_v38, %v7796_v55  ;;  %v12106_v31 = vld [vmem:[#allocation49_spill] sm:$0xff] }
 0x23b   :  { %12101 = vst [vmem:[#allocation100_spill] sm:$0xff] %v10025_v39  ;;  %v3526_v44 = vmul.f32 1.442695, %v3280_v58  ;;  %v4786_v51 = vmul.f32 %v9949_v62, %v4651_v23  ;;  %v4580_v49 = vsel %vm4452_vm5, %v12100_v37, %v4324_v20  ;;  %v4069_v18 = vadd.f32 1.0, %v3685_v19  ;;  %v10038_v21 = vpop.eup %6887 }
 0x23c   :  { %12102 = vst [vmem:[#allocation147_spill] sm:$0xff] %v10030_v4  ;;  %12103 = vst [vmem:[#allocation148_spill] sm:$0xff] %v10038_v21  ;;  %6895 = vpow2.f32 %v3384_v34  ;;  %v10042_v50 = vadd.f32 %v9431_v59, %v9896_v17  ;;  %v4715_v26 = vmul.f32 %v9949_v62, %v4580_v49  ;;  %v10046_v3 = vadd.f32 %v12105_v46, %v2762_v1 }
 0x23d   :  { %v3283_v8 = vmin.f32 %v10025_v39, 20.0  ;;  %4995 = vadd.xlane.f32.xlu1 %v4786_v51  ;;  %6897 = vrcp.f32 %v4069_v18  ;;  %v3628_v13 = vadd.f32 1.0, %v12106_v31  ;;  %v12107_v58 = vcombine.high %v9704_v60, %v9704_v60 }
 0x23e   :  { %12104 = vst [vmem:[#allocation149_spill] sm:$0xff] %v10042_v50  ;;  %v10056_v34 = vpop.eup %6889  ;;  %v3662_v59 = vadd.f32 1.0, %v6886_v33  ;;  %6899 = vpow2.f32 %v3382_v15  ;;  %v3211_v17 = vmin.f32 %v10030_v4, 20.0  ;;  %4853 = vadd.xlane.f32.xlu0 %v4715_v26  ;;  %v10061_v20 = vrot.slane %v9704_v60, %v7788_v45  ;;  %v10075_v60 = vld [vmem:[%s11409_s4] ss:$0 sm:$0xff] }
 0x23f   :  { %v10054_v37 = vrot.slane %v12107_v58, %v7788_v45  ;;  %12108 = vst [vmem:[#allocation91_spill] sm:$0xff] %v10056_v34  ;;  %v10063_v23 = vpop.eup %6891  ;;  %v3718_v1 = vmul.f32 %v3590_v0, %v3590_v0  ;;  %v3756_v51 = vmul.f32 %v3628_v13, %v3628_v13  ;;  %v10069_v18 = vrot.slane %v9839_v11, %v7788_v45 }
 0x240   :  { %12109 = vst [vmem:[#allocation49_spill] sm:$0xff] %v10063_v23  ;;  %v6894_v33 = vpop.eup %6893  ;;  %v6101_v15 = vadd.f32 -1.0, %v3719_v40  ;;  %6901 = vpow2.f32 %v3526_v44  ;;  %v3210_v26 = vmin.f32 %v10042_v50, 20.0  ;;  %v10079_v0 = vadd.f32 %v10075_v60, %v9899_v48  ;;  %v12112_v48 = vld [vmem:[#allocation50_spill] sm:$0xff]  ;;  %v12113_v23 = vld [vmem:[#allocation123_spill] sm:$0xff] }
 0x241   :  { %v2474_v49 = vrot.slane %v10054_v37, %v7796_v55  ;;  %v3532_v46 = vmul.f32 1.442695, %v3283_v8  ;;  %v4140_v31 = vadd.f32 1.0, %v3756_v51  ;;  %v2470_v45 = vrot.slane %v10061_v20, %v7796_v55 }
 0x242   :  { %12110 = vst [vmem:[#allocation150_spill] sm:$0xff] %v10079_v0  ;;  %v4103_v11 = vadd.f32 1.0, %v3719_v40  ;;  %v3388_v44 = vmul.f32 1.442695, %v3211_v17  ;;  %v6067_v58 = vadd.f32 -1.0, %v3685_v19  ;;  %v2758_v30 = vrot.slane %v10069_v18, %v7796_v55 }
 0x243   :  { %v10082_v13 = vadd.f32 %v9457_v56, %v2474_v49  ;;  %v3665_v34 = vadd.f32 1.0, %v6894_v33  ;;  %6903 = vrcp.f32 %v4140_v31  ;;  %v10089_v24 = vadd.f32 %v2470_v45, %v12111_v57  ;;  %v12115_v31 = vld [vmem:[#allocation92_spill] sm:$0xff] }
 0x244   :  { %v3629_v8 = vadd.f32 1.0, %v12112_v48  ;;  %6905 = vrcp.f32 %v10009_v14  ;;  %v3790_v56 = vmul.f32 %v3662_v59, %v3662_v59  ;;  %v3282_v49 = vmin.f32 %v10079_v0, 20.0 }
 0x245   :  { %v10095_v2 = vadd.f32 %v2758_v30, %v12113_v23  ;;  %v6100_v40 = vadd.f32 -1.0, %v3718_v1  ;;  %6907 = vpow2.f32 %v3532_v46  ;;  %v3386_v19 = vmul.f32 1.442695, %v3210_v26 }
 0x246   :  { %v10099_v17 = vadd.f32 %v10075_v60, %v9928_v9  ;;  %v6896_v33 = vpop.eup %6895  ;;  %v4102_v57 = vadd.f32 1.0, %v3718_v1  ;;  %6909 = vpow2.f32 %v3388_v44  ;;  %v3941_v45 = vmul.f32 %v6067_v58, %v12115_v31 }
 0x247   :  { %v2258_v14 = vcombine.high %v10016_v38, %v10016_v38  ;;  %v6898_v59 = vpop.eup %6897  ;;  %v10105_v48 = vmul.f32 %v6101_v15, %v9871_v63  ;;  %6911 = vrcp.f32 %v4103_v11  ;;  %v3793_v30 = vmul.f32 %v3665_v34, %v3665_v34 }
 0x248   :  { %12114 = vst [vmem:[#allocation55_spill] sm:$0xff] %v10099_v17  ;;  %v3757_v23 = vmul.f32 %v3629_v8, %v3629_v8  ;;  %v6900_v26 = vpop.eup %6899  ;;  %v4174_v46 = vadd.f32 1.0, %v3790_v56  ;;  %v3530_v21 = vmul.f32 1.442695, %v3282_v49  ;;  %v4325_v9 = vmul.f32 %v6898_v59, %v3941_v45  ;;  %v12119_v59 = vld [vmem:[#allocation112_spill] sm:$0xff] }
 0x249   :  { %12116 = vst [vmem:[#allocation50_spill] sm:$0xff] %v10105_v48  ;;  %v6138_v28 = vadd.f32 -1.0, %v3756_v51  ;;  %v3593_v36 = vadd.f32 1.0, %v6896_v33  ;;  %6913 = vpow2.f32 %v3386_v19  ;;  %v3285_v1 = vmin.f32 %v10099_v17, 20.0  ;;  %v12117_v51 = vld [vmem:[#allocation101_spill] sm:$0xff]  ;;  %v12118_v19 = vld [vmem:[#allocation108_spill] sm:$0xff] }
 0x24a   :  { %vm4453_vm6 = vcmp.gt.f32.partialorder %v12115_v31, 20.0  ;;  %v6902_v44 = vpop.eup %6901  ;;  %6915 = vrcp.f32 %v4102_v57  ;;  %v6172_v38 = vadd.f32 -1.0, %v3790_v56  ;;  %v2770_v11 = vrot.slane %v2258_v14, %v7796_v55 }
 0x24b   :  { %v4581_v15 = vsel %vm4453_vm6, %v12115_v31, %v4325_v9  ;;  %v4177_v34 = vadd.f32 1.0, %v3793_v30  ;;  %v3592_v58 = vadd.f32 1.0, %v6900_v26  ;;  %v4141_v49 = vadd.f32 1.0, %v3757_v23 }
 0x24c   :  { %v4716_v8 = vmul.f32 %v9949_v62, %v4581_v15  ;;  %6917 = vpow2.f32 %v3530_v21  ;;  %v4012_v33 = vmul.f32 %v6138_v28, %v12117_v51  ;;  %v10114_v45 = vadd.f32 %v12118_v19, %v2770_v11 }
 0x24d   :  { %v3631_v63 = vadd.f32 1.0, %v12119_v59  ;;  %v6904_v48 = vpop.eup %6903  ;;  %6919 = vrcp.f32 %v4174_v46  ;;  %v6175_v56 = vadd.f32 -1.0, %v3793_v30  ;;  %v3721_v57 = vmul.f32 %v3593_v36, %v3593_v36 }
 0x24e   :  { %v3536_v31 = vmul.f32 1.442695, %v3285_v1  ;;  %4855 = vadd.xlane.f32.xlu1 %v4716_v8  ;;  %v10117_v14 = vpop.eup %6905  ;;  %v3664_v26 = vadd.f32 1.0, %v6902_v44  ;;  %v4396_v9 = vmul.f32 %v6904_v48, %v4012_v33  ;;  %v1817_v21 = vcombine.high %v10054_v37, %v10054_v37 }
 0x24f   :  { %v3759_v15 = vmul.f32 %v3631_v63, %v3631_v63  ;;  %v6908_v28 = vpop.eup %6907  ;;  %v10122_v11 = vmul.f32 %v6100_v40, %v9908_v42  ;;  %v10125_v19 = vmul.f32 %v6172_v38, %v9920_v27  ;;  %vm4524_vm7 = vcmp.gt.f32.partialorder %v12117_v51, 20.0 }
 0x250   :  { %6921 = vrcp.f32 %v4141_v49  ;;  %v6910_v36 = vpop.eup %6909  ;;  %v3720_v30 = vmul.f32 %v3592_v58, %v3592_v58  ;;  %v4652_v46 = vsel %vm4524_vm7, %v12117_v51, %v4396_v9  ;;  %v10132_v37 = vmul.f32 %v6175_v56, %v9944_v25 }
 0x251   :  { %6923 = vrcp.f32 %v4177_v34  ;;  %v4143_v48 = vadd.f32 1.0, %v3759_v15  ;;  %v10129_v63 = vpop.eup %6911  ;;  %v6103_v1 = vadd.f32 -1.0, %v3721_v57  ;;  %v4787_v40 = vmul.f32 %v9949_v62, %v4652_v46 }
 0x252   :  { %12120 = vst [vmem:[#allocation123_spill] sm:$0xff] %v10132_v37  ;;  %6925 = vpow2.f32 %v3536_v31  ;;  %v3792_v44 = vmul.f32 %v3664_v26, %v3664_v26  ;;  %v3667_v38 = vadd.f32 1.0, %v6908_v28  ;;  %v2482_v8 = vrot.slane %v1817_v21, %v7796_v55 }
 0x253   :  { %6927 = vrcp.f32 %v4143_v48  ;;  %v6914_v49 = vpop.eup %6913  ;;  %v4105_v34 = vadd.f32 1.0, %v3721_v57  ;;  %v3595_v58 = vadd.f32 1.0, %v6910_v36  ;;  %4997 = vadd.xlane.f32.xlu0 %v4787_v40  ;;  %v1815_v51 = vcombine.high %v10061_v20, %v10061_v20 }
 0x254   :  { %v2256_v33 = vcombine.high %v10069_v18, %v10069_v18  ;;  %v10140_v59 = vpop.eup %6915  ;;  %v6102_v56 = vadd.f32 -1.0, %v3720_v30  ;;  %v10144_v31 = vadd.f32 %v10075_v60, %v9977_v22  ;;  %v6139_v26 = vadd.f32 -1.0, %v3757_v23 }
 0x255   :  { %v10147_v9 = vadd.f32 %v9558_v6, %v2482_v8  ;;  %v10150_v57 = vmul.f32 %v6103_v1, %v9974_v29  ;;  %v4104_v21 = vadd.f32 1.0, %v3720_v30  ;;  %v2478_v20 = vrot.slane %v1815_v51, %v7796_v55  ;;  %v12124_v30 = vld [vmem:[#allocation8_spill] sm:$0xff]  ;;  %v12125_v51 = vld [vmem:[#allocation98_spill] sm:$0xff] }
 0x256   :  { %12121 = vst [vmem:[#allocation92_spill] sm:$0xff] %v10144_v31  ;;  %v2766_v28 = vrot.slane %v2256_v33, %v7796_v55  ;;  %v6918_v18 = vpop.eup %6917  ;;  %v4176_v36 = vadd.f32 1.0, %v3792_v44  ;;  %v3795_v46 = vmul.f32 %v3667_v38, %v3667_v38  ;;  %v3594_v48 = vadd.f32 1.0, %v6914_v49  ;;  %v12126_v49 = vld [vmem:[#allocation107_spill] sm:$0xff] }
 0x257   :  { %12122 = vst [vmem:[#allocation101_spill] sm:$0xff] %v10150_v57  ;;  %v10156_v22 = vadd.f32 %v10075_v60, %v9985_v61  ;;  %v10158_v23 = vpop.eup %6919  ;;  %v3723_v6 = vmul.f32 %v3595_v58, %v3595_v58  ;;  %v6141_v40 = vadd.f32 -1.0, %v3759_v15  ;;  %v10161_v1 = vadd.f32 %v2478_v20, %v9629_v10 }
 0x258   :  { %v10164_v8 = vadd.f32 %v2766_v28, %v12124_v30  ;;  %6929 = vrcp.f32 %v4105_v34  ;;  %v3213_v55 = vmin.f32 %v10144_v31, 20.0  ;;  %v4013_v38 = vmul.f32 %v6139_v26, %v12125_v51  ;;  %v12129_v26 = vld [vmem:[#allocation40_spill] sm:$0xff] }
 0x259   :  { %12123 = vst [vmem:[#allocation108_spill] sm:$0xff] %v10156_v22  ;;  %v3559_v33 = vadd.f32 1.0, %v12126_v49  ;;  %v10170_v61 = vmul.f32 %v6102_v56, %v9982_v41  ;;  %6931 = vrcp.f32 %v4104_v21  ;;  %v6174_v58 = vadd.f32 -1.0, %v3792_v44 }
 0x25a   :  { %v6922_v25 = vpop.eup %6921  ;;  %v3666_v15 = vadd.f32 1.0, %v6918_v18  ;;  %6933 = vrcp.f32 %v4176_v36  ;;  %v4179_v10 = vadd.f32 1.0, %v3795_v46  ;;  %v3212_v20 = vmin.f32 %v10156_v22, 20.0  ;;  %v12130_v18 = vld [vmem:[#allocation52_spill] sm:$0xff] }
 0x25b   :  { %12127 = vst [vmem:[#allocation112_spill] sm:$0xff] %v10170_v61  ;;  %v10172_v29 = vpop.eup %6923  ;;  %v4397_v34 = vmul.f32 %v6922_v25, %v4013_v38  ;;  %v4107_v30 = vadd.f32 1.0, %v3723_v6  ;;  %v3722_v37 = vmul.f32 %v3594_v48, %v3594_v48  ;;  %vm4525_vm8 = vcmp.gt.f32.partialorder %v12125_v51, 20.0 }
 0x25c   :  { %12128 = vst [vmem:[#allocation8_spill] sm:$0xff] %v10172_v29  ;;  %v6926_v28 = vpop.eup %6925  ;;  %v4015_v49 = vmul.f32 %v6141_v40, %v12129_v26  ;;  %v3392_v56 = vmul.f32 1.442695, %v3213_v55  ;;  %v3687_v44 = vmul.f32 %v3559_v33, %v3559_v33  ;;  %v3558_v41 = vadd.f32 1.0, %v12130_v18 }
 0x25d   :  { %v6928_v42 = vpop.eup %6927  ;;  %v4653_v21 = vsel %vm4525_vm8, %v12125_v51, %v4397_v34  ;;  %v3794_v61 = vmul.f32 %v3666_v15, %v3666_v15  ;;  %v10181_v36 = vadd.f32 %v10075_v60, %v9989_v16  ;;  %v6177_v48 = vadd.f32 -1.0, %v3795_v46 }
 0x25e   :  { %v4788_v25 = vmul.f32 %v9949_v62, %v4653_v21  ;;  %v4399_v38 = vmul.f32 %v6928_v42, %v4015_v49  ;;  %v3669_v29 = vadd.f32 1.0, %v6926_v28  ;;  %v3390_v57 = vmul.f32 1.442695, %v3212_v20  ;;  %v12133_v20 = vld [vmem:[#allocation114_spill] sm:$0xff]  ;;  %v12134_v49 = vld [vmem:[#allocation60_spill] sm:$0xff] }
 0x25f   :  { %12131 = vst [vmem:[#allocation98_spill] sm:$0xff] %v10181_v36  ;;  %vm4527_vm9 = vcmp.gt.f32.partialorder %v12129_v26, 20.0  ;;  %6935 = vrcp.f32 %v4179_v10  ;;  %v4106_v40 = vadd.f32 1.0, %v3722_v37  ;;  %v10187_v55 = vadd.f32 %v10075_v60, %v10046_v3 }
 0x260   :  { %4999 = vadd.xlane.f32.xlu1 %v4788_v25  ;;  %v4655_v51 = vsel %vm4527_vm9, %v12129_v26, %v4399_v38  ;;  %6937 = vpow2.f32 %v3392_v56  ;;  %v4071_v33 = vadd.f32 1.0, %v3687_v44  ;;  %v3686_v15 = vmul.f32 %v3558_v41, %v3558_v41 }
 0x261   :  { %12132 = vst [vmem:[#allocation107_spill] sm:$0xff] %v10187_v55  ;;  %v4790_v16 = vmul.f32 %v9949_v62, %v4655_v51  ;;  %6939 = vrcp.f32 %v4107_v30  ;;  %v4178_v42 = vadd.f32 1.0, %v3794_v61  ;;  %v3284_v46 = vmin.f32 %v10181_v36, 20.0 }
 0x262   :  { %v3630_v34 = vadd.f32 1.0, %v12133_v20  ;;  %v10193_v10 = vpop.eup %6929  ;;  %v3797_v28 = vmul.f32 %v3669_v29, %v3669_v29  ;;  %6941 = vpow2.f32 %v3390_v57  ;;  %v4070_v3 = vadd.f32 1.0, %v3686_v15 }
 0x263   :  { %5003 = vadd.xlane.f32.xlu0 %v4790_v16  ;;  %v3633_v21 = vadd.f32 1.0, %v12134_v49  ;;  %v10196_v26 = vpop.eup %6931  ;;  %v10199_v56 = vmul.f32 %v6174_v58, %v9995_v53  ;;  %v3287_v41 = vmin.f32 %v10187_v55, 20.0  ;;  %6943 = vrcp.f32 %v4071_v33  ;;  %v12139_v49 = vld [vmem:[#allocation16_spill] sm:$0xff] }
 0x264   :  { %12135 = vst [vmem:[#allocation40_spill] sm:$0xff] %v10196_v26  ;;  %v3758_v30 = vmul.f32 %v3630_v34, %v3630_v34  ;;  %v10202_v18 = vpop.eup %6933  ;;  %v10205_v25 = vmul.f32 %v6177_v48, %v10025_v39  ;;  %v6105_v29 = vadd.f32 -1.0, %v3723_v6  ;;  %6945 = vrcp.f32 %v4070_v3  ;;  %v12140_v34 = vld [vmem:[#allocation26_spill] sm:$0xff]  ;;  %v12141_v6 = vld [vmem:[#allocation57_spill] sm:$0xff] }
 0x265   :  { %12136 = vst [vmem:[#allocation52_spill] sm:$0xff] %v10199_v56  ;;  %12137 = vst [vmem:[#allocation114_spill] sm:$0xff] %v10202_v18  ;;  %v3761_v57 = vmul.f32 %v3633_v21, %v3633_v21  ;;  %v6104_v38 = vadd.f32 -1.0, %v3722_v37  ;;  %6947 = vrcp.f32 %v4106_v40  ;;  %v3534_v51 = vmul.f32 1.442695, %v3284_v46 }
 0x266   :  { %12138 = vst [vmem:[#allocation60_spill] sm:$0xff] %v10205_v25  ;;  %v4142_v16 = vadd.f32 1.0, %v3758_v30  ;;  %6949 = vrcp.f32 %v4178_v42  ;;  %v4181_v20 = vadd.f32 1.0, %v3797_v28  ;;  %v3561_v53 = vadd.f32 1.0, %v12139_v49 }
 0x267   :  { %v4145_v58 = vadd.f32 1.0, %v3761_v57  ;;  %v6176_v55 = vadd.f32 -1.0, %v3794_v61  ;;  %v3540_v33 = vmul.f32 1.442695, %v3287_v41  ;;  %v3560_v26 = vadd.f32 1.0, %v12140_v34 }
 0x268   :  { %6951 = vrcp.f32 %v4142_v16  ;;  %v6069_v18 = vadd.f32 -1.0, %v3687_v44  ;;  %v3689_v48 = vmul.f32 %v3561_v53, %v3561_v53  ;;  %v3632_v3 = vadd.f32 1.0, %v12141_v6 }
 0x269   :  { %6953 = vrcp.f32 %v4145_v58  ;;  %v10210_v21 = vpop.eup %6935  ;;  %v10213_v37 = vmul.f32 %v6105_v29, %v10030_v4  ;;  %v6068_v40 = vadd.f32 -1.0, %v3686_v15  ;;  %v3688_v42 = vmul.f32 %v3560_v26, %v3560_v26 }
 0x26a   :  { %12142 = vst [vmem:[#allocation16_spill] sm:$0xff] %v10210_v21  ;;  %6955 = vpow2.f32 %v3534_v51  ;;  %v6938_v46 = vpop.eup %6937  ;;  %v10217_v61 = vadd.f32 %v10075_v60, %v10082_v13  ;;  %v4073_v41 = vadd.f32 1.0, %v3689_v48  ;;  %v3760_v44 = vmul.f32 %v3632_v3, %v3632_v3  ;;  %v12148_v51 = vld [vmem:[#allocation15_spill] sm:$0xff]  ;;  %v12149_v13 = vld [vmem:[#allocation10_spill] sm:$0xff]  ;;  %v12150_v3 = vld [vmem:[#allocation44_spill] sm:$0xff] }
 0x26b   :  { %12143 = vst [vmem:[#allocation26_spill] sm:$0xff] %v10213_v37  ;;  %6957 = vrcp.f32 %v4181_v20  ;;  %v10219_v16 = vpop.eup %6939  ;;  %v10222_v53 = vmul.f32 %v6104_v38, %v10042_v50  ;;  %v10225_v58 = vmul.f32 %v6176_v55, %v10079_v0  ;;  %v4072_v29 = vadd.f32 1.0, %v3688_v42 }
 0x26c   :  { %12144 = vst [vmem:[#allocation57_spill] sm:$0xff] %v10217_v61  ;;  %12145 = vst [vmem:[#allocation151_spill] sm:$0xff] %v10219_v16  ;;  %6959 = vpow2.f32 %v3540_v33  ;;  %v6942_v15 = vpop.eup %6941  ;;  %v10227_v26 = vadd.f32 -1.0, %v3797_v28  ;;  %v3943_v20 = vmul.f32 %v6069_v18, %v12148_v51  ;;  %v3635_v49 = vadd.f32 1.0, %v12149_v13 }
 0x26d   :  { %12146 = vst [vmem:[#allocation152_spill] sm:$0xff] %v10222_v53  ;;  %12147 = vst [vmem:[#allocation153_spill] sm:$0xff] %v10225_v58  ;;  %6961 = vrcp.f32 %v4073_v41  ;;  %v6944_v34 = vpop.eup %6943  ;;  %v10231_v6 = vadd.f32 1.0, %v6938_v46  ;;  %v3942_v39 = vmul.f32 %v6068_v40, %v12150_v3  ;;  %v6140_v38 = vadd.f32 -1.0, %v3758_v30 }
 0x26e   :  { %6963 = vrcp.f32 %v4072_v29  ;;  %v6946_v50 = vpop.eup %6945  ;;  %v3215_v55 = vmin.f32 %v10217_v61, 20.0  ;;  %v4327_v33 = vmul.f32 %v6944_v34, %v3943_v20  ;;  %v6143_v0 = vadd.f32 -1.0, %v3761_v57  ;;  %v12154_v29 = vld [vmem:[#allocation31_spill] sm:$0xff] }
 0x26f   :  { %v4144_v53 = vadd.f32 1.0, %v3760_v44  ;;  %v10235_v28 = vpop.eup %6947  ;;  %v10237_v58 = vadd.f32 1.0, %v6942_v15  ;;  %v10241_v18 = vadd.f32 %v10075_v60, %v10089_v24  ;;  %vm4455_vm10 = vcmp.gt.f32.partialorder %v12148_v51, 20.0  ;;  %v12156_v24 = vld [vmem:[#allocation105_spill] sm:$0xff] }
 0x270   :  { %12151 = vst [vmem:[#allocation15_spill] sm:$0xff] %v10235_v28  ;;  %v4326_v46 = vmul.f32 %v6946_v50, %v3942_v39  ;;  %v10244_v40 = vpop.eup %6949  ;;  %v4583_v30 = vsel %vm4455_vm10, %v12148_v51, %v4327_v33  ;;  %v3763_v41 = vmul.f32 %v3635_v49, %v3635_v49  ;;  %v3563_v57 = vadd.f32 1.0, %v12154_v29  ;;  %v12157_v51 = vld [vmem:[#allocation11_spill] sm:$0xff] }
 0x271   :  { %12152 = vst [vmem:[#allocation10_spill] sm:$0xff] %v10241_v18  ;;  %12153 = vst [vmem:[#allocation44_spill] sm:$0xff] %v10244_v40  ;;  %6965 = vrcp.f32 %v4144_v53  ;;  %v10250_v15 = vadd.f32 %v10075_v60, %v10095_v2  ;;  %vm4454_vm11 = vcmp.gt.f32.partialorder %v12150_v3, 20.0  ;;  %v4014_v13 = vmul.f32 %v6140_v38, %v12156_v24 }
 0x272   :  { %v6952_v20 = vpop.eup %6951  ;;  %v6071_v34 = vadd.f32 -1.0, %v3689_v48  ;;  %v4718_v39 = vmul.f32 %v9949_v62, %v4583_v30  ;;  %v4582_v50 = vsel %vm4454_vm11, %v12150_v3, %v4326_v46  ;;  %v4017_v53 = vmul.f32 %v6143_v0, %v12157_v51 }
 0x273   :  { %12155 = vst [vmem:[#allocation31_spill] sm:$0xff] %v10250_v15  ;;  %v6954_v28 = vpop.eup %6953  ;;  %v6070_v49 = vadd.f32 -1.0, %v3688_v42  ;;  %v3396_v29 = vmul.f32 1.442695, %v3215_v55  ;;  %v4717_v40 = vmul.f32 %v9949_v62, %v4582_v50  ;;  %v4398_v2 = vmul.f32 %v6952_v20, %v4014_v13  ;;  %v12159_v42 = vld [vmem:[#allocation106_spill] sm:$0xff] }
 0x274   :  { %v10257_v33 = vpop.eup %6955  ;;  %vm4526_vm12 = vcmp.gt.f32.partialorder %v12156_v24, 20.0  ;;  %4859 = vadd.xlane.f32.xlu1 %v4718_v39  ;;  %v4401_v48 = vmul.f32 %v6954_v28, %v4017_v53  ;;  %vm4529_vm13 = vcmp.gt.f32.partialorder %v12157_v51, 20.0  ;;  %v4147_v38 = vadd.f32 1.0, %v3763_v41  ;;  %v12160_v50 = vld [vmem:[#allocation66_spill] sm:$0xff]  ;;  %v12161_v28 = vld [vmem:[#allocation21_spill] sm:$0xff] }
 0x275   :  { %v10261_v60 = vpop.eup %6957  ;;  %v3691_v30 = vmul.f32 %v3563_v57, %v3563_v57  ;;  %4857 = vadd.xlane.f32.xlu0 %v4717_v40  ;;  %v4654_v0 = vsel %vm4526_vm12, %v12156_v24, %v4398_v2  ;;  %v3945_v55 = vmul.f32 %v6071_v34, %v12159_v42  ;;  %v6142_v46 = vadd.f32 -1.0, %v3760_v44  ;;  %v12162_v34 = vld [vmem:[#allocation116_spill] sm:$0xff] }
 0x276   :  { %12158 = vst [vmem:[#allocation105_spill] sm:$0xff] %v10261_v60  ;;  %v10264_v3 = vpop.eup %6959  ;;  %v3562_v20 = vadd.f32 1.0, %v12160_v50  ;;  %v4789_v4 = vmul.f32 %v9949_v62, %v4654_v0  ;;  %v4657_v39 = vsel %vm4529_vm13, %v12157_v51, %v4401_v48  ;;  %v3944_v53 = vmul.f32 %v6070_v49, %v12161_v28  ;;  %v12163_v48 = vld [vmem:[#allocation25_spill] sm:$0xff] }
 0x277   :  { %v6962_v13 = vpop.eup %6961  ;;  %6967 = vrcp.f32 %v4147_v38  ;;  %v4792_v57 = vmul.f32 %v9949_v62, %v4657_v39  ;;  %vm4457_vm14 = vcmp.gt.f32.partialorder %v12159_v42, 20.0  ;;  %v4075_v40 = vadd.f32 1.0, %v3691_v30  ;;  %v12164_v38 = vld [vmem:[#allocation71_spill] sm:$0xff] }
 0x278   :  { %v6964_v60 = vpop.eup %6963  ;;  %v4329_v21 = vmul.f32 %v6962_v13, %v3945_v55  ;;  %5001 = vadd.xlane.f32.xlu1 %v4789_v4  ;;  %vm4456_vm15 = vcmp.gt.f32.partialorder %v12161_v28, 20.0  ;;  %v3690_v44 = vmul.f32 %v3562_v20, %v3562_v20  ;;  %v3634_v2 = vadd.f32 1.0, %v12162_v34 }
 0x279   :  { %v4328_v24 = vmul.f32 %v6964_v60, %v3944_v53  ;;  %5007 = vadd.xlane.f32.xlu0 %v4792_v57  ;;  %v4016_v49 = vmul.f32 %v6142_v46, %v12163_v48  ;;  %6969 = vrcp.f32 %v4075_v40  ;;  %v3637_v0 = vadd.f32 1.0, %v12164_v38 }
 0x27a   :  { %v4585_v51 = vsel %vm4457_vm14, %v12159_v42, %v4329_v21  ;;  %v6145_v4 = vadd.f32 -1.0, %v3763_v41  ;;  %v4074_v60 = vadd.f32 1.0, %v3690_v44  ;;  %v3762_v53 = vmul.f32 %v3634_v2, %v3634_v2  ;;  %v12165_v42 = vld [vmem:[#allocation75_spill] sm:$0xff] }
 0x27b   :  { %v6966_v50 = vpop.eup %6965  ;;  %v4720_v55 = vmul.f32 %v9949_v62, %v4585_v51  ;;  %v4584_v13 = vsel %vm4456_vm15, %v12161_v28, %v4328_v24  ;;  %v3765_v34 = vmul.f32 %v3637_v0, %v3637_v0  ;;  %v10284_v21 = vmul.f32 %v10231_v6, %v10231_v6  ;;  %v12167_v0 = vld [vmem:[#allocation72_spill] sm:$0xff] }
 0x27c   :  { %v4719_v39 = vmul.f32 %v9949_v62, %v4584_v13  ;;  %v4400_v20 = vmul.f32 %v6966_v50, %v4016_v49  ;;  %vm4528_vm0 = vcmp.gt.f32.partialorder %v12163_v48, 20.0  ;;  %6971 = vrcp.f32 %v4074_v60  ;;  %v12166_v49 = vld [vmem:[#allocation109_spill] sm:$0xff] }
 0x27d   :  { %4863 = vadd.xlane.f32.xlu1 %v4720_v55  ;;  %v3565_v46 = vadd.f32 1.0, %v12165_v42  ;;  %6973 = vpow2.f32 %v3396_v29  ;;  %v4146_v57 = vadd.f32 1.0, %v3762_v53  ;;  %v6073_v24 = vadd.f32 -1.0, %v3691_v30  ;;  %v12170_v42 = vld [vmem:[#allocation58_spill] sm:$0xff] }
 0x27e   :  { %4861 = vadd.xlane.f32.xlu0 %v4719_v39  ;;  %v4656_v41 = vsel %vm4528_vm0, %v12163_v48, %v4400_v20  ;;  %v4149_v2 = vadd.f32 1.0, %v3765_v34  ;;  %v10293_v6 = vmul.f32 %v10237_v58, %v10237_v58  ;;  %v4019_v38 = vmul.f32 %v6145_v4, %v12166_v49  ;;  %v12168_v48 = vld [vmem:[#allocation56_spill] sm:$0xff]  ;;  %v12171_v4 = vld [vmem:[#allocation38_spill] sm:$0xff] }
 0x27f   :  { %v4791_v40 = vmul.f32 %v9949_v62, %v4656_v41  ;;  %v3693_v51 = vmul.f32 %v3565_v46, %v3565_v46  ;;  %6975 = vrcp.f32 %v4146_v57  ;;  %v3564_v29 = vadd.f32 1.0, %v12167_v0  ;;  %v12169_v39 = vld [vmem:[#allocation76_spill] sm:$0xff]  ;;  %v12172_v0 = vld [vmem:[#allocation115_spill] sm:$0xff] }
 0x280   :  { %vm4531_vm1 = vcmp.gt.f32.partialorder %v12166_v49, 20.0  ;;  %vm4459_vm2 = vcmp.gt.f32.partialorder %v12168_v48, 20.0  ;;  %6977 = vrcp.f32 %v4149_v2  ;;  %v6072_v13 = vadd.f32 -1.0, %v3690_v44 }
 0x281   :  { %v6968_v50 = vpop.eup %6967  ;;  %5005 = vadd.xlane.f32.xlu1 %v4791_v40  ;;  %v4077_v55 = vadd.f32 1.0, %v3693_v51  ;;  %v3692_v60 = vmul.f32 %v3564_v29, %v3564_v29  ;;  %v3636_v20 = vadd.f32 1.0, %v12169_v39  ;;  %v3947_v58 = vmul.f32 %v6073_v24, %v12168_v48  ;;  %v10307_v24 = vpop.xlane.xlu0 %4945 }
 0x282   :  { %v4403_v30 = vmul.f32 %v6968_v50, %v4019_v38  ;;  %vm4458_vm3 = vcmp.gt.f32.partialorder %v12170_v42, 20.0  ;;  %v3639_v46 = vadd.f32 1.0, %v12171_v4  ;;  %v6144_v40 = vadd.f32 -1.0, %v3762_v53  ;;  %v12173_v50 = vld [vmem:[#allocation27_spill] sm:$0xff]  ;;  %12174 = vst [vmem:[#allocation11_spill] sm:$0xff] %v10307_v24 }
 0x283   :  { %6979 = vrcp.f32 %v4077_v55  ;;  %v6970_v41 = vpop.eup %6969  ;;  %vm4530_vm4 = vcmp.gt.f32.partialorder %v12172_v0, 20.0  ;;  %v4076_v2 = vadd.f32 1.0, %v3692_v60  ;;  %v3764_v28 = vmul.f32 %v3636_v20, %v3636_v20 }
 0x284   :  { %v4659_v57 = vsel %vm4531_vm1, %v12166_v49, %v4403_v30  ;;  %v4331_v38 = vmul.f32 %v6970_v41, %v3947_v58  ;;  %v3767_v29 = vmul.f32 %v3639_v46, %v3639_v46  ;;  %v3567_v39 = vadd.f32 1.0, %v12173_v50  ;;  %v12177_v50 = vld [vmem:[#allocation80_spill] sm:$0xff] }
 0x285   :  { %v4794_v44 = vmul.f32 %v9949_v62, %v4659_v57  ;;  %v3946_v55 = vmul.f32 %v6072_v13, %v12170_v42  ;;  %v6147_v25 = vadd.f32 -1.0, %v3765_v34  ;;  %6981 = vrcp.f32 %v4076_v2  ;;  %v12175_v13 = vld [vmem:[#allocation23_spill] sm:$0xff] }
 0x286   :  { %v4148_v4 = vadd.f32 1.0, %v3764_v28  ;;  %v6972_v16 = vpop.eup %6971  ;;  %v4587_v53 = vsel %vm4459_vm2, %v12168_v48, %v4331_v38  ;;  %v6075_v49 = vadd.f32 -1.0, %v3693_v51  ;;  %v4151_v30 = vadd.f32 1.0, %v3767_v29  ;;  %v12176_v38 = vld [vmem:[#allocation20_spill] sm:$0xff] }
 0x287   :  { %5011 = vadd.xlane.f32.xlu0 %v4794_v44  ;;  %v3695_v20 = vmul.f32 %v3567_v39, %v3567_v39  ;;  %v10313_v58 = vpop.eup %6973  ;;  %v4722_v46 = vmul.f32 %v9949_v62, %v4587_v53  ;;  %v4330_v41 = vmul.f32 %v6972_v16, %v3946_v55  ;;  %v6074_v57 = vadd.f32 -1.0, %v3692_v60  ;;  %v10324_v60 = vpop.xlane.xlu1 %4947 }
 0x288   :  { %6983 = vrcp.f32 %v4148_v4  ;;  %v4018_v34 = vmul.f32 %v6144_v40, %v12172_v0  ;;  %vm4533_vm5 = vcmp.gt.f32.partialorder %v12175_v13, 20.0  ;;  %v4021_v48 = vmul.f32 %v6147_v25, %v12175_v13  ;;  %12178 = vst [vmem:[#allocation106_spill] sm:$0xff] %v10324_v60  ;;  %v10328_v53 = vpop.xlane.xlu0 %4949  ;;  %v12181_v25 = vld [vmem:[#allocation45_spill] sm:$0xff] }
 0x289   :  { %6985 = vrcp.f32 %v4151_v30  ;;  %v4079_v2 = vadd.f32 1.0, %v3695_v20  ;;  %v6976_v44 = vpop.eup %6975  ;;  %4867 = vadd.xlane.f32.xlu1 %v4722_v46  ;;  %v4586_v51 = vsel %vm4458_vm3, %v12170_v42, %v4330_v41  ;;  %vm4461_vm6 = vcmp.gt.f32.partialorder %v12176_v38, 20.0  ;;  %12179 = vst [vmem:[#allocation66_spill] sm:$0xff] %v10328_v53  ;;  %v12180_v46 = vld [vmem:[#allocation59_spill] sm:$0xff] }
 0x28a   :  { %v3566_v16 = vadd.f32 1.0, %v12177_v50  ;;  %v6978_v39 = vpop.eup %6977  ;;  %v4721_v40 = vmul.f32 %v9949_v62, %v4586_v51  ;;  %v4402_v55 = vmul.f32 %v6976_v44, %v4018_v34  ;;  %v3949_v4 = vmul.f32 %v6075_v49, %v12176_v38  ;;  %v12182_v51 = vld [vmem:[#allocation53_spill] sm:$0xff] }
 0x28b   :  { %6987 = vrcp.f32 %v4079_v2  ;;  %v4405_v30 = vmul.f32 %v6978_v39, %v4021_v48  ;;  %v3948_v42 = vmul.f32 %v6074_v57, %v12180_v46  ;;  %v3638_v24 = vadd.f32 1.0, %v12181_v25  ;;  %v12183_v44 = vld [vmem:[#allocation121_spill] sm:$0xff] }
 0x28c   :  { %v3694_v41 = vmul.f32 %v3566_v16, %v3566_v16  ;;  %4865 = vadd.xlane.f32.xlu0 %v4721_v40  ;;  %v4658_v50 = vsel %vm4530_vm4, %v12172_v0, %v4402_v55  ;;  %v6146_v60 = vadd.f32 -1.0, %v3764_v28  ;;  %v3568_v34 = vadd.f32 1.0, %v12182_v51  ;;  %v12187_v51 = vld [vmem:[#allocation24_spill] sm:$0xff] }
 0x28d   :  { %v6980_v37 = vpop.eup %6979  ;;  %v3569_v49 = vadd.f32 1.0, %v12183_v44  ;;  %v4793_v2 = vmul.f32 %v9949_v62, %v4658_v50  ;;  %v4661_v57 = vsel %vm4533_vm5, %v12175_v13, %v4405_v30  ;;  %v6149_v16 = vadd.f32 -1.0, %v3767_v29  ;;  %v10346_v50 = vpop.xlane.xlu1 %4951  ;;  %v12185_v29 = vld [vmem:[#allocation61_spill] sm:$0xff] }
 0x28e   :  { %v4333_v48 = vmul.f32 %v6980_v37, %v3949_v4  ;;  %v4796_v39 = vmul.f32 %v9949_v62, %v4661_v57  ;;  %v4078_v40 = vadd.f32 1.0, %v3694_v41  ;;  %v3766_v25 = vmul.f32 %v3638_v24, %v3638_v24  ;;  %12184 = vst [vmem:[#allocation21_spill] sm:$0xff] %v10346_v50  ;;  %v10350_v24 = vpop.xlane.xlu0 %4953  ;;  %v12202_v50 = vld [vmem:[#allocation54_spill] sm:$0xff] }
 0x28f   :  { %v3696_v53 = vmul.f32 %v3568_v34, %v3568_v34  ;;  %v6982_v56 = vpop.eup %6981  ;;  %5009 = vadd.xlane.f32.xlu1 %v4793_v2  ;;  %vm4460_vm7 = vcmp.gt.f32.partialorder %v12180_v46, 20.0  ;;  %v6077_v0 = vadd.f32 -1.0, %v3695_v20  ;;  %v3697_v55 = vmul.f32 %v3569_v49, %v3569_v49  ;;  %12186 = vst [vmem:[#allocation116_spill] sm:$0xff] %v10350_v24 }
 0x290   :  { %v4589_v28 = vsel %vm4461_vm6, %v12176_v38, %v4333_v48  ;;  %5015 = vadd.xlane.f32.xlu0 %v4796_v39  ;;  %v4332_v37 = vmul.f32 %v6982_v56, %v3948_v42  ;;  %v4020_v13 = vmul.f32 %v6146_v60, %v12185_v29  ;;  %vm4532_vm8 = vcmp.gt.f32.partialorder %v12185_v29, 20.0  ;;  %v12188_v48 = vld [vmem:[#allocation117_spill] sm:$0xff] }
 0x291   :  { %6989 = vrcp.f32 %v4078_v40  ;;  %v4724_v30 = vmul.f32 %v9949_v62, %v4589_v28  ;;  %v4023_v38 = vmul.f32 %v6149_v16, %v12187_v51  ;;  %v4150_v34 = vadd.f32 1.0, %v3766_v25  ;;  %v12189_v28 = vld [vmem:[#allocation14_spill] sm:$0xff] }
 0x292   :  { %v6984_v4 = vpop.eup %6983  ;;  %v4080_v44 = vadd.f32 1.0, %v3696_v53  ;;  %v4588_v49 = vsel %vm4460_vm7, %v12180_v46, %v4332_v37  ;;  %v6076_v42 = vadd.f32 -1.0, %v3694_v41  ;;  %v4081_v60 = vadd.f32 1.0, %v3697_v55  ;;  %v10367_v41 = vld [vmem:[%s11410_s5] ss:$0 sm:$0xff] }
 0x293   :  { %v6986_v20 = vpop.eup %6985  ;;  %v4404_v56 = vmul.f32 %v6984_v4, %v4020_v13  ;;  %4871 = vadd.xlane.f32.xlu1 %v4724_v30  ;;  %v4723_v2 = vmul.f32 %v9949_v62, %v4588_v49  ;;  %v3951_v39 = vmul.f32 %v6077_v0, %v12188_v48  ;;  %6991 = vrcp.f32 %v4150_v34  ;;  %v10371_v13 = vpop.xlane.xlu1 %4955 }
 0x294   :  { %v4407_v57 = vmul.f32 %v6986_v20, %v4023_v38  ;;  %vm4535_vm9 = vcmp.gt.f32.partialorder %v12187_v51, 20.0  ;;  %6993 = vrcp.f32 %v4080_v44  ;;  %v3643_v46 = vadd.f32 1.0, %v12189_v28  ;;  %12190 = vst [vmem:[#allocation25_spill] sm:$0xff] %v10371_v13  ;;  %v12192_v38 = vld [vmem:[#allocation46_spill] sm:$0xff]  ;;  %v10376_v44 = vpop.xlane.xlu0 %4957 }
 0x295   :  { %v6988_v40 = vpop.eup %6987  ;;  %v4660_v16 = vsel %vm4532_vm8, %v12185_v29, %v4404_v56  ;;  %4869 = vadd.xlane.f32.xlu0 %v4723_v2  ;;  %6995 = vrcp.f32 %v4081_v60  ;;  %vm4463_vm10 = vcmp.gt.f32.partialorder %v12188_v48, 20.0  ;;  %v12191_v29 = vld [vmem:[#allocation68_spill] sm:$0xff]  ;;  %v3640_v34 = vadd.f32 1.0, %v12192_v38  ;;  %12193 = vst [vmem:[#allocation71_spill] sm:$0xff] %v10376_v44  ;;  %v12195_v28 = vld [vmem:[#allocation94_spill] sm:$0xff]  ;;  %v12196_v38 = vld [vmem:[#allocation87_spill] sm:$0xff] }
 0x296   :  { %v4795_v62 = vmul.f32 %v10367_v41, %v4660_v16  ;;  %v4663_v0 = vsel %vm4535_vm9, %v12187_v51, %v4407_v57  ;;  %v4335_v37 = vmul.f32 %v6988_v40, %v3951_v39  ;;  %v3950_v4 = vmul.f32 %v6076_v42, %v12191_v29  ;;  %v12194_v51 = vld [vmem:[#allocation13_spill] sm:$0xff] }
 0x297   :  { %v3771_v30 = vmul.f32 %v3643_v46, %v3643_v46  ;;  %v4798_v20 = vmul.f32 %v10367_v41, %v4663_v0  ;;  %v6148_v56 = vadd.f32 -1.0, %v3766_v25  ;;  %v3570_v2 = vadd.f32 1.0, %v12194_v51 }
 0x298   :  { %5013 = vadd.xlane.f32.xlu1 %v4795_v62  ;;  %v4591_v49 = vsel %vm4463_vm10, %v12188_v48, %v4335_v37  ;;  %v6078_v60 = vadd.f32 -1.0, %v3696_v53  ;;  %v6079_v57 = vadd.f32 -1.0, %v3697_v55  ;;  %v3768_v40 = vmul.f32 %v3640_v34, %v3640_v34  ;;  %v12197_v55 = vld [vmem:[#allocation28_spill] sm:$0xff]  ;;  %v10387_v34 = vpop.xlane.xlu1 %4959 }
 0x299   :  { %v4155_v39 = vadd.f32 1.0, %v3771_v30  ;;  %5019 = vadd.xlane.f32.xlu0 %v4798_v20  ;;  %v4726_v42 = vmul.f32 %v10367_v41, %v4591_v49  ;;  %v3698_v16 = vmul.f32 %v3570_v2, %v3570_v2  ;;  %v3571_v46 = vadd.f32 1.0, %v12195_v28  ;;  %12198 = vst [vmem:[#allocation75_spill] sm:$0xff] %v10387_v34  ;;  %v12199_v49 = vld [vmem:[#allocation78_spill] sm:$0xff]  ;;  %v10391_v2 = vpop.xlane.xlu0 %4961 }
 0x29a   :  { %v3645_v44 = vadd.f32 1.0, %v12196_v38  ;;  %vm4462_vm11 = vcmp.gt.f32.partialorder %v12191_v29, 20.0  ;;  %v4152_v25 = vadd.f32 1.0, %v3768_v40  ;;  %vm4534_vm12 = vcmp.gt.f32.partialorder %v12197_v55, 20.0  ;;  %12200 = vst [vmem:[#allocation109_spill] sm:$0xff] %v10391_v2 }
 0x29b   :  { %v6990_v62 = vpop.eup %6989  ;;  %6997 = vrcp.f32 %v4155_v39  ;;  %v4082_v48 = vadd.f32 1.0, %v3698_v16  ;;  %v3699_v37 = vmul.f32 %v3571_v46, %v3571_v46  ;;  %v4022_v20 = vmul.f32 %v6148_v56, %v12197_v55 }
 0x29c   :  { %4875 = vadd.xlane.f32.xlu1 %v4726_v42  ;;  %v4334_v53 = vmul.f32 %v6990_v62, %v3950_v4  ;;  %vm4464_vm13 = vcmp.gt.f32.partialorder %v12199_v49, 20.0  ;;  %6999 = vrcp.f32 %v4152_v25  ;;  %v3773_v51 = vmul.f32 %v3645_v44, %v3645_v44  ;;  %v12201_v4 = vld [vmem:[#allocation119_spill] sm:$0xff] }
 0x29d   :  { %v6992_v28 = vpop.eup %6991  ;;  %v3952_v42 = vmul.f32 %v6078_v60, %v12199_v49  ;;  %v3953_v38 = vmul.f32 %v6079_v57, %v12201_v4  ;;  %7001 = vrcp.f32 %v4082_v48  ;;  %v6153_v34 = vadd.f32 -1.0, %v3771_v30 }
 0x29e   :  { %v4590_v39 = vsel %vm4462_vm11, %v12191_v29, %v4334_v53  ;;  %v6994_v62 = vpop.eup %6993  ;;  %v4406_v0 = vmul.f32 %v6992_v28, %v4022_v20  ;;  %v4083_v56 = vadd.f32 1.0, %v3699_v37  ;;  %v6150_v25 = vadd.f32 -1.0, %v3768_v40  ;;  %v10406_v53 = vpop.xlane.xlu1 %4963  ;;  %v12206_v28 = vld [vmem:[#allocation79_spill] sm:$0xff] }
 0x29f   :  { %v4725_v46 = vmul.f32 %v10367_v41, %v4590_v39  ;;  %v6996_v13 = vpop.eup %6995  ;;  %v4336_v24 = vmul.f32 %v6994_v62, %v3952_v42  ;;  %v4157_v44 = vadd.f32 1.0, %v3773_v51  ;;  %v3642_v2 = vadd.f32 1.0, %v12202_v50  ;;  %12203 = vst [vmem:[#allocation72_spill] sm:$0xff] %v10406_v53  ;;  %v12207_v42 = vld [vmem:[#allocation32_spill] sm:$0xff] }
 0x2a0   :  { %v4662_v29 = vsel %vm4534_vm12, %v12197_v55, %v4406_v0  ;;  %v4337_v60 = vmul.f32 %v6996_v13, %v3953_v38  ;;  %vm4465_vm14 = vcmp.gt.f32.partialorder %v12201_v4, 20.0  ;;  %7003 = vrcp.f32 %v4083_v56  ;;  %v12204_v0 = vld [vmem:[#allocation48_spill] sm:$0xff]  ;;  %v10411_v55 = vpop.xlane.xlu0 %4965 }
 0x2a1   :  { %4873 = vadd.xlane.f32.xlu0 %v4725_v46  ;;  %v4797_v57 = vmul.f32 %v10367_v41, %v4662_v29  ;;  %v4592_v30 = vsel %vm4464_vm13, %v12199_v49, %v4336_v24  ;;  %7005 = vrcp.f32 %v4157_v44  ;;  %v3770_v40 = vmul.f32 %v3642_v2, %v3642_v2  ;;  %12205 = vst [vmem:[#allocation56_spill] sm:$0xff] %v10411_v55  ;;  %v12208_v46 = vld [vmem:[#allocation67_spill] sm:$0xff] }
 0x2a2   :  { %v4727_v50 = vmul.f32 %v10367_v41, %v4592_v30  ;;  %v4593_v48 = vsel %vm4465_vm14, %v12201_v4, %v4337_v60  ;;  %v6080_v20 = vadd.f32 -1.0, %v3698_v16  ;;  %v3572_v13 = vadd.f32 1.0, %v12204_v0  ;;  %v12209_v4 = vld [vmem:[#allocation22_spill] sm:$0xff] }
 0x2a3   :  { %5017 = vadd.xlane.f32.xlu1 %v4797_v57  ;;  %v4027_v39 = vmul.f32 %v6153_v34, %v12206_v28  ;;  %vm4539_vm15 = vcmp.gt.f32.partialorder %v12206_v28, 20.0  ;;  %v4024_v24 = vmul.f32 %v6150_v25, %v12207_v42  ;;  %v4154_v49 = vadd.f32 1.0, %v3770_v40  ;;  %v12210_v34 = vld [vmem:[#allocation84_spill] sm:$0xff] }
 0x2a4   :  { %v6081_v38 = vadd.f32 -1.0, %v3699_v37  ;;  %v3700_v62 = vmul.f32 %v3572_v13, %v3572_v13  ;;  %v3573_v56 = vadd.f32 1.0, %v12208_v46  ;;  %v3644_v16 = vadd.f32 1.0, %v12209_v4  ;;  %v12214_v46 = vld [vmem:[#allocation82_spill] sm:$0xff] }
 0x2a5   :  { %v6998_v2 = vpop.eup %6997  ;;  %4877 = vadd.xlane.f32.xlu0 %v4727_v50  ;;  %v4728_v44 = vmul.f32 %v10367_v41, %v4593_v48  ;;  %v6155_v60 = vadd.f32 -1.0, %v3773_v51  ;;  %7007 = vrcp.f32 %v4154_v49  ;;  %v3954_v30 = vmul.f32 %v6080_v20, %v12210_v34  ;;  %v10425_v48 = vpop.xlane.xlu1 %4967  ;;  %v12212_v20 = vld [vmem:[#allocation36_spill] sm:$0xff] }
 0x2a6   :  { %v4411_v29 = vmul.f32 %v6998_v2, %v4027_v39  ;;  %v7000_v57 = vpop.eup %6999  ;;  %v4084_v0 = vadd.f32 1.0, %v3700_v62  ;;  %v3701_v55 = vmul.f32 %v3573_v56, %v3573_v56  ;;  %v3772_v25 = vmul.f32 %v3644_v16, %v3644_v16  ;;  %12211 = vst [vmem:[#allocation76_spill] sm:$0xff] %v10425_v48  ;;  %v10429_v49 = vpop.xlane.xlu0 %4969 }
 0x2a7   :  { %v7002_v53 = vpop.eup %7001  ;;  %4879 = vadd.xlane.f32.xlu1 %v4728_v44  ;;  %v4408_v50 = vmul.f32 %v7000_v57, %v4024_v24  ;;  %vm4536_vm0 = vcmp.gt.f32.partialorder %v12207_v42, 20.0  ;;  %vm4466_vm1 = vcmp.gt.f32.partialorder %v12210_v34, 20.0  ;;  %v3955_v39 = vmul.f32 %v6081_v38, %v12212_v20  ;;  %12213 = vst [vmem:[#allocation58_spill] sm:$0xff] %v10429_v49  ;;  %v12215_v24 = vld [vmem:[#allocation111_spill] sm:$0xff] }
 0x2a8   :  { %v4667_v37 = vsel %vm4539_vm15, %v12206_v28, %v4411_v29  ;;  %v4338_v13 = vmul.f32 %v7002_v53, %v3954_v30  ;;  %7009 = vrcp.f32 %v4084_v0  ;;  %v4029_v56 = vmul.f32 %v6155_v60, %v12214_v46 }
 0x2a9   :  { %v4802_v51 = vmul.f32 %v10367_v41, %v4667_v37  ;;  %v4664_v2 = vsel %vm4536_vm0, %v12207_v42, %v4408_v50  ;;  %v4085_v28 = vadd.f32 1.0, %v3701_v55  ;;  %v3575_v4 = vadd.f32 1.0, %v12215_v24 }
 0x2aa   :  { %v7004_v16 = vpop.eup %7003  ;;  %v4799_v44 = vmul.f32 %v10367_v41, %v4664_v2  ;;  %v4594_v29 = vsel %vm4466_vm1, %v12210_v34, %v4338_v13  ;;  %v6152_v57 = vadd.f32 -1.0, %v3770_v40  ;;  %v4156_v53 = vadd.f32 1.0, %v3772_v25 }
 0x2ab   :  { %5027 = vadd.xlane.f32.xlu0 %v4802_v51  ;;  %v7006_v30 = vpop.eup %7005  ;;  %v10437_v38 = vadd.f32 -1.0, %v10284_v21  ;;  %v4109_v0 = vadd.f32 1.0, %v10284_v21  ;;  %v4339_v42 = vmul.f32 %v7004_v16, %v3955_v39  ;;  %7011 = vrcp.f32 %v4085_v28  ;;  %v10444_v51 = vpop.xlane.xlu1 %4971  ;;  %v12217_v39 = vld [vmem:[#allocation120_spill] sm:$0xff]  ;;  %v12218_v28 = vld [vmem:[#allocation122_spill] sm:$0xff] }
 0x2ac   :  { %5021 = vadd.xlane.f32.xlu1 %v4799_v44  ;;  %v4729_v60 = vmul.f32 %v10367_v41, %v4594_v29  ;;  %vm4467_vm2 = vcmp.gt.f32.partialorder %v12212_v20, 20.0  ;;  %v4413_v37 = vmul.f32 %v7006_v30, %v4029_v56  ;;  %7013 = vrcp.f32 %v4156_v53  ;;  %12216 = vst [vmem:[#allocation38_spill] sm:$0xff] %v10444_v51  ;;  %v10450_v16 = vpop.xlane.xlu0 %4973 }
 0x2ad   :  { %v4595_v50 = vsel %vm4467_vm2, %v12212_v20, %v4339_v42  ;;  %vm4541_vm3 = vcmp.gt.f32.partialorder %v12214_v46, 20.0  ;;  %v6082_v40 = vadd.f32 -1.0, %v3700_v62  ;;  %v3703_v34 = vmul.f32 %v3575_v4, %v3575_v4  ;;  %12219 = vst [vmem:[#allocation115_spill] sm:$0xff] %v10450_v16 }
 0x2ae   :  { %v4730_v21 = vmul.f32 %v10367_v41, %v4595_v50  ;;  %v4669_v13 = vsel %vm4541_vm3, %v12214_v46, %v4413_v37  ;;  %v4026_v2 = vmul.f32 %v6152_v57, %v12217_v39  ;;  %v3647_v24 = vadd.f32 1.0, %v12218_v28  ;;  %v12221_v57 = vld [vmem:[#allocation96_spill] sm:$0xff]  ;;  %v12222_v37 = vld [vmem:[#allocation37_spill] sm:$0xff] }
 0x2af   :  { %4881 = vadd.xlane.f32.xlu0 %v4729_v60  ;;  %v7008_v56 = vpop.eup %7007  ;;  %v4108_v20 = vadd.f32 1.0, %v10293_v6  ;;  %v12220_v44 = vmin.f32 %v10241_v18, 20.0  ;;  %vm4538_vm4 = vcmp.gt.f32.partialorder %v12217_v39, 20.0  ;;  %v4087_v4 = vadd.f32 1.0, %v3703_v34 }
 0x2b0   :  { %4883 = vadd.xlane.f32.xlu1 %v4730_v21  ;;  %v4804_v29 = vmul.f32 %v10367_v41, %v4669_v13  ;;  %v4410_v53 = vmul.f32 %v7008_v56, %v4026_v2  ;;  %v6083_v46 = vadd.f32 -1.0, %v3701_v55  ;;  %v3775_v30 = vmul.f32 %v3647_v24, %v3647_v24  ;;  %v10462_v2 = vpop.xlane.xlu1 %4975  ;;  %v12225_v24 = vld [vmem:[#allocation85_spill] sm:$0xff] }
 0x2b1   :  { %v3394_v62 = vmul.f32 1.442695, %v12220_v44  ;;  %v3956_v42 = vmul.f32 %v6082_v40, %v12221_v57  ;;  %v6154_v60 = vadd.f32 -1.0, %v3772_v25  ;;  %7015 = vrcp.f32 %v4087_v4  ;;  %12223 = vst [vmem:[#allocation27_spill] sm:$0xff] %v10462_v2 }
 0x2b2   :  { %v3646_v50 = vadd.f32 1.0, %v12222_v37  ;;  %v7010_v28 = vpop.eup %7009  ;;  %7017 = vrcp.f32 %v4109_v0  ;;  %v3668_v16 = vadd.f32 1.0, %v10257_v33  ;;  %v4666_v44 = vsel %vm4538_vm4, %v12217_v39, %v4410_v53  ;;  %v10468_v33 = vpop.xlane.xlu0 %4835  ;;  %v12227_v53 = vld [vmem:[#allocation65_spill] sm:$0xff] }
 0x2b3   :  { %5031 = vadd.xlane.f32.xlu0 %v4804_v29  ;;  %v4159_v51 = vadd.f32 1.0, %v3775_v30  ;;  %7019 = vrcp.f32 %v4108_v20  ;;  %v4801_v21 = vmul.f32 %v10367_v41, %v4666_v44  ;;  %v4340_v13 = vmul.f32 %v7010_v28, %v3956_v42  ;;  %v12226_v20 = vld [vmem:[#allocation34_spill] sm:$0xff] }
 0x2b4   :  { %v3774_v55 = vmul.f32 %v3646_v50, %v3646_v50  ;;  %v12224_v25 = vmin.f32 %v10250_v15, 20.0  ;;  %vm4468_vm5 = vcmp.gt.f32.partialorder %v12221_v57, 20.0  ;;  %v3957_v0 = vmul.f32 %v6083_v46, %v12225_v24 }
 0x2b5   :  { %7021 = vrcp.f32 %v4159_v51  ;;  %v7012_v56 = vpop.eup %7011  ;;  %5025 = vadd.xlane.f32.xlu1 %v4801_v21  ;;  %v4596_v39 = vsel %vm4468_vm5, %v12221_v57, %v4340_v13  ;;  %v4028_v4 = vmul.f32 %v6154_v60, %v12226_v20  ;;  %v3574_v42 = vadd.f32 1.0, %v12227_v53  ;;  %v12228_v60 = vld [vmem:[#allocation125_spill] sm:$0xff] }
 0x2b6   :  { %v3538_v40 = vmul.f32 1.442695, %v12224_v25  ;;  %v4158_v29 = vadd.f32 1.0, %v3774_v55  ;;  %v7014_v37 = vpop.eup %7013  ;;  %v10473_v50 = vmul.f32 %v3668_v16, %v3668_v16  ;;  %v4731_v28 = vmul.f32 %v10367_v41, %v4596_v39  ;;  %v10486_v53 = vpop.xlane.xlu0 %4833 }
 0x2b7   :  { %v4341_v44 = vmul.f32 %v7012_v56, %v3957_v0  ;;  %v6085_v25 = vadd.f32 -1.0, %v3703_v34  ;;  %vm4469_vm6 = vcmp.gt.f32.partialorder %v12225_v24, 20.0  ;;  %v4412_v51 = vmul.f32 %v7014_v37, %v4028_v4  ;;  %v10482_v34 = vpop.xlane.xlu1 %4979  ;;  %v12230_v4 = vld [vmem:[#allocation41_spill] sm:$0xff] }
 0x2b8   :  { %7023 = vrcp.f32 %v4158_v29  ;;  %v3702_v46 = vmul.f32 %v3574_v42, %v3574_v42  ;;  %4885 = vadd.xlane.f32.xlu0 %v4731_v28  ;;  %vm4540_vm7 = vcmp.gt.f32.partialorder %v12226_v20, 20.0  ;;  %v3577_v21 = vadd.f32 1.0, %v12228_v60  ;;  %12229 = vst [vmem:[#allocation23_spill] sm:$0xff] %v10482_v34  ;;  %v12236_v60 = vld [vmem:[#allocation47_spill] sm:$0xff] }
 0x2b9   :  { %7025 = vpow2.f32 %v3394_v62  ;;  %v4597_v57 = vsel %vm4469_vm6, %v12225_v24, %v4341_v44  ;;  %v4668_v13 = vsel %vm4540_vm7, %v12226_v20, %v4412_v51  ;;  %v6157_v39 = vadd.f32 -1.0, %v3775_v30  ;;  %v12232_v30 = vld [vmem:[#allocation73_spill] sm:$0xff] }
 0x2ba   :  { %v4732_v16 = vmul.f32 %v10367_v41, %v4597_v57  ;;  %v4086_v0 = vadd.f32 1.0, %v3702_v46  ;;  %7027 = vpow2.f32 %v3538_v40  ;;  %v4803_v56 = vmul.f32 %v10367_v41, %v4668_v13  ;;  %v10499_v40 = vld [vmem:[%s11409_s4] ss:$0 sm:$0xff]  ;;  %v10522_v48 = vpop.xlane.xlu0 %4977 }
 0x2bb   :  { %v3959_v62 = vmul.f32 %v6085_v25, %v12230_v4  ;;  %v3705_v29 = vmul.f32 %v3577_v21, %v3577_v21  ;;  %v7016_v24 = vpop.eup %7015  ;;  %v10490_v42 = vmul.f32 %v10227_v26, %v10099_v17  ;;  %v6106_v37 = vadd.f32 -1.0, %v10293_v6  ;;  %v10519_v34 = vpop.xlane.xlu1 %4839  ;;  %12240 = vst [vmem:[#allocation121_spill] sm:$0xff] %v10522_v48 }
 0x2bc   :  { %4887 = vadd.xlane.f32.xlu1 %v4732_v16  ;;  %7029 = vrcp.f32 %v4086_v0  ;;  %v3649_v20 = vadd.f32 1.0, %v12232_v30  ;;  %v10494_v28 = vpop.eup %7017  ;;  %v10503_v44 = vadd.f32 %v10499_v40, %v10114_v45  ;;  %5029 = vadd.xlane.f32.xlu0 %v4803_v56  ;;  %v6156_v25 = vadd.f32 -1.0, %v3774_v55  ;;  %v12238_v56 = vld [vmem:[#allocation70_spill] sm:$0xff] }
 0x2bd   :  { %12231 = vst [vmem:[#allocation20_spill] sm:$0xff] %v10490_v42  ;;  %12233 = vst [vmem:[#allocation80_spill] sm:$0xff] %v10494_v28  ;;  %v4343_v26 = vmul.f32 %v7016_v24, %v3959_v62  ;;  %v4089_v51 = vadd.f32 1.0, %v3705_v29  ;;  %v10505_v6 = vpop.eup %7019  ;;  %v4180_v57 = vadd.f32 1.0, %v10473_v50  ;;  %vm4471_vm8 = vcmp.gt.f32.partialorder %v12230_v4, 20.0 }
 0x2be   :  { %12234 = vst [vmem:[#allocation59_spill] sm:$0xff] %v10503_v44  ;;  %12235 = vst [vmem:[#allocation45_spill] sm:$0xff] %v10505_v6  ;;  %v4031_v21 = vmul.f32 %v6157_v39, %v12236_v60  ;;  %v3777_v16 = vmul.f32 %v3649_v20, %v3649_v20  ;;  %v10512_v0 = vmul.f32 %v10437_v38, %v10144_v31  ;;  %v3648_v55 = vadd.f32 1.0, %v12238_v56  ;;  %v12239_v39 = vld [vmem:[#allocation42_spill] sm:$0xff] }
 0x2bf   :  { %v7022_v13 = vpop.eup %7021  ;;  %v4599_v45 = vsel %vm4471_vm8, %v12230_v4, %v4343_v26  ;;  %7031 = vrcp.f32 %v4089_v51  ;;  %v3671_v62 = vadd.f32 1.0, %v10264_v3  ;;  %vm4543_vm9 = vcmp.gt.f32.partialorder %v12236_v60, 20.0  ;;  %v12241_v51 = vld [vmem:[#allocation97_spill] sm:$0xff]  ;;  %v12259_v6 = vld [vmem:[#allocation110_spill] sm:$0xff] }
 0x2c0   :  { %12237 = vst [vmem:[#allocation53_spill] sm:$0xff] %v10512_v0  ;;  %v4734_v24 = vmul.f32 %v10367_v41, %v4599_v45  ;;  %v4415_v30 = vmul.f32 %v7022_v13, %v4031_v21  ;;  %v4030_v20 = vmul.f32 %v6156_v25, %v12239_v39  ;;  %v6084_v2 = vadd.f32 -1.0, %v3702_v46 }
 0x2c1   :  { %v4161_v49 = vadd.f32 1.0, %v3777_v16  ;;  %v3776_v38 = vmul.f32 %v3648_v55, %v3648_v55  ;;  %7033 = vrcp.f32 %v4180_v57  ;;  %v3289_v26 = vmin.f32 %v10503_v44, 20.0 }
 0x2c2   :  { %v7024_v4 = vpop.eup %7023  ;;  %4891 = vadd.xlane.f32.xlu1 %v4734_v24  ;;  %v4671_v3 = vsel %vm4543_vm9, %v12236_v60, %v4415_v30  ;;  %v3576_v21 = vadd.f32 1.0, %v12241_v51  ;;  %v10530_v45 = vmul.f32 %v6106_v37, %v10156_v22  ;;  %vm4542_vm10 = vcmp.gt.f32.partialorder %v12239_v39, 20.0  ;;  %v12244_v30 = vld [vmem:[#allocation62_spill] sm:$0xff]  ;;  %v12245_v37 = vld [vmem:[#allocation129_spill] sm:$0xff] }
 0x2c3   :  { %v10527_v13 = vpop.eup %7025  ;;  %v4806_v46 = vmul.f32 %v10367_v41, %v4671_v3  ;;  %v4414_v25 = vmul.f32 %v7024_v4, %v4030_v20  ;;  %7035 = vrcp.f32 %v4161_v49  ;;  %v6087_v56 = vadd.f32 -1.0, %v3705_v29  ;;  %v10543_v29 = vpop.xlane.xlu1 %4983 }
 0x2c4   :  { %12242 = vst [vmem:[#allocation61_spill] sm:$0xff] %v10530_v45  ;;  %v4160_v57 = vadd.f32 1.0, %v3776_v38  ;;  %v3704_v55 = vmul.f32 %v3576_v21, %v3576_v21  ;;  %v10534_v48 = vpop.eup %7027  ;;  %v10536_v24 = vmul.f32 %v3671_v62, %v3671_v62  ;;  %v3958_v51 = vmul.f32 %v6084_v2, %v12244_v30  ;;  %12246 = vst [vmem:[#allocation117_spill] sm:$0xff] %v10543_v29  ;;  %v10550_v2 = vpop.xlane.xlu0 %4981 }
 0x2c5   :  { %5035 = vadd.xlane.f32.xlu0 %v4806_v46  ;;  %v4670_v60 = vsel %vm4542_vm10, %v12239_v39, %v4414_v25  ;;  %v3579_v44 = vadd.f32 1.0, %v12245_v37  ;;  %v6178_v20 = vadd.f32 -1.0, %v10473_v50  ;;  %v3544_v49 = vmul.f32 1.442695, %v3289_v26  ;;  %12248 = vst [vmem:[#allocation68_spill] sm:$0xff] %v10550_v2  ;;  %v12249_v50 = vld [vmem:[#allocation18_spill] sm:$0xff] }
 0x2c6   :  { %12243 = vst [vmem:[#allocation24_spill] sm:$0xff] %v10536_v24  ;;  %v7030_v22 = vpop.eup %7029  ;;  %v4805_v4 = vmul.f32 %v10367_v41, %v4670_v60  ;;  %7037 = vrcp.f32 %v4160_v57  ;;  %v3599_v3 = vadd.f32 1.0, %v10313_v58  ;;  %v10548_v62 = vadd.f32 %v10499_v40, %v10147_v9  ;;  %v12250_v37 = vld [vmem:[#allocation128_spill] sm:$0xff] }
 0x2c7   :  { %v4342_v39 = vmul.f32 %v7030_v22, %v3958_v51  ;;  %v4088_v21 = vadd.f32 1.0, %v3704_v55  ;;  %vm4470_vm11 = vcmp.gt.f32.partialorder %v12244_v30, 20.0  ;;  %v3961_v26 = vmul.f32 %v6087_v56, %v12249_v50 }
 0x2c8   :  { %12247 = vst [vmem:[#allocation14_spill] sm:$0xff] %v10548_v62  ;;  %5033 = vadd.xlane.f32.xlu1 %v4805_v4  ;;  %v6159_v46 = vadd.f32 -1.0, %v3777_v16  ;;  %v3707_v25 = vmul.f32 %v3579_v44, %v3579_v44  ;;  %v4183_v60 = vadd.f32 1.0, %v10536_v24  ;;  %v3651_v9 = vadd.f32 1.0, %v12250_v37 }
 0x2c9   :  { %v7032_v57 = vpop.eup %7031  ;;  %v4598_v58 = vsel %vm4470_vm11, %v12244_v30, %v4342_v39  ;;  %7039 = vrcp.f32 %v4088_v21  ;;  %v10558_v4 = vmul.f32 %v3599_v3, %v3599_v3  ;;  %vm4473_vm12 = vcmp.gt.f32.partialorder %v12249_v50, 20.0  ;;  %v12252_v39 = vld [vmem:[#allocation33_spill] sm:$0xff] }
 0x2ca   :  { %7041 = vpow2.f32 %v3544_v49  ;;  %v4733_v22 = vmul.f32 %v10367_v41, %v4598_v58  ;;  %v4345_v51 = vmul.f32 %v7032_v57, %v3961_v26  ;;  %v4091_v29 = vadd.f32 1.0, %v3707_v25  ;;  %v10566_v49 = vpop.xlane.xlu1 %4837  ;;  %v10572_v58 = vpop.xlane.xlu0 %4841 }
 0x2cb   :  { %v6158_v56 = vadd.f32 -1.0, %v3776_v38  ;;  %v3779_v16 = vmul.f32 %v3651_v9, %v3651_v9  ;;  %v10561_v44 = vpop.eup %7033  ;;  %v3217_v2 = vmin.f32 %v10548_v62, 20.0  ;;  %v4033_v21 = vmul.f32 %v6159_v46, %v12252_v39 }
 0x2cc   :  { %12251 = vst [vmem:[#allocation46_spill] sm:$0xff] %v10561_v44  ;;  %4889 = vadd.xlane.f32.xlu0 %v4733_v22  ;;  %v4601_v30 = vsel %vm4473_vm12, %v12249_v50, %v4345_v51  ;;  %7043 = vrcp.f32 %v4091_v29  ;;  %v10569_v3 = vmul.f32 %v6178_v20, %v10181_v36  ;;  %v10576_v37 = vadd.f32 %v10499_v40, %v10161_v1  ;;  %v12256_v20 = vld [vmem:[#allocation69_spill] sm:$0xff] }
 0x2cd   :  { %v7036_v26 = vpop.eup %7035  ;;  %7045 = vrcp.f32 %v4183_v60  ;;  %v4736_v38 = vmul.f32 %v10367_v41, %v4601_v30  ;;  %v4163_v57 = vadd.f32 1.0, %v3779_v16  ;;  %v6086_v9 = vadd.f32 -1.0, %v3704_v55 }
 0x2ce   :  { %12253 = vst [vmem:[#allocation13_spill] sm:$0xff] %v10569_v3  ;;  %12254 = vst [vmem:[#allocation94_spill] sm:$0xff] %v10576_v37  ;;  %v4417_v50 = vmul.f32 %v7036_v26, %v4033_v21  ;;  %v3650_v29 = vadd.f32 1.0, %v9719_v32  ;;  %v10581_v46 = vadd.f32 %v10499_v40, %v10164_v8  ;;  %vm4545_vm13 = vcmp.gt.f32.partialorder %v12252_v39, 20.0  ;;  %v10594_v24 = vpop.xlane.xlu1 %4843 }
 0x2cf   :  { %4895 = vadd.xlane.f32.xlu1 %v4736_v38  ;;  %v4032_v60 = vmul.f32 %v6158_v56, %v12256_v20  ;;  %7047 = vrcp.f32 %v4163_v57  ;;  %v10586_v51 = vadd.f32 -1.0, %v10558_v4  ;;  %v3400_v1 = vmul.f32 1.442695, %v3217_v2  ;;  %v12257_v56 = vld [vmem:[#allocation95_spill] sm:$0xff] }
 0x2d0   :  { %12255 = vst [vmem:[#allocation87_spill] sm:$0xff] %v10581_v46  ;;  %v7038_v22 = vpop.eup %7037  ;;  %v4673_v30 = vsel %vm4545_vm13, %v12252_v39, %v4417_v50  ;;  %v3778_v55 = vmul.f32 %v3650_v29, %v3650_v29  ;;  %v6089_v26 = vadd.f32 -1.0, %v3707_v25  ;;  %v3578_v8 = vadd.f32 1.0, %v9711_v7  ;;  %v10599_v29 = vpop.xlane.xlu0 %4985 }
 0x2d1   :  { %v4808_v32 = vmul.f32 %v10367_v41, %v4673_v30  ;;  %v4416_v21 = vmul.f32 %v7038_v22, %v4032_v60  ;;  %v3216_v40 = vmin.f32 %v10576_v37, 20.0  ;;  %vm4544_vm14 = vcmp.gt.f32.partialorder %v12256_v20, 20.0  ;;  %12258 = vst [vmem:[#allocation28_spill] sm:$0xff] %v10599_v29  ;;  %v12294_v37 = vld [vmem:[#allocation35_spill] sm:$0xff] }
 0x2d2   :  { %v3960_v38 = vmul.f32 %v6086_v9, %v12257_v56  ;;  %v4162_v57 = vadd.f32 1.0, %v3778_v55  ;;  %v3598_v2 = vadd.f32 1.0, %v10527_v13  ;;  %v3288_v39 = vmin.f32 %v10581_v46, 20.0 }
 0x2d3   :  { %v7040_v62 = vpop.eup %7039  ;;  %5039 = vadd.xlane.f32.xlu0 %v4808_v32  ;;  %v4672_v50 = vsel %vm4544_vm14, %v12256_v20, %v4416_v21  ;;  %v3706_v25 = vmul.f32 %v3578_v8, %v3578_v8  ;;  %v6161_v30 = vadd.f32 -1.0, %v3779_v16  ;;  %v3670_v9 = vadd.f32 1.0, %v10534_v48 }
 0x2d4   :  { %v7042_v7 = vpop.eup %7041  ;;  %v4807_v60 = vmul.f32 %v10367_v41, %v4672_v50  ;;  %v4344_v22 = vmul.f32 %v7040_v62, %v3960_v38  ;;  %7049 = vrcp.f32 %v4162_v57  ;;  %vm4472_vm15 = vcmp.gt.f32.partialorder %v12257_v56, 20.0 }
 0x2d5   :  { %v3963_v13 = vmul.f32 %v6089_v26, %v12259_v6  ;;  %v4090_v45 = vadd.f32 1.0, %v3706_v25  ;;  %7051 = vpow2.f32 %v3400_v1  ;;  %v3398_v32 = vmul.f32 1.442695, %v3216_v40  ;;  %v12261_v26 = vld [vmem:[#allocation124_spill] sm:$0xff]  ;;  %v10612_v1 = vpop.xlane.xlu1 %4987 }
 0x2d6   :  { %v7044_v46 = vpop.eup %7043  ;;  %5037 = vadd.xlane.f32.xlu1 %v4807_v60  ;;  %v4600_v20 = vsel %vm4472_vm15, %v12257_v56, %v4344_v22  ;;  %v3581_v21 = vadd.f32 1.0, %v9774_v35  ;;  %v3726_v62 = vmul.f32 %v3598_v2, %v3598_v2  ;;  %v3542_v48 = vmul.f32 1.442695, %v3288_v39  ;;  %12262 = vst [vmem:[#allocation119_spill] sm:$0xff] %v10612_v1  ;;  %v10617_v22 = vpop.xlane.xlu0 %4845 }
 0x2d7   :  { %v10607_v8 = vpop.eup %7045  ;;  %v4735_v16 = vmul.f32 %v10367_v41, %v4600_v20  ;;  %v4347_v38 = vmul.f32 %v7044_v46, %v3963_v13  ;;  %7053 = vrcp.f32 %v4090_v45  ;;  %vm4475_vm0 = vcmp.gt.f32.partialorder %v12259_v6, 20.0 }
 0x2d8   :  { %12260 = vst [vmem:[#allocation78_spill] sm:$0xff] %v10607_v8  ;;  %v4035_v57 = vmul.f32 %v6161_v30, %v12261_v26  ;;  %v3709_v50 = vmul.f32 %v3581_v21, %v3581_v21  ;;  %v4111_v56 = vadd.f32 1.0, %v10558_v4  ;;  %v6160_v60 = vadd.f32 -1.0, %v3778_v55 }
 0x2d9   :  { %v7048_v40 = vpop.eup %7047  ;;  %4893 = vadd.xlane.f32.xlu0 %v4735_v16  ;;  %v4603_v35 = vsel %vm4475_vm0, %v12259_v6, %v4347_v38  ;;  %v3653_v2 = vadd.f32 1.0, %v9760_v52  ;;  %v3798_v45 = vmul.f32 %v3670_v9, %v3670_v9  ;;  %7055 = vpow2.f32 %v3398_v32  ;;  %v12263_v9 = vld [vmem:[#allocation6_spill] sm:$0xff] }
 0x2da   :  { %v4738_v46 = vmul.f32 %v10367_v41, %v4603_v35  ;;  %v4419_v39 = vmul.f32 %v7048_v40, %v4035_v57  ;;  %v6108_v30 = vadd.f32 -1.0, %v3726_v62  ;;  %vm4547_vm1 = vcmp.gt.f32.partialorder %v12261_v26, 20.0  ;;  %v10629_v40 = vpop.xlane.xlu1 %4847 }
 0x2db   :  { %v4093_v13 = vadd.f32 1.0, %v3709_v50  ;;  %v3781_v20 = vmul.f32 %v3653_v2, %v3653_v2  ;;  %7057 = vpow2.f32 %v3542_v48  ;;  %v6088_v6 = vadd.f32 -1.0, %v3706_v25 }
 0x2dc   :  { %4899 = vadd.xlane.f32.xlu1 %v4738_v46  ;;  %v4675_v4 = vsel %vm4547_vm1, %v12261_v26, %v4419_v39  ;;  %v3652_v55 = vadd.f32 1.0, %v9819_v54  ;;  %v3673_v52 = vadd.f32 1.0, %v7042_v7  ;;  %v4034_v32 = vmul.f32 %v6160_v60, %v12263_v9  ;;  %v10631_v7 = vpop.xlane.xlu0 %4989  ;;  %v12266_v60 = vld [vmem:[#allocation93_spill] sm:$0xff] }
 0x2dd   :  { %v4810_v21 = vmul.f32 %v10367_v41, %v4675_v4  ;;  %7059 = vrcp.f32 %v4093_v13  ;;  %v10627_v38 = vmul.f32 %v10586_v51, %v10217_v61  ;;  %v4165_v57 = vadd.f32 1.0, %v3781_v20  ;;  %12265 = vst [vmem:[#allocation48_spill] sm:$0xff] %v10631_v7  ;;  %v12276_v7 = vld [vmem:[#allocation135_spill] sm:$0xff]  ;;  %v12284_v61 = vld [vmem:[#allocation136_spill] sm:$0xff] }
 0x2de   :  { %v7050_v16 = vpop.eup %7049  ;;  %7061 = vrcp.f32 %v4111_v56  ;;  %v3780_v48 = vmul.f32 %v3652_v55, %v3652_v55  ;;  %v4110_v26 = vadd.f32 1.0, %v3726_v62  ;;  %v6180_v25 = vadd.f32 -1.0, %v3798_v45 }
 0x2df   :  { %12264 = vst [vmem:[#allocation54_spill] sm:$0xff] %v10627_v38  ;;  %v4182_v35 = vadd.f32 1.0, %v3798_v45  ;;  %5043 = vadd.xlane.f32.xlu0 %v4810_v21  ;;  %v4418_v54 = vmul.f32 %v7050_v16, %v4034_v32  ;;  %v7052_v2 = vpop.eup %7051  ;;  %vm4546_vm2 = vcmp.gt.f32.partialorder %v12263_v9, 20.0  ;;  %v3962_v46 = vmul.f32 %v6088_v6, %v12266_v60  ;;  %v12270_v16 = vld [vmem:[#allocation132_spill] sm:$0xff] }
 0x2e0   :  { %7063 = vrcp.f32 %v4165_v57  ;;  %v4164_v51 = vadd.f32 1.0, %v3780_v48  ;;  %v10636_v56 = vmul.f32 %v6108_v30, %v10241_v18  ;;  %v10638_v13 = vmul.f32 %v3673_v52, %v3673_v52  ;;  %v10649_v57 = vpop.xlane.xlu1 %4991 }
 0x2e1   :  { %v7054_v39 = vpop.eup %7053  ;;  %v4674_v62 = vsel %vm4546_vm2, %v12263_v9, %v4418_v54  ;;  %v3580_v45 = vadd.f32 1.0, %v9797_v12  ;;  %v6091_v21 = vadd.f32 -1.0, %v3709_v50  ;;  %v10644_v6 = vmul.f32 %v6180_v25, %v10250_v15  ;;  %12271 = vst [vmem:[#allocation22_spill] sm:$0xff] %v10649_v57 }
 0x2e2   :  { %12267 = vst [vmem:[#allocation79_spill] sm:$0xff] %v10636_v56  ;;  %12268 = vst [vmem:[#allocation32_spill] sm:$0xff] %v10638_v13  ;;  %v4809_v4 = vmul.f32 %v10367_v41, %v4674_v62  ;;  %v4346_v55 = vmul.f32 %v7054_v39, %v3962_v46  ;;  %7065 = vrcp.f32 %v4164_v51  ;;  %vm4474_vm3 = vcmp.gt.f32.partialorder %v12266_v60, 20.0  ;;  %v10655_v46 = vpop.xlane.xlu0 %4849 }
 0x2e3   :  { %7067 = vrcp.f32 %v4110_v26  ;;  %12269 = vst [vmem:[#allocation67_spill] sm:$0xff] %v10644_v6  ;;  %v3708_v32 = vmul.f32 %v3580_v45, %v3580_v45  ;;  %v7056_v30 = vpop.eup %7055  ;;  %v3601_v52 = vadd.f32 1.0, %v7052_v2  ;;  %v3583_v12 = vadd.f32 1.0, %v12270_v16  ;;  %v12274_v2 = vld [vmem:[#allocation126_spill] sm:$0xff]  ;;  %v12275_v45 = vld [vmem:[#allocation7_spill] sm:$0xff] }
 0x2e4   :  { %7069 = vrcp.f32 %v4182_v35  ;;  %5041 = vadd.xlane.f32.xlu1 %v4809_v4  ;;  %v4602_v9 = vsel %vm4474_vm3, %v12266_v60, %v4346_v55  ;;  %v10652_v50 = vadd.f32 1.0, %v10638_v13  ;;  %v6163_v25 = vadd.f32 -1.0, %v3781_v20 }
 0x2e5   :  { %v4737_v26 = vmul.f32 %v10367_v41, %v4602_v9  ;;  %v4092_v54 = vadd.f32 1.0, %v3708_v32  ;;  %v7058_v51 = vpop.eup %7057  ;;  %v12273_v39 = vlaneseq  ;;  %v3965_v62 = vmul.f32 %v6091_v21, %v12274_v2  ;;  %v12278_v21 = vld [vmem:[#allocation113_spill] sm:$0xff] }
 0x2e6   :  { %12272 = vst [vmem:[#allocation84_spill] sm:$0xff] %v10652_v50  ;;  %v3711_v60 = vmul.f32 %v3583_v12, %v3583_v12  ;;  %v3655_v4 = vadd.f32 1.0, %v12275_v45  ;;  %v3600_v16 = vadd.f32 1.0, %v7056_v30  ;;  %v6162_v57 = vadd.f32 -1.0, %v3780_v48  ;;  %v12279_v45 = vld [vmem:[#allocation89_spill] sm:$0xff] }
 0x2e7   :  { %v10658_v35 = vand.u32 127, %v12273_v39  ;;  %v7060_v55 = vpop.eup %7059  ;;  %4897 = vadd.xlane.f32.xlu0 %v4737_v26  ;;  %7071 = vrcp.f32 %v4092_v54  ;;  %v3654_v9 = vadd.f32 1.0, %v12276_v7  ;;  %v10665_v1 = vmul.f32 %v3601_v52, %v3601_v52  ;;  %v10674_v52 = vpop.xlane.xlu1 %4851 }
 0x2e8   :  { %v10663_v20 = vpop.eup %7061  ;;  %v4349_v29 = vmul.f32 %v7060_v55, %v3965_v62  ;;  %v4095_v13 = vadd.f32 1.0, %v3711_v60  ;;  %v3783_v39 = vmul.f32 %v3655_v4, %v3655_v4  ;;  %vm4477_vm4 = vcmp.gt.f32.partialorder %v12274_v2, 20.0  ;;  %v12281_v4 = vld [vmem:[#allocation63_spill] sm:$0xff] }
 0x2e9   :  { %12277 = vst [vmem:[#allocation36_spill] sm:$0xff] %v10663_v20  ;;  %v4037_v12 = vmul.f32 %v6163_v25, %v12278_v21  ;;  %v3782_v8 = vmul.f32 %v3654_v9, %v3654_v9  ;;  %v3582_v15 = vadd.f32 1.0, %v12279_v45  ;;  %v10670_v26 = vadd.f32 1.0, %v7058_v51  ;;  %v10678_v25 = vpop.xlane.xlu0 %4993 }
 0x2ea   :  { %v7064_v30 = vpop.eup %7063  ;;  %v5272_v48 = vadd.s32 4294967232, %v10658_v35  ;;  %v4605_v7 = vsel %vm4477_vm4, %v12274_v2, %v4349_v29  ;;  %7073 = vrcp.f32 %v4095_v13  ;;  %v4036_v55 = vmul.f32 %v6162_v57, %v12281_v4 }
 0x2eb   :  { %12280 = vst [vmem:[#allocation82_spill] sm:$0xff] %v10670_v26  ;;  %v4740_v54 = vmul.f32 %v10367_v41, %v4605_v7  ;;  %v4421_v62 = vmul.f32 %v7064_v30, %v4037_v12  ;;  %v4167_v50 = vadd.f32 1.0, %v3783_v39  ;;  %vm4549_vm5 = vcmp.gt.f32.partialorder %v12278_v21, 20.0 }
 0x2ec   :  { %v7066_v9 = vpop.eup %7065  ;;  %v6090_v51 = vadd.f32 -1.0, %v3708_v32  ;;  %v4166_v45 = vadd.f32 1.0, %v3782_v8  ;;  %v3710_v6 = vmul.f32 %v3582_v15, %v3582_v15  ;;  %v5279_v29 = vadd.s32 4294967224, %v10658_v35 }
 0x2ed   :  { %v10681_v18 = vpop.eup %7067  ;;  %4903 = vadd.xlane.f32.xlu1 %v4740_v54  ;;  %v4677_v13 = vsel %vm4549_vm5, %v12278_v21, %v4421_v62  ;;  %v4420_v2 = vmul.f32 %v7066_v9, %v4036_v55  ;;  %7075 = vrcp.f32 %v4167_v50  ;;  %vm4548_vm6 = vcmp.gt.f32.partialorder %v12281_v4, 20.0  ;;  %v12285_v21 = vld [vmem:[#allocation127_spill] sm:$0xff]  ;;  %v10696_v55 = vpop.xlane.xlu1 %4995 }
 0x2ee   :  { %12282 = vst [vmem:[#allocation111_spill] sm:$0xff] %v10681_v18  ;;  %v10685_v12 = vpop.eup %7069  ;;  %v4812_v57 = vmul.f32 %v10367_v41, %v4677_v13  ;;  %7077 = vrcp.f32 %v4166_v45  ;;  %v4094_v30 = vadd.f32 1.0, %v3710_v6  ;;  %v10689_v32 = vmul.f32 %v3600_v16, %v3600_v16  ;;  %v12287_v16 = vld [vmem:[#allocation5_spill] sm:$0xff] }
 0x2ef   :  { %12283 = vst [vmem:[#allocation120_spill] sm:$0xff] %v10685_v12  ;;  %v4676_v15 = vsel %vm4548_vm6, %v12281_v4, %v4420_v2  ;;  %v6093_v7 = vadd.f32 -1.0, %v3711_v60  ;;  %v3585_v18 = vadd.f32 1.0, %v12284_v61  ;;  %v5286_v54 = vadd.s32 4294967216, %v10658_v35  ;;  %v12289_v4 = vld [vmem:[#allocation29_spill] sm:$0xff]  ;;  %v10705_v2 = vpop.xlane.xlu0 %4853 }
 0x2f0   :  { %5047 = vadd.xlane.f32.xlu0 %v4812_v57  ;;  %v4811_v50 = vmul.f32 %v10367_v41, %v4676_v15  ;;  %v3964_v62 = vmul.f32 %v6090_v51, %v12285_v21  ;;  %7079 = vrcp.f32 %v4094_v30  ;;  %v10699_v45 = vadd.f32 -1.0, %v10665_v1  ;;  %v12290_v15 = vld [vmem:[#allocation99_spill] sm:$0xff] }
 0x2f1   :  { %v7072_v9 = vpop.eup %7071  ;;  %v10702_v13 = vsub.s32 %v5272_v48, %v12287_v16  ;;  %v3713_v60 = vmul.f32 %v3585_v18, %v3585_v18  ;;  %v3584_v61 = vadd.f32 1.0, %v12289_v4  ;;  %v10708_v57 = vsub.s32 %v5279_v29, %v12287_v16 }
 0x2f2   :  { %12286 = vst [vmem:[#allocation122_spill] sm:$0xff] %v10699_v45  ;;  %5045 = vadd.xlane.f32.xlu1 %v4811_v50  ;;  %v4348_v51 = vmul.f32 %v7072_v9, %v3964_v62  ;;  %vm4476_vm7 = vcmp.gt.f32.partialorder %v12285_v21, 20.0  ;;  %v6165_v30 = vadd.f32 -1.0, %v3783_v39  ;;  %v3967_v12 = vmul.f32 %v6093_v7, %v12290_v15 }
 0x2f3   :  { %12288 = vst [vmem:[#allocation96_spill] sm:$0xff] %v10702_v13  ;;  %v6164_v56 = vadd.f32 -1.0, %v3782_v8  ;;  %v4097_v45 = vadd.f32 1.0, %v3713_v60  ;;  %v3712_v20 = vmul.f32 %v3584_v61, %v3584_v61  ;;  %v10713_v18 = vsub.s32 %v5286_v54, %v12287_v16  ;;  %v12291_v8 = vld [vmem:[#allocation9_spill] sm:$0xff]  ;;  %v10723_v54 = vpop.xlane.xlu1 %4855 }
 0x2f4   :  { %v7074_v48 = vpop.eup %7073  ;;  %v10716_v4 = vadd.s32 4294967208, %v10658_v35  ;;  %v4604_v29 = vsel %vm4476_vm7, %v12285_v21, %v4348_v51  ;;  %v3587_v50 = vadd.f32 1.0, %v9952_v43  ;;  %v6092_v39 = vadd.f32 -1.0, %v3710_v6  ;;  %v12292_v43 = vld [vmem:[#allocation77_spill] sm:$0xff]  ;;  %v10729_v6 = vpop.xlane.xlu0 %4997 }
 0x2f5   :  { %v4739_v62 = vmul.f32 %v10367_v41, %v4604_v29  ;;  %v4351_v9 = vmul.f32 %v7074_v48, %v3967_v12  ;;  %7081 = vrcp.f32 %v4097_v45  ;;  %vm4479_vm8 = vcmp.gt.f32.partialorder %v12290_v15, 20.0  ;;  %v12293_v29 = vld [vmem:[#allocation139_spill] sm:$0xff] }
 0x2f6   :  { %v4039_v7 = vmul.f32 %v6165_v30, %v12291_v8  ;;  %v4096_v61 = vadd.f32 1.0, %v3712_v20  ;;  %v3715_v38 = vmul.f32 %v3587_v50, %v3587_v50  ;;  %v5223_v44 = vadd.s32 4294967288, %v10658_v35 }
 0x2f7   :  { %v7076_v36 = vpop.eup %7075  ;;  %4901 = vadd.xlane.f32.xlu0 %v4739_v62  ;;  %v4607_v21 = vsel %vm4479_vm8, %v12290_v15, %v4351_v9  ;;  %v4038_v51 = vmul.f32 %v6164_v56, %v12292_v43  ;;  %v3659_v12 = vadd.f32 1.0, %v12293_v29  ;;  %v5230_v48 = vadd.s32 4294967280, %v10658_v35 }
 0x2f8   :  { %v7078_v45 = vpop.eup %7077  ;;  %v4742_v30 = vmul.f32 %v10367_v41, %v4607_v21  ;;  %v4423_v50 = vmul.f32 %v7076_v36, %v4039_v7  ;;  %7083 = vrcp.f32 %v4096_v61  ;;  %vm4551_vm9 = vcmp.gt.f32.partialorder %v12291_v8, 20.0  ;;  %v10744_v36 = vld [vmem:[%s11410_s5] ss:$0 sm:$0xff]  ;;  %v10750_v61 = vpop.xlane.xlu1 %4999  ;;  %s7136_s5 = smov [#allocation2]  }
 0x2f9   :  { %v4422_v3 = vmul.f32 %v7078_v45, %v4038_v51  ;;  %v3966_v62 = vmul.f32 %v6092_v39, %v12294_v37  ;;  %v4099_v17 = vadd.f32 1.0, %v3715_v38  ;;  %vm4550_vm10 = vcmp.gt.f32.partialorder %v12292_v43, 20.0  ;;  %s5903_s22 = sshll.u32 %s7136_s5, 4  ;;  %s5904_s22 = int_to_ptr.vmem [resolvable:$true] %s5903_s22 }
 0x2fa   :  { %v7080_v15 = vpop.eup %7079  ;;  %4907 = vadd.xlane.f32.xlu1 %v4742_v30  ;;  %v4679_v56 = vsel %vm4551_vm9, %v12291_v8, %v4423_v50  ;;  %v6095_v9 = vadd.f32 -1.0, %v3713_v60  ;;  %v3787_v29 = vmul.f32 %v3659_v12, %v3659_v12  ;;  %v10739_v31 = vsub.s32 %v10658_v35, %v12287_v16  ;;  %s7111_s23 = scalar_lea.vmem %s5904_s22, 128  ;;  %p7116_p1 = scmp.lt.s32.totalorder %s5904_s22, %s5904_s22 }
 0x2fb   :  { %v4814_v41 = vmul.f32 %v10744_v36, %v4679_v56  ;;  %v4678_v39 = vsel %vm4550_vm10, %v12292_v43, %v4422_v3  ;;  %v4350_v7 = vmul.f32 %v7080_v15, %v3966_v62  ;;  %vm4478_vm11 = vcmp.gt.f32.partialorder %v12294_v37, 20.0  ;;  %v10757_v3 = vpop.xlane.xlu0 %5003  ;;  %p7112_p0 = scmp.ne.s32.totalorder %s5904_s22, %s7111_s23  ;;  %p7117_p2 = scmp.lt.s32.totalorder %s7111_s23, %s7111_s23 }
 0x2fc   :  { %v4813_v8 = vmul.f32 %v10744_v36, %v4678_v39  ;;  %7085 = vrcp.f32 %v4099_v17  ;;  %v4171_v60 = vadd.f32 1.0, %v3787_v29  ;;  %v10753_v21 = vsub.s32 %v5223_v44, %v12287_v16  ;;  %v12295_v17 = vld [vmem:[#allocation19_spill] sm:$0xff] }
 0x2fd   :  { %vm11691_vm12 = vcmask 130112   ;;  %5051 = vadd.xlane.f32.xlu0 %v4814_v41  ;;  %v4606_v51 = vsel %vm4478_vm11, %v12294_v37, %v4350_v7  ;;  %v6094_v12 = vadd.f32 -1.0, %v3712_v20  ;;  %v3658_v45 = vadd.f32 1.0, %v9967_v5  ;;  %p7118_p3 = por %p7117_p2, %p7116_p1 }
 0x2fe   :  { %v10760_v43 = vsub.s32 %v5230_v48, %v12287_v16  ;;  %vm5235_vm13 = vcmask 195712   ;;  %5049 = vadd.xlane.f32.xlu1 %v4813_v8  ;;  %v3969_v30 = vmul.f32 %v6095_v9, %v12295_v17  ;;  %7087 = vrcp.f32 %v4171_v60  ;;  %v12296_v48 = vld [vmem:[#allocation118_spill] sm:$0xff] }
 0x2ff   :  { %v7082_v50 = vpop.eup %7081  ;;  %v5237_v44 = vadd.s32 4294967272, %v10658_v35  ;;  %v4741_v62 = vmul.f32 %v10744_v36, %v4606_v51  ;;  %v3786_v15 = vmul.f32 %v3658_v45, %v3658_v45  ;;  %v3586_v37 = vadd.f32 1.0, %v9955_v47  ;;  %v12297_v45 = vld [vmem:[#allocation143_spill] sm:$0xff]  ;;  %p7119_p4 = pnand %p7118_p3, %p7112_p0 }
 0x300   :  { %v5244_v5 = vadd.s32 4294967264, %v10658_v35  ;;  %v5251_v20 = vadd.s32 4294967256, %v10658_v35  ;;  %v4353_v56 = vmul.f32 %v7082_v50, %v3969_v30  ;;  %vm4481_vm14 = vcmp.gt.f32.partialorder %v12295_v17, 20.0 }
 0x301   :  { %vm5242_vm15 = vcmask 261312   ;;  %4905 = vadd.xlane.f32.xlu0 %v4741_v62  ;;  %v3968_v9 = vmul.f32 %v6094_v12, %v12296_v48  ;;  %v6097_v41 = vadd.f32 -1.0, %v3715_v38  ;;  %v4170_v39 = vadd.f32 1.0, %v3786_v15  ;;  %v10776_v50 = vpop.xlane.xlu1 %4859 }
 0x302   :  { %v3714_v7 = vmul.f32 %v3586_v37, %v3586_v37  ;;  %v7084_v8 = vpop.eup %7083  ;;  %v5222_v60 = vrot.slane %v10486_v53, %v10739_v31  ;;  %v4609_v47 = vsel %vm4481_vm14, %v12295_v17, %v4353_v56  ;;  %v5234_v51 = vrot.slane %v10566_v49, %v10760_v43  ;;  %v10779_v38 = vpop.xlane.xlu0 %4857 }
 0x303   :  { %v3589_v30 = vadd.f32 1.0, %v12297_v45  ;;  %v4744_v62 = vmul.f32 %v10744_v36, %v4609_v47  ;;  %v4352_v42 = vmul.f32 %v7084_v8, %v3968_v9  ;;  %v6169_v12 = vadd.f32 -1.0, %v3787_v29  ;;  %v12298_v29 = vld [vmem:[#allocation81_spill] sm:$0xff] }
 0x304   :  { %7089 = vrcp.f32 %v4170_v39  ;;  %v5227_v37 = vrot.slane %v10468_v33, %v10753_v21  ;;  %vm4480_vm0 = vcmp.gt.f32.partialorder %v12296_v48, 20.0  ;;  %v4098_v53 = vadd.f32 1.0, %v3714_v7 }
 0x305   :  { %v3717_v17 = vmul.f32 %v3589_v30, %v3589_v30  ;;  %v10785_v49 = vsub.s32 %v5237_v44, %v12287_v16  ;;  %v10788_v56 = vsub.s32 %v5244_v5, %v12287_v16  ;;  %4911 = vadd.xlane.f32.xlu1 %v4744_v62  ;;  %v4608_v9 = vsel %vm4480_vm0, %v12296_v48, %v4352_v42  ;;  %v10795_v30 = vpop.xlane.xlu1 %5001  ;;  %v12299_v5 = vld [vmem:[#allocation103_spill] sm:$0xff] }
 0x306   :  { %v3971_v39 = vmul.f32 %v6097_v41, %v12298_v29  ;;  %v7086_v8 = vpop.eup %7085  ;;  %v5258_v47 = vadd.s32 4294967248, %v10658_v35  ;;  %v5229_v33 = vsel %vm11691_vm12, %v5227_v37, %v5222_v60  ;;  %v4743_v45 = vmul.f32 %v10744_v36, %v4608_v9  ;;  %v10805_v60 = vpop.xlane.xlu0 %5007 }
 0x307   :  { %7091 = vrcp.f32 %v4098_v53  ;;  %v5236_v26 = vsel %vm5235_vm13, %v5234_v51, %v5229_v33  ;;  %v4043_v28 = vmul.f32 %v6169_v12, %v12299_v5  ;;  %v4101_v62 = vadd.f32 1.0, %v3717_v17  ;;  %12300 = vst [vmem:[#allocation37_spill] sm:$0xff] %v10805_v60 }
 0x308   :  { %v4355_v44 = vmul.f32 %v7086_v8, %v3971_v39  ;;  %v7088_v0 = vpop.eup %7087  ;;  %v10800_v42 = vsub.s32 %v5251_v20, %v12287_v16  ;;  %v5241_v48 = vrot.slane %v10519_v34, %v10785_v49  ;;  %4909 = vadd.xlane.f32.xlu0 %v4743_v45  ;;  %vm4483_vm1 = vcmp.gt.f32.partialorder %v12298_v29, 20.0  ;;  %v12301_v39 = vld [vmem:[#allocation134_spill] sm:$0xff] }
 0x309   :  { %v6168_v41 = vadd.f32 -1.0, %v3786_v15  ;;  %v4427_v53 = vmul.f32 %v7088_v0, %v4043_v28  ;;  %v5248_v51 = vrot.slane %v10572_v58, %v10788_v56  ;;  %7093 = vrcp.f32 %v4101_v62 }
 0x30a   :  { %v4611_v37 = vsel %vm4483_vm1, %v12298_v29, %v4355_v44  ;;  %v5265_v12 = vadd.s32 4294967240, %v10658_v35  ;;  %vm4555_vm2 = vcmp.gt.f32.partialorder %v12299_v5, 20.0  ;;  %v5243_v34 = vsel %vm5242_vm15, %v5241_v48, %v5236_v26  ;;  %v10822_v58 = vpop.xlane.xlu1 %4863 }
 0x30b   :  { %v4746_v20 = vmul.f32 %v10744_v36, %v4611_v37  ;;  %v10816_v15 = vsub.s32 %v10716_v4, %v12287_v16  ;;  %v10819_v9 = vsub.s32 %v5258_v47, %v12287_v16  ;;  %v4683_v28 = vsel %vm4555_vm2, %v12299_v5, %v4427_v53  ;;  %v10843_v48 = vpop.xlane.xlu0 %4861 }
 0x30c   :  { %v6096_v0 = vadd.f32 -1.0, %v3714_v7  ;;  %vm5249_vm3 = vcmask 326912   ;;  %v4818_v29 = vmul.f32 %v10744_v36, %v4683_v28  ;;  %v4042_v8 = vmul.f32 %v6168_v41, %v12301_v39  ;;  %v12302_v41 = vld [vmem:[#allocation133_spill] sm:$0xff] }
 0x30d   :  { %4915 = vadd.xlane.f32.xlu1 %v4746_v20  ;;  %v5255_v26 = vrot.slane %v10594_v24, %v10800_v42  ;;  %v10829_v4 = vadd.s32 4294967200, %v10658_v35  ;;  %v10832_v47 = vadd.s32 4294967192, %v10658_v35  ;;  %v5250_v7 = vsel %vm5249_vm3, %v5248_v51, %v5243_v34  ;;  %v12303_v20 = vld [vmem:[#allocation43_spill] sm:$0xff]  ;;  %v12304_v34 = vld [vmem:[#allocation148_spill] sm:$0xff] }
 0x30e   :  { %v7090_v33 = vpop.eup %7089  ;;  %v5262_v45 = vrot.slane %v10617_v22, %v10819_v9  ;;  %v10838_v44 = vadd.s32 4294967184, %v10658_v35  ;;  %v10841_v5 = vsub.s32 %v5265_v12, %v12287_v16  ;;  %5059 = vadd.xlane.f32.xlu0 %v4818_v29  ;;  %v6099_v62 = vadd.f32 -1.0, %v3717_v17 }
 0x30f   :  { %v4426_v24 = vmul.f32 %v7090_v33, %v4042_v8  ;;  %vm5256_vm4 = vcmask 392512   ;;  %vm5263_vm5 = vcmask 458112   ;;  %vm4554_vm6 = vcmp.gt.f32.partialorder %v12301_v39, 20.0 }
 0x310   :  { %v3970_v37 = vmul.f32 %v6096_v0, %v12302_v41  ;;  %v5257_v51 = vsel %vm5256_vm4, %v5255_v26, %v5250_v7  ;;  %v4429_v12 = vmul.f32 %v12304_v34, %v12303_v20  ;;  %v5269_v28 = vrot.slane %v10629_v40, %v10841_v5  ;;  %v10857_v0 = vpop.xlane.xlu1 %5005  ;;  %v12306_v7 = vld [vmem:[#allocation146_spill] sm:$0xff] }
 0x311   :  { %v7092_v53 = vpop.eup %7091  ;;  %v4682_v22 = vsel %vm4554_vm6, %v12301_v39, %v4426_v24  ;;  %v5264_v8 = vsel %vm5263_vm5, %v5262_v45, %v5257_v51  ;;  %v5276_v33 = vrot.slane %v10655_v46, %v10702_v13  ;;  %vm5270_vm7 = vcmask 523712   ;;  %v12305_v39 = vld [vmem:[#allocation137_spill] sm:$0xff] }
 0x312   :  { %v4817_v17 = vmul.f32 %v10744_v36, %v4682_v22  ;;  %v4354_v29 = vmul.f32 %v7092_v53, %v3970_v37  ;;  %vm4482_vm8 = vcmp.gt.f32.partialorder %v12302_v41, 20.0  ;;  %v3973_v26 = vmul.f32 %v6099_v62, %v12305_v39  ;;  %v12307_v24 = vld [vmem:[#allocation49_spill] sm:$0xff]  ;;  %v12308_v37 = vld [vmem:[#allocation86_spill] sm:$0xff]  ;;  %v12310_v53 = vld [vmem:[#allocation91_spill] sm:$0xff] }
 0x313   :  { %v4428_v20 = vmul.f32 %v12307_v24, %v12306_v7  ;;  %v7094_v34 = vpop.eup %7093  ;;  %vm5277_vm9 = vcmask 589312   ;;  %vm4557_vm10 = vcmp.gt.f32.partialorder %v12308_v37, 20.0  ;;  %v12309_v45 = vld [vmem:[#allocation145_spill] sm:$0xff]  ;;  %v5271_v13 = vsel %vm5270_vm7, %v5269_v28, %v5264_v8  ;;  %v12312_v28 = vld [vmem:[#allocation12_spill] sm:$0xff]  ;;  %v12313_v8 = vld [vmem:[#allocation50_spill] sm:$0xff] }
 0x314   :  { %5057 = vadd.xlane.f32.xlu1 %v4817_v17  ;;  %v4610_v40 = vsel %vm4482_vm8, %v12302_v41, %v4354_v29  ;;  %v4356_v46 = vmul.f32 %v12310_v53, %v12309_v45  ;;  %v4357_v51 = vmul.f32 %v7094_v34, %v3973_v26  ;;  %v5283_v62 = vrot.slane %v10674_v52, %v10708_v57  ;;  %v10871_v60 = vpop.xlane.xlu0 %5011  ;;  %v12311_v41 = vld [vmem:[#allocation30_spill] sm:$0xff]  ;;  %v12315_v53 = vld [vmem:[#allocation104_spill] sm:$0xff] }
 0x315   :  { %v4745_v22 = vmul.f32 %v10744_v36, %v4610_v40  ;;  %vm4485_vm11 = vcmp.gt.f32.partialorder %v12305_v39, 20.0  ;;  %v4685_v17 = vsel %vm4557_vm10, %v12308_v37, %v4429_v12  ;;  %vm4556_vm14 = vcmp.gt.f32.partialorder %v12311_v41, 20.0  ;;  %v12314_v40 = vld [vmem:[#allocation88_spill] sm:$0xff] }
 0x316   :  { %v5278_v29 = vsel %vm5277_vm9, %v5276_v33, %v5271_v13  ;;  %vm5284_vm0 = vcmask 654912   ;;  %v4613_v7 = vsel %vm4485_vm11, %v12305_v39, %v4357_v51  ;;  %v4684_v26 = vsel %vm4556_vm14, %v12311_v41, %v4428_v20  ;;  %v10887_v13 = vpop.xlane.xlu1 %4867 }
 0x317   :  { %4913 = vadd.xlane.f32.xlu0 %v4745_v22  ;;  %vm4484_vm1 = vcmp.gt.f32.partialorder %v12312_v28, 20.0  ;;  %v4748_v52 = vmul.f32 %v10744_v36, %v4613_v7  ;;  %v4359_v24 = vmul.f32 %v10129_v63, %v12313_v8  ;;  %v5651_v12 = vrot.slane %v10696_v55, %v10753_v21 }
 0x318   :  { %v5290_v34 = vrot.slane %v10705_v2, %v10713_v18  ;;  %vm5291_vm2 = vcmask 720512   ;;  %v4820_v33 = vmul.f32 %v10744_v36, %v4685_v17  ;;  %v4612_v39 = vsel %vm4484_vm1, %v12312_v28, %v4356_v46 }
 0x319   :  { %v5285_v20 = vsel %vm5284_vm0, %v5283_v62, %v5278_v29  ;;  %4919 = vadd.xlane.f32.xlu1 %v4748_v52  ;;  %v4431_v37 = vmul.f32 %v10117_v14, %v12314_v40  ;;  %v5647_v63 = vrot.slane %v10678_v25, %v10739_v31  ;;  %v5297_v2 = vrot.slane %v10723_v54, %v10816_v15  ;;  %v10903_v22 = vpop.xlane.xlu0 %4865  ;;  %v12316_v54 = vld [vmem:[#allocation131_spill] sm:$0xff] }
 0x31a   :  { %v5292_v55 = vsel %vm5291_vm2, %v5290_v34, %v5285_v20  ;;  %vm5298_vm6 = vcmask 786112   ;;  %v4819_v45 = vmul.f32 %v10744_v36, %v4684_v26  ;;  %vm4487_vm8 = vcmp.gt.f32.partialorder %v12315_v53, 20.0  ;;  %v12319_v34 = vld [vmem:[#allocation123_spill] sm:$0xff] }
 0x31b   :  { %5063 = vadd.xlane.f32.xlu0 %v4820_v33  ;;  %v5656_v46 = vrot.slane %v10729_v6, %v10760_v43  ;;  %v4747_v14 = vmul.f32 %v10744_v36, %v4612_v39  ;;  %v4615_v25 = vsel %vm4487_vm8, %v12315_v53, %v4359_v24  ;;  %v5652_v51 = vsel %vm11691_vm12, %v5651_v12, %v5647_v63  ;;  %v12318_v24 = vld [vmem:[#allocation138_spill] sm:$0xff]  ;;  %v12320_v33 = vld [vmem:[#allocation8_spill] sm:$0xff] }
 0x31c   :  { %v5299_v62 = vsel %vm5298_vm6, %v5297_v2, %v5292_v55  ;;  %vm4559_vm10 = vcmp.gt.f32.partialorder %v12316_v54, 20.0  ;;  %v4430_v17 = vmul.f32 %v10158_v23, %v10125_v19  ;;  %v5661_v6 = vrot.slane %v10750_v61, %v10785_v49  ;;  %v10925_v52 = vpop.xlane.xlu1 %5009  ;;  %v12323_v63 = vld [vmem:[#allocation114_spill] sm:$0xff] }
 0x31d   :  { %v5657_v41 = vsel %vm5235_vm13, %v5656_v46, %v5652_v51  ;;  %v10916_v29 = vadd.f32 1.0, %v10665_v1  ;;  %v10920_v7 = vsub.s32 %v10829_v4, %v12287_v16  ;;  %5061 = vadd.xlane.f32.xlu1 %v4819_v45  ;;  %v4687_v26 = vsel %vm4559_vm10, %v12316_v54, %v4431_v37  ;;  %v10937_v4 = vpop.xlane.xlu0 %5015  ;;  %v12322_v37 = vld [vmem:[#allocation52_spill] sm:$0xff] }
 0x31e   :  { %v4358_v28 = vmul.f32 %v10140_v59, %v10122_v11  ;;  %v10929_v19 = vsub.s32 %v10832_v47, %v12287_v16  ;;  %v10933_v23 = vsub.s32 %v10838_v44, %v12287_v16  ;;  %v5321_v1 = vadd.s32 4294967176, %v10658_v35  ;;  %v12317_v11 = vld [vmem:[#allocation101_spill] sm:$0xff]  ;;  %v12326_v51 = vld [vmem:[#allocation40_spill] sm:$0xff] }
 0x31f   :  { %4917 = vadd.xlane.f32.xlu0 %v4747_v14  ;;  %v5662_v61 = vsel %vm5242_vm15, %v5661_v6, %v5657_v41  ;;  %v4750_v8 = vmul.f32 %v10744_v36, %v4615_v25  ;;  %vm4558_vm11 = vcmp.gt.f32.partialorder %v9920_v27, 20.0  ;;  %v4361_v59 = vmul.f32 %v10193_v10, %v12317_v11  ;;  %v12324_v14 = vld [vmem:[#allocation90_spill] sm:$0xff]  ;;  %v12325_v25 = vld [vmem:[#allocation112_spill] sm:$0xff]  ;;  %v12330_v11 = vld [vmem:[#allocation151_spill] sm:$0xff] }
 0x320   :  { %v5304_v47 = vrot.slane %v10779_v38, %v10920_v7  ;;  %vm11689_vm14 = vcmask 851712   ;;  %v4822_v44 = vmul.f32 %v10744_v36, %v4687_v26  ;;  %v4686_v35 = vsel %vm4558_vm11, %v9920_v27, %v4430_v17  ;;  %v10954_v40 = vpop.xlane.xlu1 %4871  ;;  %v12321_v27 = vld [vmem:[#allocation141_spill] sm:$0xff]  ;;  %v12327_v17 = vld [vmem:[#allocation144_spill] sm:$0xff] }
 0x321   :  { %vm4486_vm1 = vcmp.gt.f32.partialorder %v12318_v24, 20.0  ;;  %4923 = vadd.xlane.f32.xlu1 %v4750_v8  ;;  %v4433_v39 = vmul.f32 %v12320_v33, %v12319_v34  ;;  %v5666_v10 = vrot.slane %v10795_v30, %v10788_v56  ;;  %v10957_v38 = vsub.s32 %v5321_v1, %v12287_v16  ;;  %v12328_v1 = vld [vmem:[#allocation142_spill] sm:$0xff]  ;;  %v12331_v33 = vld [vmem:[#allocation60_spill] sm:$0xff] }
 0x322   :  { %v4614_v12 = vsel %vm4486_vm1, %v12318_v24, %v4358_v28  ;;  %v5306_v20 = vsel %vm11689_vm14, %v5304_v47, %v5299_v62  ;;  %vm5312_vm8 = vcmask 917312   ;;  %vm4489_vm10 = vcmp.gt.f32.partialorder %v12321_v27, 20.0  ;;  %v10967_v46 = vpop.xlane.xlu0 %4869  ;;  %v12329_v8 = vld [vmem:[#allocation26_spill] sm:$0xff] }
 0x323   :  { %5067 = vadd.xlane.f32.xlu0 %v4822_v44  ;;  %v4432_v55 = vmul.f32 %v12323_v63, %v12322_v37  ;;  %v4821_v2 = vmul.f32 %v10744_v36, %v4686_v35  ;;  %v4617_v45 = vsel %vm4489_vm10, %v12321_v27, %v4361_v59  ;;  %v5311_v53 = vrot.slane %v10776_v50, %v10929_v19  ;;  %v12333_v27 = vld [vmem:[#allocation147_spill] sm:$0xff]  ;;  %v12334_v37 = vld [vmem:[#allocation37_spill] sm:$0xff] }
 0x324   :  { %v5667_v30 = vsel %vm5249_vm3, %v5666_v10, %v5662_v61  ;;  %vm5319_vm11 = vcmask 982912   ;;  %v4749_v16 = vmul.f32 %v10744_v36, %v4614_v12  ;;  %vm4561_vm1 = vcmp.gt.f32.partialorder %v12324_v14, 20.0 }
 0x325   :  { %v4360_v62 = vmul.f32 %v12326_v51, %v12325_v25  ;;  %5065 = vadd.xlane.f32.xlu1 %v4821_v2  ;;  %v4689_v54 = vsel %vm4561_vm1, %v12324_v14, %v4433_v39  ;;  %vm4560_vm10 = vcmp.gt.f32.partialorder %v12327_v17, 20.0  ;;  %v5671_v50 = vrot.slane %v10757_v3, %v10800_v42  ;;  %v10978_v6 = vpop.xlane.xlu1 %5013  ;;  %v12332_v39 = vld [vmem:[#allocation16_spill] sm:$0xff] }
 0x326   :  { %v5313_v41 = vsel %vm5312_vm8, %v5311_v53, %v5306_v20  ;;  %v4752_v26 = vmul.f32 %v10744_v36, %v4617_v45  ;;  %v4688_v28 = vsel %vm4560_vm10, %v12327_v17, %v4432_v55  ;;  %vm4488_vm14 = vcmp.gt.f32.partialorder %v12328_v1, 20.0  ;;  %v10995_v34 = vpop.xlane.xlu0 %5019  ;;  %v12337_v14 = vld [vmem:[#allocation44_spill] sm:$0xff] }
 0x327   :  { %4921 = vadd.xlane.f32.xlu0 %v4749_v16  ;;  %v5318_v61 = vrot.slane %v10843_v48, %v10933_v23  ;;  %v4363_v59 = vmul.f32 %v12330_v11, %v12329_v8  ;;  %v5325_v3 = vrot.slane %v10822_v58, %v10957_v38  ;;  %v5672_v47 = vsel %vm5256_vm4, %v5671_v50, %v5667_v30  ;;  %v12336_v16 = vld [vmem:[#allocation153_spill] sm:$0xff]  ;;  %v12338_v51 = vld [vmem:[#allocation152_spill] sm:$0xff]  ;;  %v12343_v8 = vld [vmem:[#allocation82_spill] sm:$0xff] }
 0x328   :  { %v5676_v44 = vrot.slane %v10857_v0, %v10819_v9  ;;  %vm11690_vm1 = vcmask 1048512   ;;  %v4824_v35 = vmul.f32 %v10744_v36, %v4689_v54  ;;  %v4616_v24 = vsel %vm4488_vm14, %v12328_v1, %v4360_v62  ;;  %v12339_v62 = vld [vmem:[#allocation15_spill] sm:$0xff] }
 0x329   :  { %v5320_v12 = vsel %vm5319_vm11, %v5318_v61, %v5313_v41  ;;  %v4112_v48 = vadd.f32 1.0, %v10689_v32  ;;  %4927 = vadd.xlane.f32.xlu1 %v4752_v26  ;;  %v4435_v58 = vmul.f32 %v12332_v39, %v12331_v33  ;;  %7095 = vrcp.f32 %v10916_v29  ;;  %v11015_v30 = vpop.xlane.xlu1 %4875  ;;  %v12335_v29 = vld [vmem:[#allocation100_spill] sm:$0xff]  ;;  %v12340_v41 = vld [vmem:[#allocation53_spill] sm:$0xff] }
 0x32a   :  { %v11001_v20 = vsel %vm11690_vm1, %v5325_v3, %v5320_v12  ;;  %v5677_v0 = vsel %vm5263_vm5, %v5676_v44, %v5672_v47  ;;  %v4823_v10 = vmul.f32 %v10744_v36, %v4688_v28  ;;  %vm4491_vm14 = vcmp.gt.f32.partialorder %v12333_v27, 20.0  ;;  %v12342_v28 = vld [vmem:[#allocation96_spill] sm:$0xff]  ;;  %v12345_v3 = vld [vmem:[#allocation105_spill] sm:$0xff] }
 0x32b   :  { %5071 = vadd.xlane.f32.xlu0 %v4824_v35  ;;  %v5681_v63 = vrot.slane %v12334_v37, %v10841_v5  ;;  %v4751_v55 = vmul.f32 %v10744_v36, %v4616_v24  ;;  %v4619_v2 = vsel %vm4491_vm14, %v12333_v27, %v4363_v59  ;;  %v5335_v45 = vrot.slane %v10887_v13, %v10753_v21  ;;  %v12341_v13 = vld [vmem:[#allocation80_spill] sm:$0xff]  ;;  %v12346_v24 = vld [vmem:[#allocation150_spill] sm:$0xff]  ;;  %v12347_v12 = vld [vmem:[#allocation149_spill] sm:$0xff] }
 0x32c   :  { %v5331_v53 = vrot.slane %v10903_v22, %v10739_v31  ;;  %vm4563_vm10 = vcmp.gt.f32.partialorder %v12335_v29, 20.0  ;;  %v4434_v25 = vmul.f32 %v12337_v14, %v12336_v16  ;;  %v4362_v54 = vmul.f32 %v12339_v62, %v12338_v51  ;;  %v12344_v59 = vld [vmem:[#allocation20_spill] sm:$0xff] }
 0x32d   :  { %v5682_v17 = vsel %vm5270_vm7, %v5681_v63, %v5677_v0  ;;  %5069 = vadd.xlane.f32.xlu1 %v4823_v10  ;;  %v4691_v50 = vsel %vm4563_vm10, %v12335_v29, %v4435_v58  ;;  %v4365_v26 = vmul.f32 %v12341_v13, %v12340_v41  ;;  %v5686_v1 = vrot.slane %v10925_v52, %v12342_v28  ;;  %v12348_v39 = vld [vmem:[#allocation92_spill] sm:$0xff]  ;;  %v12349_v0 = vld [vmem:[#allocation55_spill] sm:$0xff]  ;;  %v12350_v63 = vld [vmem:[#allocation94_spill] sm:$0xff] }
 0x32e   :  { %v5336_v22 = vsel %vm11691_vm12, %v5335_v45, %v5331_v53  ;;  %v6110_v61 = vadd.f32 -1.0, %v10689_v32  ;;  %7097 = vrcp.f32 %v4112_v48  ;;  %v11032_v11 = vmul.f32 %v12343_v8, %v12343_v8  ;;  %v4874_v44 = vpop.xlane.xlu0 %4873  ;;  %v12351_v53 = vld [vmem:[#allocation13_spill] sm:$0xff]  ;;  %v12352_v29 = vld [vmem:[#allocation46_spill] sm:$0xff] }
 0x32f   :  { %4925 = vadd.xlane.f32.xlu0 %v4751_v55  ;;  %v4437_v47 = vmul.f32 %v12345_v3, %v12344_v59  ;;  %v4754_v35 = vmul.f32 %v10744_v36, %v4619_v2  ;;  %vm4562_vm14 = vcmp.gt.f32.partialorder %v12346_v24, 20.0  ;;  %vm4490_vm10 = vcmp.gt.f32.partialorder %v12347_v12, 20.0  ;;  %v12356_v3 = vld [vmem:[#allocation108_spill] sm:$0xff] }
 0x330   :  { %v5687_v52 = vsel %vm5277_vm9, %v5686_v1, %v5682_v17  ;;  %v4826_v32 = vmul.f32 %v10744_v36, %v4691_v50  ;;  %v4690_v48 = vsel %vm4562_vm14, %v12346_v24, %v4434_v25  ;;  %v4618_v33 = vsel %vm4490_vm10, %v12347_v12, %v4362_v54  ;;  %v5018_v37 = vpop.xlane.xlu1 %5017  ;;  %v12353_v50 = vld [vmem:[#allocation98_spill] sm:$0xff]  ;;  %v12358_v24 = vld [vmem:[#allocation36_spill] sm:$0xff] }
 0x331   :  { %vm4493_vm1 = vcmp.gt.f32.partialorder %v12348_v39, 20.0  ;;  %4931 = vadd.xlane.f32.xlu1 %v4754_v35  ;;  %vm4565_vm12 = vcmp.gt.f32.partialorder %v12349_v0, 20.0  ;;  %v5691_v10 = vrot.slane %v10871_v60, %v10708_v57  ;;  %v5340_v27 = vrot.slane %v10967_v46, %v10760_v43  ;;  %v12357_v35 = vld [vmem:[#allocation54_spill] sm:$0xff] }
 0x332   :  { %v4621_v58 = vsel %vm4493_vm1, %v12348_v39, %v4365_v26  ;;  %v3984_v55 = vmul.f32 %v6110_v61, %v12350_v63  ;;  %v4184_v2 = vadd.f32 1.0, %v11032_v11  ;;  %v4693_v45 = vsel %vm4565_vm12, %v12349_v0, %v4437_v47  ;;  %v4878_v14 = vpop.xlane.xlu0 %4877  ;;  %v12354_v26 = vld [vmem:[#allocation61_spill] sm:$0xff] }
 0x333   :  { %5075 = vadd.xlane.f32.xlu0 %v4826_v32  ;;  %v4436_v16 = vmul.f32 %v12352_v29, %v12351_v53  ;;  %v4825_v25 = vmul.f32 %v10744_v36, %v4690_v48  ;;  %v5341_v51 = vsel %vm5235_vm13, %v5340_v27, %v5336_v22  ;;  %v5692_v60 = vsel %vm5284_vm0, %v5691_v10, %v5687_v52  ;;  %v7096_v62 = vpop.eup %7095  ;;  %v12355_v22 = vld [vmem:[#allocation45_spill] sm:$0xff]  ;;  %v12360_v27 = vld [vmem:[#allocation111_spill] sm:$0xff] }
 0x334   :  { %v5696_v46 = vrot.slane %v10978_v6, %v10713_v18  ;;  %v4753_v54 = vmul.f32 %v10744_v36, %v4618_v33  ;;  %v4756_v17 = vmul.f32 %v10744_v36, %v4621_v58  ;;  %vm4564_vm12 = vcmp.gt.f32.partialorder %v12353_v50, 20.0  ;;  %v4880_v8 = vpop.xlane.xlu1 %4879 }
 0x335   :  { %v5345_v41 = vrot.slane %v10954_v40, %v10785_v49  ;;  %5073 = vadd.xlane.f32.xlu1 %v4825_v25  ;;  %v4828_v13 = vmul.f32 %v10744_v36, %v4693_v45  ;;  %v4364_v1 = vmul.f32 %v12355_v22, %v12354_v26  ;;  %v5701_v61 = vrot.slane %v10937_v4, %v10816_v15  ;;  %v12366_v22 = vld [vmem:[#allocation14_spill] sm:$0xff] }
 0x336   :  { %v5697_v6 = vsel %vm5291_vm2, %v5696_v46, %v5692_v60  ;;  %v4692_v59 = vsel %vm4564_vm12, %v12353_v50, %v4436_v16  ;;  %vm4492_vm1 = vcmp.gt.f32.partialorder %v12356_v3, 20.0  ;;  %v5350_v40 = vrot.slane %v4874_v44, %v10788_v56  ;;  %v12365_v50 = vld [vmem:[#allocation120_spill] sm:$0xff] }
 0x337   :  { %4929 = vadd.xlane.f32.xlu0 %v4753_v54  ;;  %v5346_v47 = vsel %vm5242_vm15, %v5345_v41, %v5341_v51  ;;  %v4367_v12 = vmul.f32 %v12358_v24, %v12357_v35  ;;  %v5355_v52 = vrot.slane %v11015_v30, %v10800_v42  ;;  %v5702_v4 = vsel %vm5298_vm6, %v5701_v61, %v5697_v6  ;;  %v12359_v30 = vld [vmem:[#allocation79_spill] sm:$0xff] }
 0x338   :  { %v5706_v32 = vrot.slane %v5018_v37, %v10920_v7  ;;  %v7098_v48 = vpop.eup %7097  ;;  %v5711_v33 = vrot.slane %v10995_v34, %v10929_v19  ;;  %v5351_v39 = vsel %vm5249_vm3, %v5350_v40, %v5346_v47  ;;  %v5360_v58 = vrot.slane %v4878_v14, %v10819_v9  ;;  %v11086_v0 = vpop.xlane.xlu0 %5027  ;;  %v12362_v34 = vld [vmem:[#allocation57_spill] sm:$0xff]  ;;  %v12369_v40 = vld [vmem:[#allocation84_spill] sm:$0xff] }
 0x339   :  { %v5365_v44 = vrot.slane %v4880_v8, %v10841_v5  ;;  %4935 = vadd.xlane.f32.xlu1 %v4756_v17  ;;  %v4620_v10 = vsel %vm4492_vm1, %v12356_v3, %v4364_v1  ;;  %v4366_v45 = vmul.f32 %v12360_v27, %v12359_v30  ;;  %vm12361_vm14 = vcmask 851712   ;;  %v5022_v14 = vpop.xlane.xlu1 %5021  ;;  %v12363_v17 = vld [vmem:[#allocation10_spill] sm:$0xff]  ;;  %v12368_v3 = vld [vmem:[#allocation24_spill] sm:$0xff]  ;;  %v12373_v30 = vld [vmem:[#allocation39_spill] sm:$0xff] }
 0x33a   :  { %v5707_v37 = vsel %vm12361_vm14, %v5706_v32, %v5702_v4  ;;  %v5356_v53 = vsel %vm5256_vm4, %v5355_v52, %v5351_v39  ;;  %7099 = vrcp.f32 %v4184_v2  ;;  %vm4495_vm10 = vcmp.gt.f32.partialorder %v12362_v34, 20.0  ;;  %v12364_v2 = vld [vmem:[#allocation67_spill] sm:$0xff]  ;;  %v12367_v1 = vld [vmem:[#allocation122_spill] sm:$0xff] }
 0x33b   :  { %5079 = vadd.xlane.f32.xlu0 %v4828_v13  ;;  %v5361_v29 = vsel %vm5263_vm5, %v5360_v58, %v5356_v53  ;;  %v5712_v16 = vsel %vm5312_vm8, %v5711_v33, %v5707_v37  ;;  %v4827_v25 = vmul.f32 %v10744_v36, %v4692_v59  ;;  %v4623_v51 = vsel %vm4495_vm10, %v12362_v34, %v4367_v12  ;;  %v12371_v58 = vld [vmem:[#allocation130_spill] sm:$0xff]  ;;  %v12375_v37 = vld [vmem:[#allocation83_spill] sm:$0xff] }
 0x33c   :  { %v5366_v60 = vsel %vm5270_vm7, %v5365_v44, %v5361_v29  ;;  %v5716_v46 = vrot.slane %v5022_v14, %v10933_v23  ;;  %v4755_v54 = vmul.f32 %v10744_v36, %v4620_v10  ;;  %vm4494_vm12 = vcmp.gt.f32.partialorder %v12363_v17, 20.0  ;;  %v4882_v26 = vpop.xlane.xlu0 %4881  ;;  %v12372_v10 = vld [vmem:[#allocation17_spill] sm:$0xff]  ;;  %v12376_v34 = vld [vmem:[#allocation107_spill] sm:$0xff] }
 0x33d   :  { %v4438_v41 = vmul.f32 %v12365_v50, %v12364_v2  ;;  %v4368_v13 = vmul.f32 %v7098_v48, %v3984_v55  ;;  %v3985_v61 = vmul.f32 %v12367_v1, %v12366_v22  ;;  %5077 = vadd.xlane.f32.xlu1 %v4827_v25  ;;  %v4622_v6 = vsel %vm4494_vm12, %v12363_v17, %v4366_v45  ;;  %v12370_v55 = vld [vmem:[#allocation31_spill] sm:$0xff]  ;;  %v4884_v24 = vpop.xlane.xlu1 %4883  ;;  %v12379_v2 = vld [vmem:[#allocation78_spill] sm:$0xff] }
 0x33e   :  { %v11108_v8 = vsel %vm5319_vm11, %v5716_v46, %v5712_v16  ;;  %v5370_v59 = vrot.slane %v4882_v26, %v12342_v28  ;;  %v6181_v47 = vadd.f32 -1.0, %v12368_v3  ;;  %7101 = vrcp.f32 %v12369_v40 }
 0x33f   :  { %4933 = vadd.xlane.f32.xlu0 %v4755_v54  ;;  %v4758_v35 = vmul.f32 %v10744_v36, %v4623_v51  ;;  %vm4566_vm1 = vcmp.gt.f32.partialorder %v12370_v55, 20.0  ;;  %vm4496_vm14 = vcmp.gt.f32.partialorder %v12350_v63, 20.0  ;;  %v4369_v12 = vmul.f32 %v7096_v62, %v3985_v61  ;;  %v12374_v62 = vld [vmem:[#allocation64_spill] sm:$0xff]  ;;  %v12377_v51 = vld [vmem:[#allocation74_spill] sm:$0xff] }
 0x340   :  { %v5371_v52 = vsel %vm5277_vm9, %v5370_v59, %v5366_v60  ;;  %v5375_v4 = vrot.slane %v4884_v24, %v10708_v57  ;;  %v4757_v32 = vmul.f32 %v10744_v36, %v4622_v6  ;;  %v4694_v48 = vsel %vm4566_vm1, %v12370_v55, %v4438_v41  ;;  %v5032_v39 = vpop.xlane.xlu0 %5031  ;;  %v12378_v54 = vld [vmem:[#allocation140_spill] sm:$0xff]  ;;  %v12382_v6 = vld [vmem:[#allocation87_spill] sm:$0xff] }
 0x341   :  { %v4624_v33 = vsel %vm4496_vm14, %v12350_v63, %v4368_v13  ;;  %v6167_v44 = vadd.f32 -1.0, %v12371_v58  ;;  %4939 = vadd.xlane.f32.xlu1 %v4758_v35  ;;  %v4409_v27 = vmul.f32 %v12373_v30, %v12372_v10  ;;  %v4040_v53 = vmul.f32 %v12375_v37, %v12374_v62  ;;  %v12380_v13 = vld [vmem:[#allocation102_spill] sm:$0xff]  ;;  %v12381_v61 = vld [vmem:[#allocation32_spill] sm:$0xff]  ;;  %v12385_v58 = vld [vmem:[#allocation59_spill] sm:$0xff] }
 0x342   :  { %v5376_v45 = vsel %vm5284_vm0, %v5375_v4, %v5371_v52  ;;  %v4055_v29 = vmul.f32 %v6181_v47, %v12376_v34  ;;  %v6182_v16 = vadd.f32 -1.0, %v11032_v11  ;;  %vm4497_vm10 = vcmp.gt.f32.partialorder %v12366_v22, 20.0  ;;  %v5026_v60 = vpop.xlane.xlu1 %5025 }
 0x343   :  { %4937 = vadd.xlane.f32.xlu0 %v4757_v32  ;;  %v4829_v63 = vmul.f32 %v10744_v36, %v4694_v48  ;;  %v4759_v14 = vmul.f32 %v10744_v36, %v4624_v33  ;;  %v4625_v25 = vsel %vm4497_vm10, %v12366_v22, %v4369_v12  ;;  %vm4537_vm12 = vcmp.gt.f32.partialorder %v12377_v51, 20.0 }
 0x344   :  { %v7100_v46 = vpop.eup %7099  ;;  %v4424_v17 = vmul.f32 %v12378_v54, %v4040_v53  ;;  %v4439_v50 = vmul.f32 %v12379_v2, %v4055_v29  ;;  %v5730_v11 = vrot.slane %v11086_v0, %v10753_v21  ;;  %v5726_v41 = vrot.slane %v5026_v60, %v10739_v31  ;;  %v12384_v0 = vld [vmem:[#allocation51_spill] sm:$0xff] }
 0x345   :  { %v4041_v26 = vmul.f32 %v6167_v44, %v12380_v13  ;;  %5081 = vadd.xlane.f32.xlu1 %v4829_v63  ;;  %v4665_v1 = vsel %vm4537_vm12, %v12377_v51, %v4409_v27  ;;  %v6183_v22 = vadd.f32 -1.0, %v12381_v61  ;;  %v4056_v59 = vmul.f32 %v6182_v16, %v12382_v6  ;;  %v4886_v40 = vpop.xlane.xlu0 %4885 }
 0x346   :  { %v4760_v3 = vmul.f32 %v10744_v36, %v4625_v25  ;;  %vm12383_vm1 = vcmask 130112   ;;  %vm4552_vm14 = vcmp.gt.f32.partialorder %v12374_v62, 20.0  ;;  %vm4567_vm10 = vcmp.gt.f32.partialorder %v12376_v34, 20.0 }
 0x347   :  { %4941 = vadd.xlane.f32.xlu0 %v4759_v14  ;;  %v5731_v47 = vsel %vm12383_vm1, %v5730_v11, %v5726_v41  ;;  %v4425_v35 = vmul.f32 %v12384_v0, %v4041_v26  ;;  %v5380_v55 = vrot.slane %v4886_v40, %v10713_v18  ;;  %v4800_v12 = vmul.f32 %v10744_v36, %v4665_v1 }
 0x348   :  { %v7102_v24 = vpop.eup %7101  ;;  %v4680_v52 = vsel %vm4552_vm14, %v12374_v62, %v4424_v17  ;;  %v4695_v4 = vsel %vm4567_vm10, %v12376_v34, %v4439_v50  ;;  %v4440_v32 = vmul.f32 %v7100_v46, %v4056_v59  ;;  %v4057_v44 = vmul.f32 %v6183_v22, %v12385_v58 }
 0x349   :  { %4943 = vadd.xlane.f32.xlu1 %v4760_v3  ;;  %v5381_v48 = vsel %vm5291_vm2, %v5380_v55, %v5376_v45  ;;  %v4888_v33 = vpop.xlane.xlu1 %4887  ;;  %vm4553_vm12 = vcmp.gt.f32.partialorder %v12380_v13, 20.0  ;;  %v5030_v30 = vpop.xlane.xlu0 %5029  ;;  %v4815_v27 = vmul.f32 %v10744_v36, %v4680_v52  ;;  %v4830_v37 = vmul.f32 %v10744_v36, %v4695_v4 }
 0x34a   :  { %v5385_v10 = vrot.slane %v4888_v33, %v10816_v15  ;;  %v4681_v62 = vsel %vm4553_vm12, %v12380_v13, %v4425_v35  ;;  %v5735_v53 = vrot.slane %v5030_v30, %v10760_v43  ;;  %vm4568_vm1 = vcmp.gt.f32.partialorder %v12382_v6, 20.0 }
 0x34b   :  { %5023 = vadd.xlane.f32.xlu0 %v4800_v12  ;;  %v4441_v45 = vmul.f32 %v7102_v24, %v4057_v44  ;;  %v5740_v34 = vrot.slane %v5032_v39, %v10785_v49  ;;  %v4696_v16 = vsel %vm4568_vm1, %v12382_v6, %v4440_v32  ;;  %v4816_v25 = vmul.f32 %v10744_v36, %v4681_v62 }
 0x34c   :  { %v5386_v29 = vsel %vm5298_vm6, %v5385_v10, %v5381_v48  ;;  %v5736_v63 = vsel %vm5235_vm13, %v5735_v53, %v5731_v47  ;;  %vm4569_vm14 = vcmp.gt.f32.partialorder %v12385_v58, 20.0  ;;  %v4831_v60 = vmul.f32 %v10744_v36, %v4696_v16 }
 0x34d   :  { %5053 = vadd.xlane.f32.xlu1 %v4815_v27  ;;  %v5741_v14 = vsel %vm5242_vm15, %v5740_v34, %v5736_v63  ;;  %v4697_v46 = vsel %vm4569_vm14, %v12385_v58, %v4441_v45  ;;  %vm12386_vm10 = vcmask 851712   ;;  %vm5881_vm12 = vcmask 1041409  }
 0x34e   :  { %v4832_v39 = vmul.f32 %v10744_v36, %v4697_v46  ;;  %vm12387_vm1 = vcmask 1048512   ;;  %vm12388_vm14 = vcmask 130112  }
 0x34f   :  { %5083 = vadd.xlane.f32.xlu0 %v4830_v37  ;;  %v4892_v51 = vpop.xlane.xlu1 %4891 }
 0x350   :  { %v5395_v1 = vrot.slane %v4892_v51, %v10929_v19 }
 0x351   :  { %5055 = vadd.xlane.f32.xlu1 %v4816_v25 }
 0x352   :  { %v5036_v54 = vpop.xlane.xlu0 %5035 }
 0x353   :  { %5085 = vadd.xlane.f32.xlu0 %v4831_v60  ;;  %v5750_v50 = vrot.slane %v5036_v54, %v10800_v42 }
 0x355   :  { %5087 = vadd.xlane.f32.xlu1 %v4832_v39  ;;  %v5034_v17 = vpop.xlane.xlu1 %5033 }
 0x356   :  { %v5745_v2 = vrot.slane %v5034_v17, %v10788_v56 }
 0x358   :  { %v5746_v11 = vsel %vm5249_vm3, %v5745_v2, %v5741_v14 }
 0x359   :  { %v4890_v41 = vpop.xlane.xlu0 %4889  ;;  %v5751_v13 = vsel %vm5256_vm4, %v5750_v50, %v5746_v11 }
 0x35a   :  { %v5390_v26 = vrot.slane %v4890_v41, %v10920_v7 }
 0x35c   :  { %v5391_v61 = vsel %vm12386_vm10, %v5390_v26, %v5386_v29  ;;  %v4896_v22 = vpop.xlane.xlu1 %4895 }
 0x35d   :  { %v5396_v36 = vsel %vm5312_vm8, %v5395_v1, %v5391_v61  ;;  %v5405_v24 = vrot.slane %v4896_v22, %v10957_v38 }
 0x360   :  { %v5040_v6 = vpop.xlane.xlu0 %5039 }
 0x361   :  { %v5760_v47 = vrot.slane %v5040_v6, %v10841_v5 }
 0x363   :  { %v5038_v59 = vpop.xlane.xlu1 %5037 }
 0x364   :  { %v5755_v3 = vrot.slane %v5038_v59, %v10819_v9 }
 0x366   :  { %v5756_v40 = vsel %vm5263_vm5, %v5755_v3, %v5751_v13  ;;  %v4894_v0 = vpop.xlane.xlu0 %4893 }
 0x367   :  { %v5400_v35 = vrot.slane %v4894_v0, %v10933_v23  ;;  %v5761_v55 = vsel %vm5270_vm7, %v5760_v47, %v5756_v40 }
 0x369   :  { %v5401_v12 = vsel %vm5319_vm11, %v5400_v35, %v5396_v36  ;;  %v4900_v32 = vpop.xlane.xlu1 %4899 }
 0x36a   :  { %v5406_v52 = vsel %vm12387_vm1, %v5405_v24, %v5401_v12  ;;  %v5414_v27 = vrot.slane %v4900_v32, %v10753_v21  ;;  %vm5883_vm1 = vcmask 1042434  }
 0x36b   :  { %v11188_v4 = vsel %vm5881_vm12, %v5406_v52, %v11001_v20  ;;  %vm12390_vm12 = vmmov %vm12386_vm10 }
 0x36c   :  { %v5044_v48 = vpop.xlane.xlu0 %5043 }
 0x36d   :  { %v5770_v44 = vrot.slane %v5044_v48, %v10708_v57 }
 0x371   :  { %v5042_v33 = vpop.xlane.xlu1 %5041 }
 0x372   :  { %v5765_v58 = vrot.slane %v5042_v33, %v12342_v28 }
 0x374   :  { %v5766_v10 = vsel %vm5277_vm9, %v5765_v58, %v5761_v55  ;;  %v4898_v30 = vpop.xlane.xlu0 %4897 }
 0x375   :  { %v5410_v37 = vrot.slane %v4898_v30, %v10739_v31  ;;  %v5771_v62 = vsel %vm5284_vm0, %v5770_v44, %v5766_v10 }
 0x377   :  { %v5415_v53 = vsel %vm12388_vm14, %v5414_v27, %v5410_v37 }
 0x37a   :  { %v4904_v20 = vpop.xlane.xlu1 %4903 }
 0x37b   :  { %v5424_v60 = vrot.slane %v4904_v20, %v10785_v49 }
 0x37d   :  { %v5048_v45 = vpop.xlane.xlu0 %5047 }
 0x37e   :  { %v5780_v16 = vrot.slane %v5048_v45, %v10816_v15 }
 0x37f   :  { %v5046_v34 = vpop.xlane.xlu1 %5045 }
 0x380   :  { %v5775_v29 = vrot.slane %v5046_v34, %v10713_v18 }
 0x382   :  { %v5776_v63 = vsel %vm5291_vm2, %v5775_v29, %v5771_v62 }
 0x383   :  { %v5781_v14 = vsel %vm5298_vm6, %v5780_v16, %v5776_v63 }
 0x384   :  { %v4902_v25 = vpop.xlane.xlu0 %4901 }
 0x385   :  { %v5419_v51 = vrot.slane %v4902_v25, %v10760_v43  ;;  %v12389_v25 = vld [vmem:[#allocation72_spill] sm:$0xff] }
 0x387   :  { %v5420_v46 = vsel %vm5235_vm13, %v5419_v51, %v5415_v53  ;;  %v4908_v39 = vpop.xlane.xlu1 %4907  ;;  %v5572_v51 = vrot.slane %v12389_v25, %v10753_v21 }
 0x388   :  { %v5425_v54 = vsel %vm5242_vm15, %v5424_v60, %v5420_v46  ;;  %v5434_v61 = vrot.slane %v4908_v39, %v10800_v42 }
 0x38a   :  { %v5052_v17 = vpop.xlane.xlu0 %5051 }
 0x38b   :  { %v5050_v2 = vpop.xlane.xlu1 %5049  ;;  %v5790_v11 = vrot.slane %v5052_v17, %v10929_v19  ;;  %v12391_v17 = vld [vmem:[#allocation109_spill] sm:$0xff] }
 0x38c   :  { %v5785_v50 = vrot.slane %v5050_v2, %v10920_v7  ;;  %v5568_v2 = vrot.slane %v12391_v17, %v10739_v31 }
 0x38e   :  { %v5786_v41 = vsel %vm12386_vm10, %v5785_v50, %v5781_v14  ;;  %v4906_v13 = vpop.xlane.xlu0 %4905  ;;  %vm12393_vm10 = vcmask 1048512  }
 0x38f   :  { %v5429_v26 = vrot.slane %v4906_v13, %v10788_v56  ;;  %v11210_v1 = vsel %vm5312_vm8, %v5790_v11, %v5786_v41  ;;  %v12392_v11 = vld [vmem:[#allocation56_spill] sm:$0xff] }
 0x390   :  { %v5577_v41 = vrot.slane %v12392_v11, %v10760_v43 }
 0x391   :  { %v5430_v22 = vsel %vm5249_vm3, %v5429_v26, %v5425_v54 }
 0x392   :  { %v5435_v36 = vsel %vm5256_vm4, %v5434_v61, %v5430_v22  ;;  %v4912_v6 = vpop.xlane.xlu1 %4911  ;;  %v5573_v61 = vsel %vm12388_vm14, %v5572_v51, %v5568_v2  ;;  %v12400_v2 = vld [vmem:[#allocation121_spill] sm:$0xff] }
 0x393   :  { %v5444_v58 = vrot.slane %v4912_v6, %v10841_v5 }
 0x395   :  { %v4910_v59 = vpop.xlane.xlu0 %4909 }
 0x396   :  { %v5439_v24 = vrot.slane %v4910_v59, %v10819_v9 }
 0x398   :  { %v5440_v32 = vsel %vm5263_vm5, %v5439_v24, %v5435_v36  ;;  %v5578_v24 = vsel %vm5235_vm13, %v5577_v41, %v5573_v61 }
 0x399   :  { %v5445_v10 = vsel %vm5270_vm7, %v5444_v58, %v5440_v32  ;;  %v12395_v32 = vld [vmem:[#allocation58_spill] sm:$0xff] }
 0x39a   :  { %v4916_v3 = vpop.xlane.xlu1 %4915 }
 0x39b   :  { %v5060_v47 = vpop.xlane.xlu0 %5059  ;;  %v5454_v62 = vrot.slane %v4916_v3, %v10708_v57  ;;  %v12394_v3 = vld [vmem:[#allocation76_spill] sm:$0xff] }
 0x3a1   :  { %v5058_v40 = vpop.xlane.xlu1 %5057 }
 0x3a4   :  { %v4914_v0 = vpop.xlane.xlu0 %4913 }
 0x3a5   :  { %v5449_v48 = vrot.slane %v4914_v0, %v12342_v28  ;;  %v5582_v0 = vrot.slane %v12394_v3, %v10785_v49  ;;  %v12402_v3 = vld [vmem:[#allocation68_spill] sm:$0xff] }
 0x3a6   :  { %v4920_v35 = vpop.xlane.xlu1 %4919 }
 0x3a7   :  { %v5450_v30 = vsel %vm5277_vm9, %v5449_v48, %v5445_v10  ;;  %v5464_v16 = vrot.slane %v4920_v35, %v10816_v15  ;;  %v5587_v48 = vrot.slane %v12395_v32, %v10788_v56  ;;  %v5583_v58 = vsel %vm5242_vm15, %v5582_v0, %v5578_v24  ;;  %v12396_v10 = vld [vmem:[#allocation38_spill] sm:$0xff]  ;;  %v12403_v32 = vld [vmem:[#allocation23_spill] sm:$0xff] }
 0x3a8   :  { %v11215_v55 = vpop.xlane.xlu0 %5063  ;;  %v5455_v20 = vsel %vm5284_vm0, %v5454_v62, %v5450_v30  ;;  %v5592_v30 = vrot.slane %v12396_v10, %v10800_v42  ;;  %v5617_v0 = vrot.slane %v12402_v3, %v10713_v18  ;;  %v12416_v3 = vld [vmem:[#allocation75_spill] sm:$0xff] }
 0x3a9   :  { %v5588_v62 = vsel %vm5249_vm3, %v5587_v48, %v5583_v58  ;;  %v5819_v11 = vrot.slane %v11215_v55, %v10785_v49  ;;  %v5612_v48 = vrot.slane %v12403_v32, %v10708_v57 }
 0x3aa   :  { %v5062_v12 = vpop.xlane.xlu1 %5061 }
 0x3ac   :  { %v4918_v52 = vpop.xlane.xlu0 %4917 }
 0x3ad   :  { %v5459_v27 = vrot.slane %v4918_v52, %v10713_v18 }
 0x3ae   :  { %v4924_v33 = vpop.xlane.xlu1 %4923 }
 0x3af   :  { %v5460_v45 = vsel %vm5291_vm2, %v5459_v27, %v5455_v20  ;;  %v5474_v39 = vrot.slane %v4924_v33, %v10929_v19  ;;  %v5814_v20 = vrot.slane %v5062_v12, %v10760_v43 }
 0x3b0   :  { %v11221_v44 = vpop.xlane.xlu0 %5067  ;;  %v5465_v14 = vsel %vm5298_vm6, %v5464_v16, %v5460_v45  ;;  %v12397_v45 = vld [vmem:[#allocation115_spill] sm:$0xff] }
 0x3b1   :  { %v5829_v24 = vrot.slane %v11221_v44, %v10800_v42 }
 0x3b2   :  { %v11226_v37 = vpop.xlane.xlu1 %5065 }
 0x3b3   :  { %v5824_v17 = vrot.slane %v11226_v37, %v10788_v56 }
 0x3b4   :  { %v4922_v53 = vpop.xlane.xlu0 %4921 }
 0x3b5   :  { %v5469_v34 = vrot.slane %v4922_v53, %v10920_v7  ;;  %v5805_v53 = vrot.slane %v5058_v40, %v10739_v31 }
 0x3b6   :  { %v4928_v29 = vpop.xlane.xlu1 %4927 }
 0x3b7   :  { %v5470_v60 = vsel %vm12390_vm12, %v5469_v34, %v5465_v14  ;;  %v5484_v13 = vrot.slane %v4928_v29, %v10957_v38  ;;  %v5597_v34 = vrot.slane %v12397_v45, %v10819_v9  ;;  %v5809_v29 = vrot.slane %v5060_v47, %v10753_v21  ;;  %vm12398_vm12 = vmmov %vm12388_vm14 }
 0x3b8   :  { %v11233_v63 = vpop.xlane.xlu0 %5071  ;;  %v5475_v26 = vsel %vm5312_vm8, %v5474_v39, %v5470_v60  ;;  %v5593_v14 = vsel %vm5256_vm4, %v5592_v30, %v5588_v62  ;;  %v12399_v39 = vld [vmem:[#allocation27_spill] sm:$0xff] }
 0x3b9   :  { %v5810_v51 = vsel %vm12398_vm12, %v5809_v29, %v5805_v53  ;;  %v12405_v29 = vld [vmem:[#allocation11_spill] sm:$0xff] }
 0x3ba   :  { %v11239_v46 = vpop.xlane.xlu1 %5069  ;;  %v5815_v12 = vsel %vm5235_vm13, %v5814_v20, %v5810_v51  ;;  %v12404_v20 = vld [vmem:[#allocation28_spill] sm:$0xff] }
 0x3bb   :  { %v5627_v45 = vrot.slane %v12404_v20, %v10920_v7 }
 0x3bc   :  { %v4926_v54 = vpop.xlane.xlu0 %4925 }
 0x3bd   :  { %v5479_v50 = vrot.slane %v4926_v54, %v10933_v23  ;;  %v5602_v54 = vrot.slane %v12399_v39, %v10841_v5  ;;  %v12408_v39 = vld [vmem:[#allocation66_spill] sm:$0xff] }
 0x3be   :  { %v4932_v36 = vpop.xlane.xlu1 %4931 }
 0x3bf   :  { %v5480_v22 = vsel %vm5319_vm11, %v5479_v50, %v5475_v26  ;;  %v5493_v60 = vrot.slane %v4932_v36, %v10753_v21  ;;  %v5607_v50 = vrot.slane %v12400_v2, %v12342_v28  ;;  %v5820_v26 = vsel %vm5242_vm15, %v5819_v11, %v5815_v12  ;;  %v12410_v11 = vld [vmem:[#allocation21_spill] sm:$0xff] }
 0x3c0   :  { %v5485_v6 = vsel %vm12393_vm10, %v5484_v13, %v5480_v22  ;;  %v11252_v59 = vpop.xlane.xlu0 %5075  ;;  %v5825_v22 = vsel %vm5249_vm3, %v5824_v17, %v5820_v26  ;;  %v5834_v36 = vrot.slane %v11239_v46, %v10819_v9  ;;  %v12412_v26 = vld [vmem:[#allocation116_spill] sm:$0xff] }
 0x3c1   :  { %v11257_v35 = vsel %vm5883_vm1, %v5485_v6, %v11188_v4  ;;  %vm12401_vm1 = vmmov %vm12398_vm12  ;;  %v5830_v46 = vsel %vm5256_vm4, %v5829_v24, %v5825_v22  ;;  %v12414_v22 = vld [vmem:[#allocation48_spill] sm:$0xff] }
 0x3c2   :  { %v11260_v52 = vpop.xlane.xlu1 %5073 }
 0x3c3   :  { %v5844_v44 = vrot.slane %v11260_v52, %v12342_v28 }
 0x3c4   :  { %v4930_v33 = vpop.xlane.xlu0 %4929 }
 0x3c5   :  { %v5489_v16 = vrot.slane %v4930_v33, %v10739_v31  ;;  %v5598_v31 = vsel %vm5263_vm5, %v5597_v34, %v5593_v14  ;;  %v5839_v34 = vrot.slane %v11233_v63, %v10841_v5  ;;  %v12406_v14 = vld [vmem:[#allocation117_spill] sm:$0xff] }
 0x3c6   :  { %v4936_v27 = vpop.xlane.xlu1 %4935  ;;  %v5622_v51 = vrot.slane %v12406_v14, %v10816_v15 }
 0x3c7   :  { %v5494_v21 = vsel %vm12401_vm1, %v5493_v60, %v5489_v16  ;;  %v5503_v61 = vrot.slane %v4936_v27, %v10785_v49  ;;  %v5835_v27 = vsel %vm5263_vm5, %v5834_v36, %v5830_v46  ;;  %v5528_v16 = vrot.slane %v12405_v29, %v12342_v28  ;;  %v12409_v28 = vld [vmem:[#allocation119_spill] sm:$0xff]  ;;  %v12417_v46 = vld [vmem:[#allocation22_spill] sm:$0xff] }
 0x3c8   :  { %v11269_v4 = vpop.xlane.xlu0 %5079  ;;  %v5840_v12 = vsel %vm5270_vm7, %v5839_v34, %v5835_v27  ;;  %v5637_v36 = vrot.slane %v12414_v22, %v10933_v23 }
 0x3c9   :  { %v5845_v2 = vsel %vm5277_vm9, %v5844_v44, %v5840_v12 }
 0x3ca   :  { %v11277_v25 = vpop.xlane.xlu1 %5077 }
 0x3cc   :  { %v4934_v40 = vpop.xlane.xlu0 %4933 }
 0x3cd   :  { %v5498_v47 = vrot.slane %v4934_v40, %v10760_v43  ;;  %v5603_v43 = vsel %vm5270_vm7, %v5602_v54, %v5598_v31  ;;  %v5538_v54 = vrot.slane %v12408_v39, %v10713_v18  ;;  %v5632_v31 = vrot.slane %v12409_v28, %v10929_v19 }
 0x3ce   :  { %v4940_v13 = vpop.xlane.xlu1 %4939  ;;  %v5608_v55 = vsel %vm5277_vm9, %v5607_v50, %v5603_v43  ;;  %v5854_v50 = vrot.slane %v11277_v25, %v10713_v18 }
 0x3cf   :  { %v5499_v41 = vsel %vm5235_vm13, %v5498_v47, %v5494_v21  ;;  %v5613_v30 = vsel %vm5284_vm0, %v5612_v48, %v5608_v55  ;;  %v5543_v21 = vrot.slane %v12410_v11, %v10816_v15  ;;  %vm12411_vm13 = vcmask 851712  }
 0x3d0   :  { %v4938_v37 = vpop.xlane.xlu0 %4937  ;;  %v5504_v49 = vsel %vm5242_vm15, %v5503_v61, %v5499_v41  ;;  %v5618_v53 = vsel %vm5291_vm2, %v5617_v0, %v5613_v30  ;;  %v5548_v61 = vrot.slane %v12412_v26, %v10920_v7  ;;  %vm12418_vm15 = vmmov %vm12411_vm13 }
 0x3d1   :  { %v5508_v6 = vrot.slane %v4938_v37, %v10788_v56  ;;  %v5513_v56 = vrot.slane %v4940_v13, %v10800_v42  ;;  %v5623_v47 = vsel %vm5298_vm6, %v5622_v51, %v5618_v53  ;;  %v5849_v13 = vrot.slane %v11252_v59, %v10708_v57  ;;  %v12413_v37 = vld [vmem:[#allocation25_spill] sm:$0xff] }
 0x3d2   :  { %v5082_v58 = vpop.xlane.xlu1 %5081  ;;  %v5628_v41 = vsel %vm12411_vm13, %v5627_v45, %v5623_v47  ;;  %v5553_v43 = vrot.slane %v12413_v37, %v10929_v19 }
 0x3d3   :  { %v5509_v33 = vsel %vm5249_vm3, %v5508_v6, %v5504_v49  ;;  %v12415_v6 = vld [vmem:[#allocation71_spill] sm:$0xff]  ;;  %v5850_v59 = vsel %vm5284_vm0, %v5849_v13, %v5845_v2  ;;  %v5633_v49 = vsel %vm5312_vm8, %v5632_v31, %v5628_v41  ;;  %v5864_v48 = vrot.slane %v5082_v58, %v10920_v7 }
 0x3d4   :  { %v4942_v10 = vpop.xlane.xlu0 %4941  ;;  %v5514_v42 = vsel %vm5256_vm4, %v5513_v56, %v5509_v33  ;;  %v5558_v55 = vrot.slane %v12415_v6, %v10933_v23  ;;  %v5855_v32 = vsel %vm5291_vm2, %v5854_v50, %v5850_v59  ;;  %v5642_v56 = vrot.slane %v12417_v46, %v10957_v38 }
 0x3d5   :  { %v5518_v62 = vrot.slane %v4942_v10, %v10819_v9  ;;  %v12407_v9 = vld [vmem:[#allocation106_spill] sm:$0xff]  ;;  %v5859_v10 = vrot.slane %v11269_v4, %v10816_v15  ;;  %v5638_v44 = vsel %vm5319_vm11, %v5637_v36, %v5633_v49  ;;  %vm5885_vm3 = vcmask 1043459  }
 0x3d6   :  { %v4944_v60 = vpop.xlane.xlu1 %4943  ;;  %v5533_v40 = vrot.slane %v12407_v9, %v10708_v57  ;;  %v5563_v57 = vrot.slane %v12416_v3, %v10957_v38  ;;  %vm5887_vm4 = vcmask 1044484  }
 0x3d7   :  { %v5519_v52 = vsel %vm5263_vm5, %v5518_v62, %v5514_v42  ;;  %v5523_v63 = vrot.slane %v4944_v60, %v10841_v5  ;;  %v5860_v7 = vsel %vm5298_vm6, %v5859_v10, %v5855_v32  ;;  %vm12419_vm5 = vmmov %vm12411_vm13 }
 0x3d8   :  { %v5024_v17 = vpop.xlane.xlu0 %5023  ;;  %v5865_v4 = vsel %vm12419_vm5, %v5864_v48, %v5860_v7 }
 0x3d9   :  { %v5524_v5 = vsel %vm5270_vm7, %v5523_v63, %v5519_v52  ;;  %v5721_v58 = vrot.slane %v5024_v17, %v10957_v38  ;;  %vm12420_vm7 = vmmov %vm12393_vm10 }
 0x3da   :  { %v5529_v18 = vsel %vm5277_vm9, %v5528_v16, %v5524_v5  ;;  %v5054_v25 = vpop.xlane.xlu1 %5053  ;;  %v5643_v29 = vsel %vm12420_vm7, %v5642_v56, %v5638_v44  ;;  %vm12421_vm9 = vmmov %vm12420_vm7 }
 0x3db   :  { %v5534_v0 = vsel %vm5284_vm0, %v5533_v40, %v5529_v18  ;;  %v5795_v20 = vrot.slane %v5054_v25, %v10933_v23  ;;  %vm5889_vm0 = vcmask 1045509   ;;  %vm12422_vm14 = vmmov %vm12420_vm7 }
 0x3dc   :  { %v5084_v24 = vpop.xlane.xlu0 %5083  ;;  %v5539_v33 = vsel %vm5291_vm2, %v5538_v54, %v5534_v0  ;;  %vm5891_vm2 = vcmask 1046534   ;;  %vm12424_vm10 = vmmov %vm12420_vm7 }
 0x3dd   :  { %v5544_v30 = vsel %vm5298_vm6, %v5543_v21, %v5539_v33  ;;  %v5869_v27 = vrot.slane %v5084_v24, %v10929_v19  ;;  %vm5893_vm6 = vcmask 1047559   ;;  %v5796_v9 = vsel %vm5319_vm11, %v5795_v20, %v11210_v1 }
 0x3de   :  { %v5549_v62 = vsel %vm12418_vm15, %v5548_v61, %v5544_v30  ;;  %v5056_v53 = vpop.xlane.xlu1 %5055 }
 0x3df   :  { %v5554_v15 = vsel %vm5312_vm8, %v5553_v43, %v5549_v62  ;;  %v5800_v19 = vrot.slane %v5056_v53, %v10957_v38  ;;  %v5870_v16 = vsel %vm5312_vm8, %v5869_v27, %v5865_v4  ;;  %vm12423_vm8 = vmmov %vm12420_vm7 }
 0x3e0   :  { %v5086_v45 = vpop.xlane.xlu0 %5085  ;;  %v5559_v42 = vsel %vm5319_vm11, %v5558_v55, %v5554_v15 }
 0x3e1   :  { %v5874_v34 = vrot.slane %v5086_v45, %v10933_v23  ;;  %v5564_v14 = vsel %vm12421_vm9, %v5563_v57, %v5559_v42  ;;  %v5722_v23 = vsel %vm12422_vm14, %v5721_v58, %v11108_v8  ;;  %v5801_v54 = vsel %vm12423_vm8, %v5800_v19, %v5796_v9 }
 0x3e2   :  { %v5088_v52 = vpop.xlane.xlu1 %5087  ;;  %v5886_v60 = vsel %vm5885_vm3, %v5564_v14, %v11257_v35 }
 0x3e3   :  { %v5875_v51 = vsel %vm5319_vm11, %v5874_v34, %v5870_v16  ;;  %v5879_v40 = vrot.slane %v5088_v52, %v10957_v38  ;;  %v5888_v39 = vsel %vm5887_vm4, %v5643_v29, %v5886_v60 }
 0x3e4   :  { %v5890_v12 = vsel %vm5889_vm0, %v5722_v23, %v5888_v39 }
 0x3e5   :  { %v5880_v63 = vsel %vm12424_vm10, %v5879_v40, %v5875_v51  ;;  %v5892_v35 = vsel %vm5891_vm2, %v5801_v54, %v5890_v12 }
 0x3e6   :  { %v5894_v17 = vsel %vm5893_vm6, %v5880_v63, %v5892_v35 }
 0x3e7   :  { %5896 = vst [vmem:[#allocation2] sm:$0xff] %v5894_v17 }
 0x3e8   :  { %7122 = shalt.err (!%p7119_p4)
}
 0x3e9   :  { %s7123_s26 = scalar_lea.hbm %s11411_s6, 128 }
 0x3ea   :  { %p7124_p5 = scmp.ne.s32.totalorder %s11411_s6, %s7123_s26  ;;  %p7127_p6 = scmp.lt.u32.totalorder %s7123_s26, %s11411_s6 }
 0x3ec   :  { %p7129_p7 = pnand %p7127_p6, %p7124_p5 }
 0x3ee   :  { %7132 = shalt.err (!%p7129_p7)
}
 0x3ef   :  { %5906 = dma.vmem_to_hbm [thread:$0]  %s5904_s22, 128, %s11411_s6, [#allocation3]  }
 0x3f0   :  { %7133 = dma.done.wait [#allocation3], 128  }
 0x3f1   :  { %7134 = vsyncadd [#allocation3], 4294967168 }
 0x3f2   :  { %5910 = vsyncpa [#allocation3], 1 }

</bundles_post_ra>
